<compile_context>
chip_gen: v7x
topology: tpu7x:2x2x1
jax: 0.10.0
libtpu: 0.0.40
codegen_flags: <defaults>
</compile_context>

<pallas_src>
import functools

import jax
import jax.numpy as jnp
from jax import lax
from jax.experimental import pallas as pl
from jax.experimental.pallas import tpu as pltpu


def _encoder_lstm_kernel(hidden_size, seq_len, t_chunk, needs_mask, unroll,
                         emb_ref, wih1_ref, b1_ref, wc_ref, b2_ref,
                         h_out_ref, c_out_ref,
                         xp_sc, h1_sc, c1_sc, h2_sc, c2_sc, rec1_sc):
    """Fused 2-layer LSTM over one time chunk.

    emb_ref:  (t_chunk, B, E) bf16   streamed embedding chunk
    wih1_ref: (E, 4H) bf16           layer-1 input weights (transposed), resident
    b1_ref:   (1, 4H) f32            layer-1 bias (b_ih1 + b_hh1)
    wc_ref:   (2H, 8H) bf16          combined recurrent weight [[Whh1,Wih2],[0,Whh2]]
    b2_ref:   (1, 4H) f32            layer-2 bias (b_ih2 + b_hh2)
    h_out_ref, c_out_ref: (2, B, H)  final hidden / cell (resident outputs)
    xp_sc:    (t_chunk, B, 4H) f32   per-chunk layer-1 input projection
    h1/c1/h2/c2_sc: (B, H) f32       state carried across chunks
    rec1_sc:  (B, 4H) f32            h1_{t-1} @ Whh1^T carried across chunks
    """
    H = hidden_size
    chunk = pl.program_id(0)
    _, B, E = emb_ref.shape

    @pl.when(chunk == 0)
    def _():
        h1_sc[...] = jnp.zeros_like(h1_sc)
        c1_sc[...] = jnp.zeros_like(c1_sc)
        h2_sc[...] = jnp.zeros_like(h2_sc)
        c2_sc[...] = jnp.zeros_like(c2_sc)
        rec1_sc[...] = jnp.zeros_like(rec1_sc)

    # --- In-kernel layer-1 input projection for the whole chunk -------------
    # One big (t_chunk*B, E) x (E, 4H) MXU matmul (M = t_chunk*B, not B).
    emb2d = emb_ref[...].reshape(t_chunk * B, E)
    xp = jnp.dot(emb2d, wih1_ref[...], preferred_element_type=jnp.float32)
    xp_sc[...] = (xp + b1_ref[...].astype(jnp.float32)).reshape(t_chunk, B, 4 * H)

    def cell(gates, c_prev):
        # PyTorch gate order (i, f, g, o); elementwise math in f32.
        i = jax.nn.sigmoid(gates[:, 0 * H:1 * H])
        f = jax.nn.sigmoid(gates[:, 1 * H:2 * H])
        g = jnp.tanh(gates[:, 2 * H:3 * H])
        o = jax.nn.sigmoid(gates[:, 3 * H:4 * H])
        c_new = f * c_prev + i * g
        h_new = o * jnp.tanh(c_new)
        return h_new, c_new

    def step(t, carry):
        h1, c1, h2, c2, rec1 = carry
        # Layer 1: projection was done above; rec1 = h1_{t-1} @ Whh1^T came from
        # the previous step's fused matmul.
        gates1 = xp_sc[t] + rec1
        h1n, c1n = cell(gates1, c1)
        # Single fused MXU launch: [h1_t, h2_{t-1}] @ [[Whh1,Wih2],[0,Whh2]].
        # Weight is read from the ref inside the dot (no SSA hoist -> no vreg
        # pressure above the loop).
        lhs = jnp.concatenate([h1n, h2], axis=-1).astype(wc_ref.dtype)   # (B, 2H)
        big = jnp.dot(lhs, wc_ref[...], preferred_element_type=jnp.float32)  # (B, 8H)
        rec1n = big[:, :4 * H]                       # layer-1 recurrent term, step t+1
        gates2 = big[:, 4 * H:] + b2_ref[...].astype(jnp.float32)
        h2n, c2n = cell(gates2, c2)
        if needs_mask:
            keep = (chunk * t_chunk + t) < seq_len   # tail padding guard (last chunk)
            h1n = jnp.where(keep, h1n, h1)
            c1n = jnp.where(keep, c1n, c1)
            h2n = jnp.where(keep, h2n, h2)
            c2n = jnp.where(keep, c2n, c2)
            rec1n = jnp.where(keep, rec1n, rec1)
        return (h1n, c1n, h2n, c2n, rec1n)

    h1, c1, h2, c2, rec1 = lax.fori_loop(
        0, t_chunk, step,
        (h1_sc[...], c1_sc[...], h2_sc[...], c2_sc[...], rec1_sc[...]),
        unroll=unroll)

    # Carry state to the next chunk.
    h1_sc[...] = h1
    c1_sc[...] = c1
    h2_sc[...] = h2
    c2_sc[...] = c2
    rec1_sc[...] = rec1

    # Final (num_layers=2, B, H) hidden/cell written once, on the last chunk.
    @pl.when(chunk == pl.num_programs(0) - 1)
    def _():
        h_out_ref[0] = h1
        h_out_ref[1] = h2
        c_out_ref[0] = c1
        c_out_ref[1] = c2


def _vmem_plan(T, B, E, H, budget_bytes=40 * 1024 * 1024):
    """VMEM-budget-aware chunk length + explicit vmem limit.

    Conservative ~40 MiB target so the same tiling fits v7x (64 MiB physical),
    v6e and v5e.  Assumes default double-buffering for all pipelined inputs.
    """
    bf16, f32 = 2, 4
    four_h, eight_h = 4 * H, 8 * H
    # Grid-invariant inputs (double-buffered) + resident outputs + state scratch.
    fixed = 2 * (E * four_h * bf16 + 2 * H * eight_h * bf16 + 2 * four_h * f32)
    fixed += 2 * (2 * 2 * B * H * f32)
    fixed += (4 * B * H + B * four_h) * f32
    # Per-timestep cost: streamed bf16 emb block (x2 buffers) + f32 xp scratch
    # (counted twice: scratch + compiler temporary for the big matmul result).
    per_t = 2 * B * E * bf16 + 2 * B * four_h * f32
    avail = max(budget_bytes - fixed, per_t)
    t_chunk = int(max(1, min(T, avail // per_t, 512)))
    needed = fixed + t_chunk * per_t
    vmem_limit = int(min(needed + (8 << 20), 120 << 20))
    return t_chunk, vmem_limit


def _pick_unroll(B, H, t_chunk):
    """Cap unroll so carried state + per-step matmul output stay well under the
    64-vreg file (spills land on the vld/vst slots otherwise)."""
    state_vregs = (8 * B * H + 1023) // 1024      # h1,c1,h2,c2 + rec1 (f32)
    gate_vregs = (8 * B * H + 1023) // 1024       # one (B, 8H) f32 matmul result
    live = state_vregs + gate_vregs
    if live <= 16:
        unroll = 8
    elif live <= 32:
        unroll = 4
    elif live <= 48:
        unroll = 2
    else:
        unroll = 1
    return max(1, min(unroll, t_chunk))


def fused_encoder_lstm(emb_bf16, wih1_bf16, b1, wc_bf16, b2, hidden_size):
    """Run the fused embedding-projection + 2-layer LSTM recurrence.

    emb_bf16:  (T, B, E)  bf16
    wih1_bf16: (E, 4H)    bf16   layer-1 input weights, transposed
    b1:        (1, 4H)    f32
    wc_bf16:   (2H, 8H)   bf16   [[Whh1^T, Wih2^T], [0, Whh2^T]]
    b2:        (1, 4H)    f32
    returns (hidden (2,B,H), cell (2,B,H)) f32
    """
    T, B, E = emb_bf16.shape
    H = hidden_size
    assert H % 128 == 0, "hidden_size must be a multiple of 128 for lane-aligned gates"
    assert wc_bf16.shape == (2 * H, 8 * H)

    # Pad batch to a multiple of 8 (min sublane tile).
    B_pad = max(8, ((B + 7) // 8) * 8)
    if B_pad != B:
        emb_bf16 = jnp.pad(emb_bf16, ((0, 0), (0, B_pad - B), (0, 0)))

    t_chunk, vmem_limit = _vmem_plan(T, B_pad, E, H)
    n_chunks = pl.cdiv(T, t_chunk)
    T_pad = n_chunks * t_chunk
    needs_mask = (T_pad != T)
    if needs_mask:
        emb_bf16 = jnp.pad(emb_bf16, ((0, T_pad - T), (0, 0), (0, 0)))
    unroll = _pick_unroll(B_pad, H, t_chunk)

    kernel = functools.partial(_encoder_lstm_kernel, H, T, t_chunk, needs_mask, unroll)

    grid_spec = pltpu.PrefetchScalarGridSpec(
        num_scalar_prefetch=0,
        grid=(n_chunks,),
        in_specs=[
            pl.BlockSpec((t_chunk, B_pad, E), lambda i: (i, 0, 0)),  # emb chunk (bf16)
            pl.BlockSpec((E, 4 * H), lambda i: (0, 0)),              # Wih1 (resident)
            pl.BlockSpec((1, 4 * H), lambda i: (0, 0)),              # b1
            pl.BlockSpec((2 * H, 8 * H), lambda i: (0, 0)),          # W_comb (resident)
            pl.BlockSpec((1, 4 * H), lambda i: (0, 0)),              # b2
        ],
        out_specs=[
            pl.BlockSpec((2, B_pad, H), lambda i: (0, 0, 0)),
            pl.BlockSpec((2, B_pad, H), lambda i: (0, 0, 0)),
        ],
        scratch_shapes=[
            pltpu.VMEM((t_chunk, B_pad, 4 * H), jnp.float32),        # xp (layer-1 proj)
            pltpu.VMEM((B_pad, H), jnp.float32),                     # h1
            pltpu.VMEM((B_pad, H), jnp.float32),                     # c1
            pltpu.VMEM((B_pad, H), jnp.float32),                     # h2
            pltpu.VMEM((B_pad, H), jnp.float32),                     # c2
            pltpu.VMEM((B_pad, 4 * H), jnp.float32),                 # rec1
        ],
    )

    hidden, cell = pl.pallas_call(
        kernel,
        out_shape=(
            jax.ShapeDtypeStruct((2, B_pad, H), jnp.float32),
            jax.ShapeDtypeStruct((2, B_pad, H), jnp.float32),
        ),
        grid_spec=grid_spec,
        compiler_params=pltpu.CompilerParams(
            dimension_semantics=("arbitrary",),
            vmem_limit_bytes=vmem_limit),
    )(emb_bf16, wih1_bf16, b1, wc_bf16, b2)

    if B_pad != B:
        hidden = hidden[:, :B, :]
        cell = cell[:, :B, :]
    return hidden, cell


def init_encoder_params(key, input_size, embedding_size, hidden_size, num_layers):
    """PyTorch-style init: Embedding ~ N(0,1); LSTM ~ U(-1/sqrt(H), 1/sqrt(H))."""
    keys = jax.random.split(key, 1 + 4 * num_layers)
    params = {}
    params["embedding"] = jax.random.normal(
        keys[0], (input_size, embedding_size), jnp.float32)
    bound = 1.0 / jnp.sqrt(jnp.float32(hidden_size))
    layers = []
    k = 1
    in_dim = embedding_size
    for _ in range(num_layers):
        w_ih = jax.random.uniform(keys[k], (4 * hidden_size, in_dim),
                                  jnp.float32, -bound, bound); k += 1
        w_hh = jax.random.uniform(keys[k], (4 * hidden_size, hidden_size),
                                  jnp.float32, -bound, bound); k += 1
        b_ih = jax.random.uniform(keys[k], (4 * hidden_size,),
                                  jnp.float32, -bound, bound); k += 1
        b_hh = jax.random.uniform(keys[k], (4 * hidden_size,),
                                  jnp.float32, -bound, bound); k += 1
        layers.append({
            "w_ih_t": jnp.transpose(w_ih),                 # (in_dim, 4H)
            "w_hh_t": jnp.transpose(w_hh),                 # (H, 4H)
            "b": (b_ih + b_hh)[None, :],                   # (1, 4H)
        })
        in_dim = hidden_size
    params["lstm"] = layers
    return params


def encoder_forward(params, x_tokens):
    """x_tokens: (T, B) int32 -> (hidden, cell), each (num_layers=2, B, H)."""
    # Embedding lookup + dropout (eval-mode identity): plain JAX glue.
    emb = jnp.take(params["embedding"], x_tokens, axis=0)        # (T, B, E) f32
    l1, l2 = params["lstm"]                                      # kernel fuses exactly 2 layers
    H = l1["w_hh_t"].shape[0]

    # bf16 operands for the in-kernel MXU matmuls (f32 accumulation).
    emb_bf16 = emb.astype(jnp.bfloat16)
    wih1 = l1["w_ih_t"].astype(jnp.bfloat16)                     # (E, 4H)
    b1 = l1["b"]                                                 # (1, 4H)
    # Combined recurrent weight: [[Whh1^T, Wih2^T], [0, Whh2^T]] -> (2H, 8H).
    wc = jnp.concatenate([
        jnp.concatenate([l1["w_hh_t"], l2["w_ih_t"]], axis=1),
        jnp.concatenate([jnp.zeros_like(l2["w_hh_t"]), l2["w_hh_t"]], axis=1),
    ], axis=0).astype(jnp.bfloat16)
    b2 = l2["b"]                                                 # (1, 4H)

    return fused_encoder_lstm(emb_bf16, wih1, b1, wc, b2, H)


def encoder_forward_ref(params, x_tokens):
    """Pure-JAX f32 reference (lax.scan) for correctness checking."""
    emb = jnp.take(params["embedding"], x_tokens, axis=0)
    layer_in = emb
    hs, cs = [], []
    for lp in params["lstm"]:
        H = lp["w_hh_t"].shape[0]
        B = layer_in.shape[1]
        h0 = jnp.zeros((B, H), jnp.float32)
        c0 = jnp.zeros((B, H), jnp.float32)

        def step(carry, x_t, lp=lp, H=H):
            h, c = carry
            gates = x_t @ lp["w_ih_t"] + h @ lp["w_hh_t"] + lp["b"]
            i = jax.nn.sigmoid(gates[:, 0 * H:1 * H])
            f = jax.nn.sigmoid(gates[:, 1 * H:2 * H])
            g = jnp.tanh(gates[:, 2 * H:3 * H])
            o = jax.nn.sigmoid(gates[:, 3 * H:4 * H])
            c_new = f * c + i * g
            h_new = o * jnp.tanh(c_new)
            return (h_new, c_new), h_new

        (h_T, c_T), outs = lax.scan(step, (h0, c0), layer_in)
        hs.append(h_T)
        cs.append(c_T)
        layer_in = outs
    return jnp.stack(hs, axis=0), jnp.stack(cs, axis=0)


if __name__ == "__main__":
    # Small shapes consistent with the module's forward.
    input_size = 64        # vocab
    embedding_size = 128
    hidden_size = 128
    num_layers = 2
    seq_len = 8
    batch = 8

    key = jax.random.PRNGKey(0)
    k_param, k_tok = jax.random.split(key)
    params = init_encoder_params(k_param, input_size, embedding_size,
                                 hidden_size, num_layers)
    x_tokens = jax.random.randint(k_tok, (seq_len, batch), 0, input_size,
                                  dtype=jnp.int32)

    hidden, cell = encoder_forward(params, x_tokens)
    hidden, cell = jax.block_until_ready(hidden), jax.block_until_ready(cell)

    # Sanity check against pure-JAX f32 reference (bf16 matmul operands =>
    # slightly looser tolerance).
    hidden_ref, cell_ref = encoder_forward_ref(params, x_tokens)
    assert hidden.shape == (num_layers, batch, hidden_size)
    assert cell.shape == (num_layers, batch, hidden_size)
    assert jnp.allclose(hidden, hidden_ref, atol=3e-2, rtol=3e-2)
    assert jnp.allclose(cell, cell_ref, atol=3e-2, rtol=3e-2)

    print("KERNEL_OK")
</pallas_src>

<mosaic_0001>
module attributes {stable_mosaic.version = 11 : i64} {
  func.func @_encoder_lstm_kernel(%arg0: i32, %arg1: memref<8x8x128xbf16, #tpu.memory_space<vmem>>, %arg2: memref<128x512xbf16, #tpu.memory_space<vmem>>, %arg3: memref<1x512xf32, #tpu.memory_space<vmem>>, %arg4: memref<256x1024xbf16, #tpu.memory_space<vmem>>, %arg5: memref<1x512xf32, #tpu.memory_space<vmem>>, %arg6: memref<2x8x128xf32, #tpu.memory_space<vmem>>, %arg7: memref<2x8x128xf32, #tpu.memory_space<vmem>>, %arg8: memref<8x8x512xf32, #tpu.memory_space<vmem>>, %arg9: memref<8x128xf32, #tpu.memory_space<vmem>>, %arg10: memref<8x128xf32, #tpu.memory_space<vmem>>, %arg11: memref<8x128xf32, #tpu.memory_space<vmem>>, %arg12: memref<8x128xf32, #tpu.memory_space<vmem>>, %arg13: memref<8x512xf32, #tpu.memory_space<vmem>>) attributes {dimension_semantics = [#tpu.dimension_semantics<arbitrary>], iteration_bounds = array<i64: 1>, scalar_prefetch = 0 : i64, scratch_operands = 6 : i64, tpu.core_type = #tpu.core_type<tc>, window_params = [{transform_indices = @transform_0, window_bounds = array<i64: 8, 8, 128>}, {pipeline_mode = #tpu.pipeline_mode<synchronous>, transform_indices = @transform_1, window_bounds = array<i64: 128, 512>}, {pipeline_mode = #tpu.pipeline_mode<synchronous>, transform_indices = @transform_2, window_bounds = array<i64: 1, 512>}, {pipeline_mode = #tpu.pipeline_mode<synchronous>, transform_indices = @transform_3, window_bounds = array<i64: 256, 1024>}, {pipeline_mode = #tpu.pipeline_mode<synchronous>, transform_indices = @transform_4, window_bounds = array<i64: 1, 512>}, {pipeline_mode = #tpu.pipeline_mode<synchronous>, transform_indices = @transform_5, window_bounds = array<i64: 2, 8, 128>}, {pipeline_mode = #tpu.pipeline_mode<synchronous>, transform_indices = @transform_6, window_bounds = array<i64: 2, 8, 128>}]} {
    %c0_i32 = arith.constant 0 : i32
    %0 = arith.cmpi eq, %arg0, %c0_i32 : i32
    %1 = arith.extui %0 : i1 to i32
    %c0_i32_0 = arith.constant 0 : i32
    %2 = arith.cmpi ne, %1, %c0_i32_0 : i32
    scf.if %2 {
      %cst_137 = arith.constant 0.000000e+00 : f32
      %529 = vector.broadcast %cst_137 : f32 to vector<8x128xf32>
      %c0_138 = arith.constant 0 : index
      %c0_139 = arith.constant 0 : index
      %530 = vector.load %arg9[%c0_138, %c0_139] : memref<8x128xf32, #tpu.memory_space<vmem>>, vector<8x128xf32>
      tpu.vector_store %arg9[%c0_138, %c0_139], %529 {strides = array<i32>} : memref<8x128xf32, #tpu.memory_space<vmem>>, vector<8x128xf32>,
      %cst_140 = arith.constant 0.000000e+00 : f32
      %531 = vector.broadcast %cst_140 : f32 to vector<8x128xf32>
      %c0_141 = arith.constant 0 : index
      %c0_142 = arith.constant 0 : index
      %532 = vector.load %arg10[%c0_141, %c0_142] : memref<8x128xf32, #tpu.memory_space<vmem>>, vector<8x128xf32>
      tpu.vector_store %arg10[%c0_141, %c0_142], %531 {strides = array<i32>} : memref<8x128xf32, #tpu.memory_space<vmem>>, vector<8x128xf32>,
      %cst_143 = arith.constant 0.000000e+00 : f32
      %533 = vector.broadcast %cst_143 : f32 to vector<8x128xf32>
      %c0_144 = arith.constant 0 : index
      %c0_145 = arith.constant 0 : index
      %534 = vector.load %arg11[%c0_144, %c0_145] : memref<8x128xf32, #tpu.memory_space<vmem>>, vector<8x128xf32>
      tpu.vector_store %arg11[%c0_144, %c0_145], %533 {strides = array<i32>} : memref<8x128xf32, #tpu.memory_space<vmem>>, vector<8x128xf32>,
      %cst_146 = arith.constant 0.000000e+00 : f32
      %535 = vector.broadcast %cst_146 : f32 to vector<8x128xf32>
      %c0_147 = arith.constant 0 : index
      %c0_148 = arith.constant 0 : index
      %536 = vector.load %arg12[%c0_147, %c0_148] : memref<8x128xf32, #tpu.memory_space<vmem>>, vector<8x128xf32>
      tpu.vector_store %arg12[%c0_147, %c0_148], %535 {strides = array<i32>} : memref<8x128xf32, #tpu.memory_space<vmem>>, vector<8x128xf32>,
      %cst_149 = arith.constant 0.000000e+00 : f32
      %537 = vector.broadcast %cst_149 : f32 to vector<8x512xf32>
      %c0_150 = arith.constant 0 : index
      %c0_151 = arith.constant 0 : index
      %538 = vector.load %arg13[%c0_150, %c0_151] : memref<8x512xf32, #tpu.memory_space<vmem>>, vector<8x512xf32>
      tpu.vector_store %arg13[%c0_150, %c0_151], %537 {strides = array<i32>} : memref<8x512xf32, #tpu.memory_space<vmem>>, vector<8x512xf32>,
    } else {
    }
    %c0 = arith.constant 0 : index
    %c0_1 = arith.constant 0 : index
    %c0_2 = arith.constant 0 : index
    %3 = vector.load %arg1[%c0, %c0_1, %c0_2] : memref<8x8x128xbf16, #tpu.memory_space<vmem>>, vector<8x8x128xbf16>
    %4 = vector.shape_cast %3 : vector<8x8x128xbf16> to vector<64x128xbf16>
    %c0_3 = arith.constant 0 : index
    %c0_4 = arith.constant 0 : index
    %5 = vector.load %arg2[%c0_3, %c0_4] : memref<128x512xbf16, #tpu.memory_space<vmem>>, vector<128x512xbf16>
    %cst = arith.constant dense<0.000000e+00> : vector<64x512xf32>
    %6 = tpu.matmul %4, %5, %cst {dimension_numbers = #tpu.dot_dimension_numbers<[1], [0], [0], [1], [0, 0, 1, 1], [], []>} : vector<64x128xbf16>, vector<128x512xbf16>, vector<64x512xf32> -> vector<64x512xf32>
    %c0_5 = arith.constant 0 : index
    %c0_6 = arith.constant 0 : index
    %7 = vector.load %arg3[%c0_5, %c0_6] : memref<1x512xf32, #tpu.memory_space<vmem>>, vector<1x512xf32>
    %8 = vector.broadcast %7 : vector<1x512xf32> to vector<64x512xf32>
    %9 = arith.addf %6, %8 : vector<64x512xf32>
    %10 = vector.shape_cast %9 : vector<64x512xf32> to vector<8x8x512xf32>
    %c0_7 = arith.constant 0 : index
    %c0_8 = arith.constant 0 : index
    %c0_9 = arith.constant 0 : index
    %11 = vector.load %arg8[%c0_7, %c0_8, %c0_9] : memref<8x8x512xf32, #tpu.memory_space<vmem>>, vector<8x8x512xf32>
    tpu.vector_store %arg8[%c0_7, %c0_8, %c0_9], %10 {strides = array<i32>} : memref<8x8x512xf32, #tpu.memory_space<vmem>>, vector<8x8x512xf32>,
    %c0_10 = arith.constant 0 : index
    %c0_11 = arith.constant 0 : index
    %12 = vector.load %arg9[%c0_10, %c0_11] : memref<8x128xf32, #tpu.memory_space<vmem>>, vector<8x128xf32>
    %c0_12 = arith.constant 0 : index
    %c0_13 = arith.constant 0 : index
    %13 = vector.load %arg10[%c0_12, %c0_13] : memref<8x128xf32, #tpu.memory_space<vmem>>, vector<8x128xf32>
    %c0_14 = arith.constant 0 : index
    %c0_15 = arith.constant 0 : index
    %14 = vector.load %arg11[%c0_14, %c0_15] : memref<8x128xf32, #tpu.memory_space<vmem>>, vector<8x128xf32>
    %c0_16 = arith.constant 0 : index
    %c0_17 = arith.constant 0 : index
    %15 = vector.load %arg12[%c0_16, %c0_17] : memref<8x128xf32, #tpu.memory_space<vmem>>, vector<8x128xf32>
    %c0_18 = arith.constant 0 : index
    %c0_19 = arith.constant 0 : index
    %16 = vector.load %arg13[%c0_18, %c0_19] : memref<8x512xf32, #tpu.memory_space<vmem>>, vector<8x512xf32>
    %c0_i32_20 = arith.constant 0 : i32
    %17 = arith.index_cast %c0_i32_20 : i32 to index
    %c0_21 = arith.constant 0 : index
    %c0_22 = arith.constant 0 : index
    %18 = vector.load %arg8[%17, %c0_21, %c0_22] : memref<8x8x512xf32, #tpu.memory_space<vmem>>, vector<1x8x512xf32>
    %19 = vector.shape_cast %18 : vector<1x8x512xf32> to vector<8x512xf32>
    %20 = arith.addf %19, %16 : vector<8x512xf32>
    %21 = vector.extract_strided_slice %20 {offsets = [0, 0], sizes = [8, 128], strides = [1, 1]} : vector<8x512xf32> to vector<8x128xf32>
    %22 = arith.negf %21 : vector<8x128xf32>
    %23 = math.exp %22 : vector<8x128xf32>
    %cst_23 = arith.constant 1.000000e+00 : f32
    %24 = vector.broadcast %cst_23 : f32 to vector<8x128xf32>
    %25 = arith.addf %24, %23 : vector<8x128xf32>
    %26 = arith.divf %24, %25 : vector<8x128xf32>
    %27 = vector.extract_strided_slice %20 {offsets = [0, 128], sizes = [8, 128], strides = [1, 1]} : vector<8x512xf32> to vector<8x128xf32>
    %28 = arith.negf %27 : vector<8x128xf32>
    %29 = math.exp %28 : vector<8x128xf32>
    %cst_24 = arith.constant 1.000000e+00 : f32
    %30 = vector.broadcast %cst_24 : f32 to vector<8x128xf32>
    %31 = arith.addf %30, %29 : vector<8x128xf32>
    %32 = arith.divf %30, %31 : vector<8x128xf32>
    %33 = vector.extract_strided_slice %20 {offsets = [0, 256], sizes = [8, 128], strides = [1, 1]} : vector<8x512xf32> to vector<8x128xf32>
    %34 = math.tanh %33 : vector<8x128xf32>
    %35 = vector.extract_strided_slice %20 {offsets = [0, 384], sizes = [8, 128], strides = [1, 1]} : vector<8x512xf32> to vector<8x128xf32>
    %36 = arith.negf %35 : vector<8x128xf32>
    %37 = math.exp %36 : vector<8x128xf32>
    %cst_25 = arith.constant 1.000000e+00 : f32
    %38 = vector.broadcast %cst_25 : f32 to vector<8x128xf32>
    %39 = arith.addf %38, %37 : vector<8x128xf32>
    %40 = arith.divf %38, %39 : vector<8x128xf32>
    %41 = arith.mulf %32, %13 : vector<8x128xf32>
    %42 = arith.mulf %26, %34 : vector<8x128xf32>
    %43 = arith.addf %41, %42 : vector<8x128xf32>
    %44 = math.tanh %43 : vector<8x128xf32>
    %45 = arith.mulf %40, %44 : vector<8x128xf32>
    %46 = tpu.concatenate %45, %14 in 1 : vector<8x128xf32>, vector<8x128xf32> -> vector<8x256xf32>
    %47 = arith.truncf %46 : vector<8x256xf32> to vector<8x256xbf16>
    %c0_26 = arith.constant 0 : index
    %c0_27 = arith.constant 0 : index
    %48 = vector.load %arg4[%c0_26, %c0_27] : memref<256x1024xbf16, #tpu.memory_space<vmem>>, vector<256x1024xbf16>
    %cst_28 = arith.constant dense<0.000000e+00> : vector<8x1024xf32>
    %49 = tpu.matmul %47, %48, %cst_28 {dimension_numbers = #tpu.dot_dimension_numbers<[1], [0], [0], [1], [0, 0, 1, 1], [], []>} : vector<8x256xbf16>, vector<256x1024xbf16>, vector<8x1024xf32> -> vector<8x1024xf32>
    %50 = vector.extract_strided_slice %49 {offsets = [0, 0], sizes = [8, 512], strides = [1, 1]} : vector<8x1024xf32> to vector<8x512xf32>
    %51 = vector.extract_strided_slice %49 {offsets = [0, 512], sizes = [8, 512], strides = [1, 1]} : vector<8x1024xf32> to vector<8x512xf32>
    %c0_29 = arith.constant 0 : index
    %c0_30 = arith.constant 0 : index
    %52 = vector.load %arg5[%c0_29, %c0_30] : memref<1x512xf32, #tpu.memory_space<vmem>>, vector<1x512xf32>
    %53 = vector.broadcast %52 : vector<1x512xf32> to vector<8x512xf32>
    %54 = arith.addf %51, %53 : vector<8x512xf32>
    %55 = vector.extract_strided_slice %54 {offsets = [0, 0], sizes = [8, 128], strides = [1, 1]} : vector<8x512xf32> to vector<8x128xf32>
    %56 = arith.negf %55 : vector<8x128xf32>
    %57 = math.exp %56 : vector<8x128xf32>
    %cst_31 = arith.constant 1.000000e+00 : f32
    %58 = vector.broadcast %cst_31 : f32 to vector<8x128xf32>
    %59 = arith.addf %58, %57 : vector<8x128xf32>
    %60 = arith.divf %58, %59 : vector<8x128xf32>
    %61 = vector.extract_strided_slice %54 {offsets = [0, 128], sizes = [8, 128], strides = [1, 1]} : vector<8x512xf32> to vector<8x128xf32>
    %62 = arith.negf %61 : vector<8x128xf32>
    %63 = math.exp %62 : vector<8x128xf32>
    %cst_32 = arith.constant 1.000000e+00 : f32
    %64 = vector.broadcast %cst_32 : f32 to vector<8x128xf32>
    %65 = arith.addf %64, %63 : vector<8x128xf32>
    %66 = arith.divf %64, %65 : vector<8x128xf32>
    %67 = vector.extract_strided_slice %54 {offsets = [0, 256], sizes = [8, 128], strides = [1, 1]} : vector<8x512xf32> to vector<8x128xf32>
    %68 = math.tanh %67 : vector<8x128xf32>
    %69 = vector.extract_strided_slice %54 {offsets = [0, 384], sizes = [8, 128], strides = [1, 1]} : vector<8x512xf32> to vector<8x128xf32>
    %70 = arith.negf %69 : vector<8x128xf32>
    %71 = math.exp %70 : vector<8x128xf32>
    %cst_33 = arith.constant 1.000000e+00 : f32
    %72 = vector.broadcast %cst_33 : f32 to vector<8x128xf32>
    %73 = arith.addf %72, %71 : vector<8x128xf32>
    %74 = arith.divf %72, %73 : vector<8x128xf32>
    %75 = arith.mulf %66, %15 : vector<8x128xf32>
    %76 = arith.mulf %60, %68 : vector<8x128xf32>
    %77 = arith.addf %75, %76 : vector<8x128xf32>
    %78 = math.tanh %77 : vector<8x128xf32>
    %79 = arith.mulf %74, %78 : vector<8x128xf32>
    %c1_i32 = arith.constant 1 : i32
    %80 = arith.index_cast %c1_i32 : i32 to index
    %c0_34 = arith.constant 0 : index
    %c0_35 = arith.constant 0 : index
    %81 = vector.load %arg8[%80, %c0_34, %c0_35] : memref<8x8x512xf32, #tpu.memory_space<vmem>>, vector<1x8x512xf32>
    %82 = vector.shape_cast %81 : vector<1x8x512xf32> to vector<8x512xf32>
    %83 = arith.addf %82, %50 : vector<8x512xf32>
    %84 = vector.extract_strided_slice %83 {offsets = [0, 0], sizes = [8, 128], strides = [1, 1]} : vector<8x512xf32> to vector<8x128xf32>
    %85 = arith.negf %84 : vector<8x128xf32>
    %86 = math.exp %85 : vector<8x128xf32>
    %cst_36 = arith.constant 1.000000e+00 : f32
    %87 = vector.broadcast %cst_36 : f32 to vector<8x128xf32>
    %88 = arith.addf %87, %86 : vector<8x128xf32>
    %89 = arith.divf %87, %88 : vector<8x128xf32>
    %90 = vector.extract_strided_slice %83 {offsets = [0, 128], sizes = [8, 128], strides = [1, 1]} : vector<8x512xf32> to vector<8x128xf32>
    %91 = arith.negf %90 : vector<8x128xf32>
    %92 = math.exp %91 : vector<8x128xf32>
    %cst_37 = arith.constant 1.000000e+00 : f32
    %93 = vector.broadcast %cst_37 : f32 to vector<8x128xf32>
    %94 = arith.addf %93, %92 : vector<8x128xf32>
    %95 = arith.divf %93, %94 : vector<8x128xf32>
    %96 = vector.extract_strided_slice %83 {offsets = [0, 256], sizes = [8, 128], strides = [1, 1]} : vector<8x512xf32> to vector<8x128xf32>
    %97 = math.tanh %96 : vector<8x128xf32>
    %98 = vector.extract_strided_slice %83 {offsets = [0, 384], sizes = [8, 128], strides = [1, 1]} : vector<8x512xf32> to vector<8x128xf32>
    %99 = arith.negf %98 : vector<8x128xf32>
    %100 = math.exp %99 : vector<8x128xf32>
    %cst_38 = arith.constant 1.000000e+00 : f32
    %101 = vector.broadcast %cst_38 : f32 to vector<8x128xf32>
    %102 = arith.addf %101, %100 : vector<8x128xf32>
    %103 = arith.divf %101, %102 : vector<8x128xf32>
    %104 = arith.mulf %95, %43 : vector<8x128xf32>
    %105 = arith.mulf %89, %97 : vector<8x128xf32>
    %106 = arith.addf %104, %105 : vector<8x128xf32>
    %107 = math.tanh %106 : vector<8x128xf32>
    %108 = arith.mulf %103, %107 : vector<8x128xf32>
    %109 = tpu.concatenate %108, %79 in 1 : vector<8x128xf32>, vector<8x128xf32> -> vector<8x256xf32>
    %110 = arith.truncf %109 : vector<8x256xf32> to vector<8x256xbf16>
    %c0_39 = arith.constant 0 : index
    %c0_40 = arith.constant 0 : index
    %111 = vector.load %arg4[%c0_39, %c0_40] : memref<256x1024xbf16, #tpu.memory_space<vmem>>, vector<256x1024xbf16>
    %cst_41 = arith.constant dense<0.000000e+00> : vector<8x1024xf32>
    %112 = tpu.matmul %110, %111, %cst_41 {dimension_numbers = #tpu.dot_dimension_numbers<[1], [0], [0], [1], [0, 0, 1, 1], [], []>} : vector<8x256xbf16>, vector<256x1024xbf16>, vector<8x1024xf32> -> vector<8x1024xf32>
    %113 = vector.extract_strided_slice %112 {offsets = [0, 0], sizes = [8, 512], strides = [1, 1]} : vector<8x1024xf32> to vector<8x512xf32>
    %114 = vector.extract_strided_slice %112 {offsets = [0, 512], sizes = [8, 512], strides = [1, 1]} : vector<8x1024xf32> to vector<8x512xf32>
    %c0_42 = arith.constant 0 : index
    %c0_43 = arith.constant 0 : index
    %115 = vector.load %arg5[%c0_42, %c0_43] : memref<1x512xf32, #tpu.memory_space<vmem>>, vector<1x512xf32>
    %116 = vector.broadcast %115 : vector<1x512xf32> to vector<8x512xf32>
    %117 = arith.addf %114, %116 : vector<8x512xf32>
    %118 = vector.extract_strided_slice %117 {offsets = [0, 0], sizes = [8, 128], strides = [1, 1]} : vector<8x512xf32> to vector<8x128xf32>
    %119 = arith.negf %118 : vector<8x128xf32>
    %120 = math.exp %119 : vector<8x128xf32>
    %cst_44 = arith.constant 1.000000e+00 : f32
    %121 = vector.broadcast %cst_44 : f32 to vector<8x128xf32>
    %122 = arith.addf %121, %120 : vector<8x128xf32>
    %123 = arith.divf %121, %122 : vector<8x128xf32>
    %124 = vector.extract_strided_slice %117 {offsets = [0, 128], sizes = [8, 128], strides = [1, 1]} : vector<8x512xf32> to vector<8x128xf32>
    %125 = arith.negf %124 : vector<8x128xf32>
    %126 = math.exp %125 : vector<8x128xf32>
    %cst_45 = arith.constant 1.000000e+00 : f32
    %127 = vector.broadcast %cst_45 : f32 to vector<8x128xf32>
    %128 = arith.addf %127, %126 : vector<8x128xf32>
    %129 = arith.divf %127, %128 : vector<8x128xf32>
    %130 = vector.extract_strided_slice %117 {offsets = [0, 256], sizes = [8, 128], strides = [1, 1]} : vector<8x512xf32> to vector<8x128xf32>
    %131 = math.tanh %130 : vector<8x128xf32>
    %132 = vector.extract_strided_slice %117 {offsets = [0, 384], sizes = [8, 128], strides = [1, 1]} : vector<8x512xf32> to vector<8x128xf32>
    %133 = arith.negf %132 : vector<8x128xf32>
    %134 = math.exp %133 : vector<8x128xf32>
    %cst_46 = arith.constant 1.000000e+00 : f32
    %135 = vector.broadcast %cst_46 : f32 to vector<8x128xf32>
    %136 = arith.addf %135, %134 : vector<8x128xf32>
    %137 = arith.divf %135, %136 : vector<8x128xf32>
    %138 = arith.mulf %129, %77 : vector<8x128xf32>
    %139 = arith.mulf %123, %131 : vector<8x128xf32>
    %140 = arith.addf %138, %139 : vector<8x128xf32>
    %141 = math.tanh %140 : vector<8x128xf32>
    %142 = arith.mulf %137, %141 : vector<8x128xf32>
    %c2_i32 = arith.constant 2 : i32
    %143 = arith.index_cast %c2_i32 : i32 to index
    %c0_47 = arith.constant 0 : index
    %c0_48 = arith.constant 0 : index
    %144 = vector.load %arg8[%143, %c0_47, %c0_48] : memref<8x8x512xf32, #tpu.memory_space<vmem>>, vector<1x8x512xf32>
    %145 = vector.shape_cast %144 : vector<1x8x512xf32> to vector<8x512xf32>
    %146 = arith.addf %145, %113 : vector<8x512xf32>
    %147 = vector.extract_strided_slice %146 {offsets = [0, 0], sizes = [8, 128], strides = [1, 1]} : vector<8x512xf32> to vector<8x128xf32>
    %148 = arith.negf %147 : vector<8x128xf32>
    %149 = math.exp %148 : vector<8x128xf32>
    %cst_49 = arith.constant 1.000000e+00 : f32
    %150 = vector.broadcast %cst_49 : f32 to vector<8x128xf32>
    %151 = arith.addf %150, %149 : vector<8x128xf32>
    %152 = arith.divf %150, %151 : vector<8x128xf32>
    %153 = vector.extract_strided_slice %146 {offsets = [0, 128], sizes = [8, 128], strides = [1, 1]} : vector<8x512xf32> to vector<8x128xf32>
    %154 = arith.negf %153 : vector<8x128xf32>
    %155 = math.exp %154 : vector<8x128xf32>
    %cst_50 = arith.constant 1.000000e+00 : f32
    %156 = vector.broadcast %cst_50 : f32 to vector<8x128xf32>
    %157 = arith.addf %156, %155 : vector<8x128xf32>
    %158 = arith.divf %156, %157 : vector<8x128xf32>
    %159 = vector.extract_strided_slice %146 {offsets = [0, 256], sizes = [8, 128], strides = [1, 1]} : vector<8x512xf32> to vector<8x128xf32>
    %160 = math.tanh %159 : vector<8x128xf32>
    %161 = vector.extract_strided_slice %146 {offsets = [0, 384], sizes = [8, 128], strides = [1, 1]} : vector<8x512xf32> to vector<8x128xf32>
    %162 = arith.negf %161 : vector<8x128xf32>
    %163 = math.exp %162 : vector<8x128xf32>
    %cst_51 = arith.constant 1.000000e+00 : f32
    %164 = vector.broadcast %cst_51 : f32 to vector<8x128xf32>
    %165 = arith.addf %164, %163 : vector<8x128xf32>
    %166 = arith.divf %164, %165 : vector<8x128xf32>
    %167 = arith.mulf %158, %106 : vector<8x128xf32>
    %168 = arith.mulf %152, %160 : vector<8x128xf32>
    %169 = arith.addf %167, %168 : vector<8x128xf32>
    %170 = math.tanh %169 : vector<8x128xf32>
    %171 = arith.mulf %166, %170 : vector<8x128xf32>
    %172 = tpu.concatenate %171, %142 in 1 : vector<8x128xf32>, vector<8x128xf32> -> vector<8x256xf32>
    %173 = arith.truncf %172 : vector<8x256xf32> to vector<8x256xbf16>
    %c0_52 = arith.constant 0 : index
    %c0_53 = arith.constant 0 : index
    %174 = vector.load %arg4[%c0_52, %c0_53] : memref<256x1024xbf16, #tpu.memory_space<vmem>>, vector<256x1024xbf16>
    %cst_54 = arith.constant dense<0.000000e+00> : vector<8x1024xf32>
    %175 = tpu.matmul %173, %174, %cst_54 {dimension_numbers = #tpu.dot_dimension_numbers<[1], [0], [0], [1], [0, 0, 1, 1], [], []>} : vector<8x256xbf16>, vector<256x1024xbf16>, vector<8x1024xf32> -> vector<8x1024xf32>
    %176 = vector.extract_strided_slice %175 {offsets = [0, 0], sizes = [8, 512], strides = [1, 1]} : vector<8x1024xf32> to vector<8x512xf32>
    %177 = vector.extract_strided_slice %175 {offsets = [0, 512], sizes = [8, 512], strides = [1, 1]} : vector<8x1024xf32> to vector<8x512xf32>
    %c0_55 = arith.constant 0 : index
    %c0_56 = arith.constant 0 : index
    %178 = vector.load %arg5[%c0_55, %c0_56] : memref<1x512xf32, #tpu.memory_space<vmem>>, vector<1x512xf32>
    %179 = vector.broadcast %178 : vector<1x512xf32> to vector<8x512xf32>
    %180 = arith.addf %177, %179 : vector<8x512xf32>
    %181 = vector.extract_strided_slice %180 {offsets = [0, 0], sizes = [8, 128], strides = [1, 1]} : vector<8x512xf32> to vector<8x128xf32>
    %182 = arith.negf %181 : vector<8x128xf32>
    %183 = math.exp %182 : vector<8x128xf32>
    %cst_57 = arith.constant 1.000000e+00 : f32
    %184 = vector.broadcast %cst_57 : f32 to vector<8x128xf32>
    %185 = arith.addf %184, %183 : vector<8x128xf32>
    %186 = arith.divf %184, %185 : vector<8x128xf32>
    %187 = vector.extract_strided_slice %180 {offsets = [0, 128], sizes = [8, 128], strides = [1, 1]} : vector<8x512xf32> to vector<8x128xf32>
    %188 = arith.negf %187 : vector<8x128xf32>
    %189 = math.exp %188 : vector<8x128xf32>
    %cst_58 = arith.constant 1.000000e+00 : f32
    %190 = vector.broadcast %cst_58 : f32 to vector<8x128xf32>
    %191 = arith.addf %190, %189 : vector<8x128xf32>
    %192 = arith.divf %190, %191 : vector<8x128xf32>
    %193 = vector.extract_strided_slice %180 {offsets = [0, 256], sizes = [8, 128], strides = [1, 1]} : vector<8x512xf32> to vector<8x128xf32>
    %194 = math.tanh %193 : vector<8x128xf32>
    %195 = vector.extract_strided_slice %180 {offsets = [0, 384], sizes = [8, 128], strides = [1, 1]} : vector<8x512xf32> to vector<8x128xf32>
    %196 = arith.negf %195 : vector<8x128xf32>
    %197 = math.exp %196 : vector<8x128xf32>
    %cst_59 = arith.constant 1.000000e+00 : f32
    %198 = vector.broadcast %cst_59 : f32 to vector<8x128xf32>
    %199 = arith.addf %198, %197 : vector<8x128xf32>
    %200 = arith.divf %198, %199 : vector<8x128xf32>
    %201 = arith.mulf %192, %140 : vector<8x128xf32>
    %202 = arith.mulf %186, %194 : vector<8x128xf32>
    %203 = arith.addf %201, %202 : vector<8x128xf32>
    %204 = math.tanh %203 : vector<8x128xf32>
    %205 = arith.mulf %200, %204 : vector<8x128xf32>
    %c3_i32 = arith.constant 3 : i32
    %206 = arith.index_cast %c3_i32 : i32 to index
    %c0_60 = arith.constant 0 : index
    %c0_61 = arith.constant 0 : index
    %207 = vector.load %arg8[%206, %c0_60, %c0_61] : memref<8x8x512xf32, #tpu.memory_space<vmem>>, vector<1x8x512xf32>
    %208 = vector.shape_cast %207 : vector<1x8x512xf32> to vector<8x512xf32>
    %209 = arith.addf %208, %176 : vector<8x512xf32>
    %210 = vector.extract_strided_slice %209 {offsets = [0, 0], sizes = [8, 128], strides = [1, 1]} : vector<8x512xf32> to vector<8x128xf32>
    %211 = arith.negf %210 : vector<8x128xf32>
    %212 = math.exp %211 : vector<8x128xf32>
    %cst_62 = arith.constant 1.000000e+00 : f32
    %213 = vector.broadcast %cst_62 : f32 to vector<8x128xf32>
    %214 = arith.addf %213, %212 : vector<8x128xf32>
    %215 = arith.divf %213, %214 : vector<8x128xf32>
    %216 = vector.extract_strided_slice %209 {offsets = [0, 128], sizes = [8, 128], strides = [1, 1]} : vector<8x512xf32> to vector<8x128xf32>
    %217 = arith.negf %216 : vector<8x128xf32>
    %218 = math.exp %217 : vector<8x128xf32>
    %cst_63 = arith.constant 1.000000e+00 : f32
    %219 = vector.broadcast %cst_63 : f32 to vector<8x128xf32>
    %220 = arith.addf %219, %218 : vector<8x128xf32>
    %221 = arith.divf %219, %220 : vector<8x128xf32>
    %222 = vector.extract_strided_slice %209 {offsets = [0, 256], sizes = [8, 128], strides = [1, 1]} : vector<8x512xf32> to vector<8x128xf32>
    %223 = math.tanh %222 : vector<8x128xf32>
    %224 = vector.extract_strided_slice %209 {offsets = [0, 384], sizes = [8, 128], strides = [1, 1]} : vector<8x512xf32> to vector<8x128xf32>
    %225 = arith.negf %224 : vector<8x128xf32>
    %226 = math.exp %225 : vector<8x128xf32>
    %cst_64 = arith.constant 1.000000e+00 : f32
    %227 = vector.broadcast %cst_64 : f32 to vector<8x128xf32>
    %228 = arith.addf %227, %226 : vector<8x128xf32>
    %229 = arith.divf %227, %228 : vector<8x128xf32>
    %230 = arith.mulf %221, %169 : vector<8x128xf32>
    %231 = arith.mulf %215, %223 : vector<8x128xf32>
    %232 = arith.addf %230, %231 : vector<8x128xf32>
    %233 = math.tanh %232 : vector<8x128xf32>
    %234 = arith.mulf %229, %233 : vector<8x128xf32>
    %235 = tpu.concatenate %234, %205 in 1 : vector<8x128xf32>, vector<8x128xf32> -> vector<8x256xf32>
    %236 = arith.truncf %235 : vector<8x256xf32> to vector<8x256xbf16>
    %c0_65 = arith.constant 0 : index
    %c0_66 = arith.constant 0 : index
    %237 = vector.load %arg4[%c0_65, %c0_66] : memref<256x1024xbf16, #tpu.memory_space<vmem>>, vector<256x1024xbf16>
    %cst_67 = arith.constant dense<0.000000e+00> : vector<8x1024xf32>
    %238 = tpu.matmul %236, %237, %cst_67 {dimension_numbers = #tpu.dot_dimension_numbers<[1], [0], [0], [1], [0, 0, 1, 1], [], []>} : vector<8x256xbf16>, vector<256x1024xbf16>, vector<8x1024xf32> -> vector<8x1024xf32>
    %239 = vector.extract_strided_slice %238 {offsets = [0, 0], sizes = [8, 512], strides = [1, 1]} : vector<8x1024xf32> to vector<8x512xf32>
    %240 = vector.extract_strided_slice %238 {offsets = [0, 512], sizes = [8, 512], strides = [1, 1]} : vector<8x1024xf32> to vector<8x512xf32>
    %c0_68 = arith.constant 0 : index
    %c0_69 = arith.constant 0 : index
    %241 = vector.load %arg5[%c0_68, %c0_69] : memref<1x512xf32, #tpu.memory_space<vmem>>, vector<1x512xf32>
    %242 = vector.broadcast %241 : vector<1x512xf32> to vector<8x512xf32>
    %243 = arith.addf %240, %242 : vector<8x512xf32>
    %244 = vector.extract_strided_slice %243 {offsets = [0, 0], sizes = [8, 128], strides = [1, 1]} : vector<8x512xf32> to vector<8x128xf32>
    %245 = arith.negf %244 : vector<8x128xf32>
    %246 = math.exp %245 : vector<8x128xf32>
    %cst_70 = arith.constant 1.000000e+00 : f32
    %247 = vector.broadcast %cst_70 : f32 to vector<8x128xf32>
    %248 = arith.addf %247, %246 : vector<8x128xf32>
    %249 = arith.divf %247, %248 : vector<8x128xf32>
    %250 = vector.extract_strided_slice %243 {offsets = [0, 128], sizes = [8, 128], strides = [1, 1]} : vector<8x512xf32> to vector<8x128xf32>
    %251 = arith.negf %250 : vector<8x128xf32>
    %252 = math.exp %251 : vector<8x128xf32>
    %cst_71 = arith.constant 1.000000e+00 : f32
    %253 = vector.broadcast %cst_71 : f32 to vector<8x128xf32>
    %254 = arith.addf %253, %252 : vector<8x128xf32>
    %255 = arith.divf %253, %254 : vector<8x128xf32>
    %256 = vector.extract_strided_slice %243 {offsets = [0, 256], sizes = [8, 128], strides = [1, 1]} : vector<8x512xf32> to vector<8x128xf32>
    %257 = math.tanh %256 : vector<8x128xf32>
    %258 = vector.extract_strided_slice %243 {offsets = [0, 384], sizes = [8, 128], strides = [1, 1]} : vector<8x512xf32> to vector<8x128xf32>
    %259 = arith.negf %258 : vector<8x128xf32>
    %260 = math.exp %259 : vector<8x128xf32>
    %cst_72 = arith.constant 1.000000e+00 : f32
    %261 = vector.broadcast %cst_72 : f32 to vector<8x128xf32>
    %262 = arith.addf %261, %260 : vector<8x128xf32>
    %263 = arith.divf %261, %262 : vector<8x128xf32>
    %264 = arith.mulf %255, %203 : vector<8x128xf32>
    %265 = arith.mulf %249, %257 : vector<8x128xf32>
    %266 = arith.addf %264, %265 : vector<8x128xf32>
    %267 = math.tanh %266 : vector<8x128xf32>
    %268 = arith.mulf %263, %267 : vector<8x128xf32>
    %c4_i32 = arith.constant 4 : i32
    %269 = arith.index_cast %c4_i32 : i32 to index
    %c0_73 = arith.constant 0 : index
    %c0_74 = arith.constant 0 : index
    %270 = vector.load %arg8[%269, %c0_73, %c0_74] : memref<8x8x512xf32, #tpu.memory_space<vmem>>, vector<1x8x512xf32>
    %271 = vector.shape_cast %270 : vector<1x8x512xf32> to vector<8x512xf32>
    %272 = arith.addf %271, %239 : vector<8x512xf32>
    %273 = vector.extract_strided_slice %272 {offsets = [0, 0], sizes = [8, 128], strides = [1, 1]} : vector<8x512xf32> to vector<8x128xf32>
    %274 = arith.negf %273 : vector<8x128xf32>
    %275 = math.exp %274 : vector<8x128xf32>
    %cst_75 = arith.constant 1.000000e+00 : f32
    %276 = vector.broadcast %cst_75 : f32 to vector<8x128xf32>
    %277 = arith.addf %276, %275 : vector<8x128xf32>
    %278 = arith.divf %276, %277 : vector<8x128xf32>
    %279 = vector.extract_strided_slice %272 {offsets = [0, 128], sizes = [8, 128], strides = [1, 1]} : vector<8x512xf32> to vector<8x128xf32>
    %280 = arith.negf %279 : vector<8x128xf32>
    %281 = math.exp %280 : vector<8x128xf32>
    %cst_76 = arith.constant 1.000000e+00 : f32
    %282 = vector.broadcast %cst_76 : f32 to vector<8x128xf32>
    %283 = arith.addf %282, %281 : vector<8x128xf32>
    %284 = arith.divf %282, %283 : vector<8x128xf32>
    %285 = vector.extract_strided_slice %272 {offsets = [0, 256], sizes = [8, 128], strides = [1, 1]} : vector<8x512xf32> to vector<8x128xf32>
    %286 = math.tanh %285 : vector<8x128xf32>
    %287 = vector.extract_strided_slice %272 {offsets = [0, 384], sizes = [8, 128], strides = [1, 1]} : vector<8x512xf32> to vector<8x128xf32>
    %288 = arith.negf %287 : vector<8x128xf32>
    %289 = math.exp %288 : vector<8x128xf32>
    %cst_77 = arith.constant 1.000000e+00 : f32
    %290 = vector.broadcast %cst_77 : f32 to vector<8x128xf32>
    %291 = arith.addf %290, %289 : vector<8x128xf32>
    %292 = arith.divf %290, %291 : vector<8x128xf32>
    %293 = arith.mulf %284, %232 : vector<8x128xf32>
    %294 = arith.mulf %278, %286 : vector<8x128xf32>
    %295 = arith.addf %293, %294 : vector<8x128xf32>
    %296 = math.tanh %295 : vector<8x128xf32>
    %297 = arith.mulf %292, %296 : vector<8x128xf32>
    %298 = tpu.concatenate %297, %268 in 1 : vector<8x128xf32>, vector<8x128xf32> -> vector<8x256xf32>
    %299 = arith.truncf %298 : vector<8x256xf32> to vector<8x256xbf16>
    %c0_78 = arith.constant 0 : index
    %c0_79 = arith.constant 0 : index
    %300 = vector.load %arg4[%c0_78, %c0_79] : memref<256x1024xbf16, #tpu.memory_space<vmem>>, vector<256x1024xbf16>
    %cst_80 = arith.constant dense<0.000000e+00> : vector<8x1024xf32>
    %301 = tpu.matmul %299, %300, %cst_80 {dimension_numbers = #tpu.dot_dimension_numbers<[1], [0], [0], [1], [0, 0, 1, 1], [], []>} : vector<8x256xbf16>, vector<256x1024xbf16>, vector<8x1024xf32> -> vector<8x1024xf32>
    %302 = vector.extract_strided_slice %301 {offsets = [0, 0], sizes = [8, 512], strides = [1, 1]} : vector<8x1024xf32> to vector<8x512xf32>
    %303 = vector.extract_strided_slice %301 {offsets = [0, 512], sizes = [8, 512], strides = [1, 1]} : vector<8x1024xf32> to vector<8x512xf32>
    %c0_81 = arith.constant 0 : index
    %c0_82 = arith.constant 0 : index
    %304 = vector.load %arg5[%c0_81, %c0_82] : memref<1x512xf32, #tpu.memory_space<vmem>>, vector<1x512xf32>
    %305 = vector.broadcast %304 : vector<1x512xf32> to vector<8x512xf32>
    %306 = arith.addf %303, %305 : vector<8x512xf32>
    %307 = vector.extract_strided_slice %306 {offsets = [0, 0], sizes = [8, 128], strides = [1, 1]} : vector<8x512xf32> to vector<8x128xf32>
    %308 = arith.negf %307 : vector<8x128xf32>
    %309 = math.exp %308 : vector<8x128xf32>
    %cst_83 = arith.constant 1.000000e+00 : f32
    %310 = vector.broadcast %cst_83 : f32 to vector<8x128xf32>
    %311 = arith.addf %310, %309 : vector<8x128xf32>
    %312 = arith.divf %310, %311 : vector<8x128xf32>
    %313 = vector.extract_strided_slice %306 {offsets = [0, 128], sizes = [8, 128], strides = [1, 1]} : vector<8x512xf32> to vector<8x128xf32>
    %314 = arith.negf %313 : vector<8x128xf32>
    %315 = math.exp %314 : vector<8x128xf32>
    %cst_84 = arith.constant 1.000000e+00 : f32
    %316 = vector.broadcast %cst_84 : f32 to vector<8x128xf32>
    %317 = arith.addf %316, %315 : vector<8x128xf32>
    %318 = arith.divf %316, %317 : vector<8x128xf32>
    %319 = vector.extract_strided_slice %306 {offsets = [0, 256], sizes = [8, 128], strides = [1, 1]} : vector<8x512xf32> to vector<8x128xf32>
    %320 = math.tanh %319 : vector<8x128xf32>
    %321 = vector.extract_strided_slice %306 {offsets = [0, 384], sizes = [8, 128], strides = [1, 1]} : vector<8x512xf32> to vector<8x128xf32>
    %322 = arith.negf %321 : vector<8x128xf32>
    %323 = math.exp %322 : vector<8x128xf32>
    %cst_85 = arith.constant 1.000000e+00 : f32
    %324 = vector.broadcast %cst_85 : f32 to vector<8x128xf32>
    %325 = arith.addf %324, %323 : vector<8x128xf32>
    %326 = arith.divf %324, %325 : vector<8x128xf32>
    %327 = arith.mulf %318, %266 : vector<8x128xf32>
    %328 = arith.mulf %312, %320 : vector<8x128xf32>
    %329 = arith.addf %327, %328 : vector<8x128xf32>
    %330 = math.tanh %329 : vector<8x128xf32>
    %331 = arith.mulf %326, %330 : vector<8x128xf32>
    %c5_i32 = arith.constant 5 : i32
    %332 = arith.index_cast %c5_i32 : i32 to index
    %c0_86 = arith.constant 0 : index
    %c0_87 = arith.constant 0 : index
    %333 = vector.load %arg8[%332, %c0_86, %c0_87] : memref<8x8x512xf32, #tpu.memory_space<vmem>>, vector<1x8x512xf32>
    %334 = vector.shape_cast %333 : vector<1x8x512xf32> to vector<8x512xf32>
    %335 = arith.addf %334, %302 : vector<8x512xf32>
    %336 = vector.extract_strided_slice %335 {offsets = [0, 0], sizes = [8, 128], strides = [1, 1]} : vector<8x512xf32> to vector<8x128xf32>
    %337 = arith.negf %336 : vector<8x128xf32>
    %338 = math.exp %337 : vector<8x128xf32>
    %cst_88 = arith.constant 1.000000e+00 : f32
    %339 = vector.broadcast %cst_88 : f32 to vector<8x128xf32>
    %340 = arith.addf %339, %338 : vector<8x128xf32>
    %341 = arith.divf %339, %340 : vector<8x128xf32>
    %342 = vector.extract_strided_slice %335 {offsets = [0, 128], sizes = [8, 128], strides = [1, 1]} : vector<8x512xf32> to vector<8x128xf32>
    %343 = arith.negf %342 : vector<8x128xf32>
    %344 = math.exp %343 : vector<8x128xf32>
    %cst_89 = arith.constant 1.000000e+00 : f32
    %345 = vector.broadcast %cst_89 : f32 to vector<8x128xf32>
    %346 = arith.addf %345, %344 : vector<8x128xf32>
    %347 = arith.divf %345, %346 : vector<8x128xf32>
    %348 = vector.extract_strided_slice %335 {offsets = [0, 256], sizes = [8, 128], strides = [1, 1]} : vector<8x512xf32> to vector<8x128xf32>
    %349 = math.tanh %348 : vector<8x128xf32>
    %350 = vector.extract_strided_slice %335 {offsets = [0, 384], sizes = [8, 128], strides = [1, 1]} : vector<8x512xf32> to vector<8x128xf32>
    %351 = arith.negf %350 : vector<8x128xf32>
    %352 = math.exp %351 : vector<8x128xf32>
    %cst_90 = arith.constant 1.000000e+00 : f32
    %353 = vector.broadcast %cst_90 : f32 to vector<8x128xf32>
    %354 = arith.addf %353, %352 : vector<8x128xf32>
    %355 = arith.divf %353, %354 : vector<8x128xf32>
    %356 = arith.mulf %347, %295 : vector<8x128xf32>
    %357 = arith.mulf %341, %349 : vector<8x128xf32>
    %358 = arith.addf %356, %357 : vector<8x128xf32>
    %359 = math.tanh %358 : vector<8x128xf32>
    %360 = arith.mulf %355, %359 : vector<8x128xf32>
    %361 = tpu.concatenate %360, %331 in 1 : vector<8x128xf32>, vector<8x128xf32> -> vector<8x256xf32>
    %362 = arith.truncf %361 : vector<8x256xf32> to vector<8x256xbf16>
    %c0_91 = arith.constant 0 : index
    %c0_92 = arith.constant 0 : index
    %363 = vector.load %arg4[%c0_91, %c0_92] : memref<256x1024xbf16, #tpu.memory_space<vmem>>, vector<256x1024xbf16>
    %cst_93 = arith.constant dense<0.000000e+00> : vector<8x1024xf32>
    %364 = tpu.matmul %362, %363, %cst_93 {dimension_numbers = #tpu.dot_dimension_numbers<[1], [0], [0], [1], [0, 0, 1, 1], [], []>} : vector<8x256xbf16>, vector<256x1024xbf16>, vector<8x1024xf32> -> vector<8x1024xf32>
    %365 = vector.extract_strided_slice %364 {offsets = [0, 0], sizes = [8, 512], strides = [1, 1]} : vector<8x1024xf32> to vector<8x512xf32>
    %366 = vector.extract_strided_slice %364 {offsets = [0, 512], sizes = [8, 512], strides = [1, 1]} : vector<8x1024xf32> to vector<8x512xf32>
    %c0_94 = arith.constant 0 : index
    %c0_95 = arith.constant 0 : index
    %367 = vector.load %arg5[%c0_94, %c0_95] : memref<1x512xf32, #tpu.memory_space<vmem>>, vector<1x512xf32>
    %368 = vector.broadcast %367 : vector<1x512xf32> to vector<8x512xf32>
    %369 = arith.addf %366, %368 : vector<8x512xf32>
    %370 = vector.extract_strided_slice %369 {offsets = [0, 0], sizes = [8, 128], strides = [1, 1]} : vector<8x512xf32> to vector<8x128xf32>
    %371 = arith.negf %370 : vector<8x128xf32>
    %372 = math.exp %371 : vector<8x128xf32>
    %cst_96 = arith.constant 1.000000e+00 : f32
    %373 = vector.broadcast %cst_96 : f32 to vector<8x128xf32>
    %374 = arith.addf %373, %372 : vector<8x128xf32>
    %375 = arith.divf %373, %374 : vector<8x128xf32>
    %376 = vector.extract_strided_slice %369 {offsets = [0, 128], sizes = [8, 128], strides = [1, 1]} : vector<8x512xf32> to vector<8x128xf32>
    %377 = arith.negf %376 : vector<8x128xf32>
    %378 = math.exp %377 : vector<8x128xf32>
    %cst_97 = arith.constant 1.000000e+00 : f32
    %379 = vector.broadcast %cst_97 : f32 to vector<8x128xf32>
    %380 = arith.addf %379, %378 : vector<8x128xf32>
    %381 = arith.divf %379, %380 : vector<8x128xf32>
    %382 = vector.extract_strided_slice %369 {offsets = [0, 256], sizes = [8, 128], strides = [1, 1]} : vector<8x512xf32> to vector<8x128xf32>
    %383 = math.tanh %382 : vector<8x128xf32>
    %384 = vector.extract_strided_slice %369 {offsets = [0, 384], sizes = [8, 128], strides = [1, 1]} : vector<8x512xf32> to vector<8x128xf32>
    %385 = arith.negf %384 : vector<8x128xf32>
    %386 = math.exp %385 : vector<8x128xf32>
    %cst_98 = arith.constant 1.000000e+00 : f32
    %387 = vector.broadcast %cst_98 : f32 to vector<8x128xf32>
    %388 = arith.addf %387, %386 : vector<8x128xf32>
    %389 = arith.divf %387, %388 : vector<8x128xf32>
    %390 = arith.mulf %381, %329 : vector<8x128xf32>
    %391 = arith.mulf %375, %383 : vector<8x128xf32>
    %392 = arith.addf %390, %391 : vector<8x128xf32>
    %393 = math.tanh %392 : vector<8x128xf32>
    %394 = arith.mulf %389, %393 : vector<8x128xf32>
    %c6_i32 = arith.constant 6 : i32
    %395 = arith.index_cast %c6_i32 : i32 to index
    %c0_99 = arith.constant 0 : index
    %c0_100 = arith.constant 0 : index
    %396 = vector.load %arg8[%395, %c0_99, %c0_100] : memref<8x8x512xf32, #tpu.memory_space<vmem>>, vector<1x8x512xf32>
    %397 = vector.shape_cast %396 : vector<1x8x512xf32> to vector<8x512xf32>
    %398 = arith.addf %397, %365 : vector<8x512xf32>
    %399 = vector.extract_strided_slice %398 {offsets = [0, 0], sizes = [8, 128], strides = [1, 1]} : vector<8x512xf32> to vector<8x128xf32>
    %400 = arith.negf %399 : vector<8x128xf32>
    %401 = math.exp %400 : vector<8x128xf32>
    %cst_101 = arith.constant 1.000000e+00 : f32
    %402 = vector.broadcast %cst_101 : f32 to vector<8x128xf32>
    %403 = arith.addf %402, %401 : vector<8x128xf32>
    %404 = arith.divf %402, %403 : vector<8x128xf32>
    %405 = vector.extract_strided_slice %398 {offsets = [0, 128], sizes = [8, 128], strides = [1, 1]} : vector<8x512xf32> to vector<8x128xf32>
    %406 = arith.negf %405 : vector<8x128xf32>
    %407 = math.exp %406 : vector<8x128xf32>
    %cst_102 = arith.constant 1.000000e+00 : f32
    %408 = vector.broadcast %cst_102 : f32 to vector<8x128xf32>
    %409 = arith.addf %408, %407 : vector<8x128xf32>
    %410 = arith.divf %408, %409 : vector<8x128xf32>
    %411 = vector.extract_strided_slice %398 {offsets = [0, 256], sizes = [8, 128], strides = [1, 1]} : vector<8x512xf32> to vector<8x128xf32>
    %412 = math.tanh %411 : vector<8x128xf32>
    %413 = vector.extract_strided_slice %398 {offsets = [0, 384], sizes = [8, 128], strides = [1, 1]} : vector<8x512xf32> to vector<8x128xf32>
    %414 = arith.negf %413 : vector<8x128xf32>
    %415 = math.exp %414 : vector<8x128xf32>
    %cst_103 = arith.constant 1.000000e+00 : f32
    %416 = vector.broadcast %cst_103 : f32 to vector<8x128xf32>
    %417 = arith.addf %416, %415 : vector<8x128xf32>
    %418 = arith.divf %416, %417 : vector<8x128xf32>
    %419 = arith.mulf %410, %358 : vector<8x128xf32>
    %420 = arith.mulf %404, %412 : vector<8x128xf32>
    %421 = arith.addf %419, %420 : vector<8x128xf32>
    %422 = math.tanh %421 : vector<8x128xf32>
    %423 = arith.mulf %418, %422 : vector<8x128xf32>
    %424 = tpu.concatenate %423, %394 in 1 : vector<8x128xf32>, vector<8x128xf32> -> vector<8x256xf32>
    %425 = arith.truncf %424 : vector<8x256xf32> to vector<8x256xbf16>
    %c0_104 = arith.constant 0 : index
    %c0_105 = arith.constant 0 : index
    %426 = vector.load %arg4[%c0_104, %c0_105] : memref<256x1024xbf16, #tpu.memory_space<vmem>>, vector<256x1024xbf16>
    %cst_106 = arith.constant dense<0.000000e+00> : vector<8x1024xf32>
    %427 = tpu.matmul %425, %426, %cst_106 {dimension_numbers = #tpu.dot_dimension_numbers<[1], [0], [0], [1], [0, 0, 1, 1], [], []>} : vector<8x256xbf16>, vector<256x1024xbf16>, vector<8x1024xf32> -> vector<8x1024xf32>
    %428 = vector.extract_strided_slice %427 {offsets = [0, 0], sizes = [8, 512], strides = [1, 1]} : vector<8x1024xf32> to vector<8x512xf32>
    %429 = vector.extract_strided_slice %427 {offsets = [0, 512], sizes = [8, 512], strides = [1, 1]} : vector<8x1024xf32> to vector<8x512xf32>
    %c0_107 = arith.constant 0 : index
    %c0_108 = arith.constant 0 : index
    %430 = vector.load %arg5[%c0_107, %c0_108] : memref<1x512xf32, #tpu.memory_space<vmem>>, vector<1x512xf32>
    %431 = vector.broadcast %430 : vector<1x512xf32> to vector<8x512xf32>
    %432 = arith.addf %429, %431 : vector<8x512xf32>
    %433 = vector.extract_strided_slice %432 {offsets = [0, 0], sizes = [8, 128], strides = [1, 1]} : vector<8x512xf32> to vector<8x128xf32>
    %434 = arith.negf %433 : vector<8x128xf32>
    %435 = math.exp %434 : vector<8x128xf32>
    %cst_109 = arith.constant 1.000000e+00 : f32
    %436 = vector.broadcast %cst_109 : f32 to vector<8x128xf32>
    %437 = arith.addf %436, %435 : vector<8x128xf32>
    %438 = arith.divf %436, %437 : vector<8x128xf32>
    %439 = vector.extract_strided_slice %432 {offsets = [0, 128], sizes = [8, 128], strides = [1, 1]} : vector<8x512xf32> to vector<8x128xf32>
    %440 = arith.negf %439 : vector<8x128xf32>
    %441 = math.exp %440 : vector<8x128xf32>
    %cst_110 = arith.constant 1.000000e+00 : f32
    %442 = vector.broadcast %cst_110 : f32 to vector<8x128xf32>
    %443 = arith.addf %442, %441 : vector<8x128xf32>
    %444 = arith.divf %442, %443 : vector<8x128xf32>
    %445 = vector.extract_strided_slice %432 {offsets = [0, 256], sizes = [8, 128], strides = [1, 1]} : vector<8x512xf32> to vector<8x128xf32>
    %446 = math.tanh %445 : vector<8x128xf32>
    %447 = vector.extract_strided_slice %432 {offsets = [0, 384], sizes = [8, 128], strides = [1, 1]} : vector<8x512xf32> to vector<8x128xf32>
    %448 = arith.negf %447 : vector<8x128xf32>
    %449 = math.exp %448 : vector<8x128xf32>
    %cst_111 = arith.constant 1.000000e+00 : f32
    %450 = vector.broadcast %cst_111 : f32 to vector<8x128xf32>
    %451 = arith.addf %450, %449 : vector<8x128xf32>
    %452 = arith.divf %450, %451 : vector<8x128xf32>
    %453 = arith.mulf %444, %392 : vector<8x128xf32>
    %454 = arith.mulf %438, %446 : vector<8x128xf32>
    %455 = arith.addf %453, %454 : vector<8x128xf32>
    %456 = math.tanh %455 : vector<8x128xf32>
    %457 = arith.mulf %452, %456 : vector<8x128xf32>
    %c7_i32 = arith.constant 7 : i32
    %458 = arith.index_cast %c7_i32 : i32 to index
    %c0_112 = arith.constant 0 : index
    %c0_113 = arith.constant 0 : index
    %459 = vector.load %arg8[%458, %c0_112, %c0_113] : memref<8x8x512xf32, #tpu.memory_space<vmem>>, vector<1x8x512xf32>
    %460 = vector.shape_cast %459 : vector<1x8x512xf32> to vector<8x512xf32>
    %461 = arith.addf %460, %428 : vector<8x512xf32>
    %462 = vector.extract_strided_slice %461 {offsets = [0, 0], sizes = [8, 128], strides = [1, 1]} : vector<8x512xf32> to vector<8x128xf32>
    %463 = arith.negf %462 : vector<8x128xf32>
    %464 = math.exp %463 : vector<8x128xf32>
    %cst_114 = arith.constant 1.000000e+00 : f32
    %465 = vector.broadcast %cst_114 : f32 to vector<8x128xf32>
    %466 = arith.addf %465, %464 : vector<8x128xf32>
    %467 = arith.divf %465, %466 : vector<8x128xf32>
    %468 = vector.extract_strided_slice %461 {offsets = [0, 128], sizes = [8, 128], strides = [1, 1]} : vector<8x512xf32> to vector<8x128xf32>
    %469 = arith.negf %468 : vector<8x128xf32>
    %470 = math.exp %469 : vector<8x128xf32>
    %cst_115 = arith.constant 1.000000e+00 : f32
    %471 = vector.broadcast %cst_115 : f32 to vector<8x128xf32>
    %472 = arith.addf %471, %470 : vector<8x128xf32>
    %473 = arith.divf %471, %472 : vector<8x128xf32>
    %474 = vector.extract_strided_slice %461 {offsets = [0, 256], sizes = [8, 128], strides = [1, 1]} : vector<8x512xf32> to vector<8x128xf32>
    %475 = math.tanh %474 : vector<8x128xf32>
    %476 = vector.extract_strided_slice %461 {offsets = [0, 384], sizes = [8, 128], strides = [1, 1]} : vector<8x512xf32> to vector<8x128xf32>
    %477 = arith.negf %476 : vector<8x128xf32>
    %478 = math.exp %477 : vector<8x128xf32>
    %cst_116 = arith.constant 1.000000e+00 : f32
    %479 = vector.broadcast %cst_116 : f32 to vector<8x128xf32>
    %480 = arith.addf %479, %478 : vector<8x128xf32>
    %481 = arith.divf %479, %480 : vector<8x128xf32>
    %482 = arith.mulf %473, %421 : vector<8x128xf32>
    %483 = arith.mulf %467, %475 : vector<8x128xf32>
    %484 = arith.addf %482, %483 : vector<8x128xf32>
    %485 = math.tanh %484 : vector<8x128xf32>
    %486 = arith.mulf %481, %485 : vector<8x128xf32>
    %487 = tpu.concatenate %486, %457 in 1 : vector<8x128xf32>, vector<8x128xf32> -> vector<8x256xf32>
    %488 = arith.truncf %487 : vector<8x256xf32> to vector<8x256xbf16>
    %c0_117 = arith.constant 0 : index
    %c0_118 = arith.constant 0 : index
    %489 = vector.load %arg4[%c0_117, %c0_118] : memref<256x1024xbf16, #tpu.memory_space<vmem>>, vector<256x1024xbf16>
    %cst_119 = arith.constant dense<0.000000e+00> : vector<8x1024xf32>
    %490 = tpu.matmul %488, %489, %cst_119 {dimension_numbers = #tpu.dot_dimension_numbers<[1], [0], [0], [1], [0, 0, 1, 1], [], []>} : vector<8x256xbf16>, vector<256x1024xbf16>, vector<8x1024xf32> -> vector<8x1024xf32>
    %491 = vector.extract_strided_slice %490 {offsets = [0, 0], sizes = [8, 512], strides = [1, 1]} : vector<8x1024xf32> to vector<8x512xf32>
    %492 = vector.extract_strided_slice %490 {offsets = [0, 512], sizes = [8, 512], strides = [1, 1]} : vector<8x1024xf32> to vector<8x512xf32>
    %c0_120 = arith.constant 0 : index
    %c0_121 = arith.constant 0 : index
    %493 = vector.load %arg5[%c0_120, %c0_121] : memref<1x512xf32, #tpu.memory_space<vmem>>, vector<1x512xf32>
    %494 = vector.broadcast %493 : vector<1x512xf32> to vector<8x512xf32>
    %495 = arith.addf %492, %494 : vector<8x512xf32>
    %496 = vector.extract_strided_slice %495 {offsets = [0, 0], sizes = [8, 128], strides = [1, 1]} : vector<8x512xf32> to vector<8x128xf32>
    %497 = arith.negf %496 : vector<8x128xf32>
    %498 = math.exp %497 : vector<8x128xf32>
    %cst_122 = arith.constant 1.000000e+00 : f32
    %499 = vector.broadcast %cst_122 : f32 to vector<8x128xf32>
    %500 = arith.addf %499, %498 : vector<8x128xf32>
    %501 = arith.divf %499, %500 : vector<8x128xf32>
    %502 = vector.extract_strided_slice %495 {offsets = [0, 128], sizes = [8, 128], strides = [1, 1]} : vector<8x512xf32> to vector<8x128xf32>
    %503 = arith.negf %502 : vector<8x128xf32>
    %504 = math.exp %503 : vector<8x128xf32>
    %cst_123 = arith.constant 1.000000e+00 : f32
    %505 = vector.broadcast %cst_123 : f32 to vector<8x128xf32>
    %506 = arith.addf %505, %504 : vector<8x128xf32>
    %507 = arith.divf %505, %506 : vector<8x128xf32>
    %508 = vector.extract_strided_slice %495 {offsets = [0, 256], sizes = [8, 128], strides = [1, 1]} : vector<8x512xf32> to vector<8x128xf32>
    %509 = math.tanh %508 : vector<8x128xf32>
    %510 = vector.extract_strided_slice %495 {offsets = [0, 384], sizes = [8, 128], strides = [1, 1]} : vector<8x512xf32> to vector<8x128xf32>
    %511 = arith.negf %510 : vector<8x128xf32>
    %512 = math.exp %511 : vector<8x128xf32>
    %cst_124 = arith.constant 1.000000e+00 : f32
    %513 = vector.broadcast %cst_124 : f32 to vector<8x128xf32>
    %514 = arith.addf %513, %512 : vector<8x128xf32>
    %515 = arith.divf %513, %514 : vector<8x128xf32>
    %516 = arith.mulf %507, %455 : vector<8x128xf32>
    %517 = arith.mulf %501, %509 : vector<8x128xf32>
    %518 = arith.addf %516, %517 : vector<8x128xf32>
    %519 = math.tanh %518 : vector<8x128xf32>
    %520 = arith.mulf %515, %519 : vector<8x128xf32>
    %c8_i32 = arith.constant 8 : i32
    %c0_125 = arith.constant 0 : index
    %c0_126 = arith.constant 0 : index
    %521 = vector.load %arg9[%c0_125, %c0_126] : memref<8x128xf32, #tpu.memory_space<vmem>>, vector<8x128xf32>
    tpu.vector_store %arg9[%c0_125, %c0_126], %486 {strides = array<i32>} : memref<8x128xf32, #tpu.memory_space<vmem>>, vector<8x128xf32>,
    %c0_127 = arith.constant 0 : index
    %c0_128 = arith.constant 0 : index
    %522 = vector.load %arg10[%c0_127, %c0_128] : memref<8x128xf32, #tpu.memory_space<vmem>>, vector<8x128xf32>
    tpu.vector_store %arg10[%c0_127, %c0_128], %484 {strides = array<i32>} : memref<8x128xf32, #tpu.memory_space<vmem>>, vector<8x128xf32>,
    %c0_129 = arith.constant 0 : index
    %c0_130 = arith.constant 0 : index
    %523 = vector.load %arg11[%c0_129, %c0_130] : memref<8x128xf32, #tpu.memory_space<vmem>>, vector<8x128xf32>
    tpu.vector_store %arg11[%c0_129, %c0_130], %520 {strides = array<i32>} : memref<8x128xf32, #tpu.memory_space<vmem>>, vector<8x128xf32>,
    %c0_131 = arith.constant 0 : index
    %c0_132 = arith.constant 0 : index
    %524 = vector.load %arg12[%c0_131, %c0_132] : memref<8x128xf32, #tpu.memory_space<vmem>>, vector<8x128xf32>
    tpu.vector_store %arg12[%c0_131, %c0_132], %518 {strides = array<i32>} : memref<8x128xf32, #tpu.memory_space<vmem>>, vector<8x128xf32>,
    %c0_133 = arith.constant 0 : index
    %c0_134 = arith.constant 0 : index
    %525 = vector.load %arg13[%c0_133, %c0_134] : memref<8x512xf32, #tpu.memory_space<vmem>>, vector<8x512xf32>
    tpu.vector_store %arg13[%c0_133, %c0_134], %491 {strides = array<i32>} : memref<8x512xf32, #tpu.memory_space<vmem>>, vector<8x512xf32>,
    %c0_i32_135 = arith.constant 0 : i32
    %526 = arith.cmpi eq, %arg0, %c0_i32_135 : i32
    %527 = arith.extui %526 : i1 to i32
    %c0_i32_136 = arith.constant 0 : i32
    %528 = arith.cmpi ne, %527, %c0_i32_136 : i32
    scf.if %528 {
      %c0_137 = arith.constant 0 : index
      %c0_138 = arith.constant 0 : index
      %c0_139 = arith.constant 0 : index
      %529 = vector.load %arg6[%c0_137, %c0_138, %c0_139] : memref<2x8x128xf32, #tpu.memory_space<vmem>>, vector<1x8x128xf32>
      %530 = vector.shape_cast %529 : vector<1x8x128xf32> to vector<8x128xf32>
      %531 = vector.shape_cast %486 : vector<8x128xf32> to vector<1x8x128xf32>
      tpu.vector_store %arg6[%c0_137, %c0_138, %c0_139], %531 {strides = array<i32>} : memref<2x8x128xf32, #tpu.memory_space<vmem>>, vector<1x8x128xf32>,
      %c1 = arith.constant 1 : index
      %c0_140 = arith.constant 0 : index
      %c0_141 = arith.constant 0 : index
      %532 = vector.load %arg6[%c1, %c0_140, %c0_141] : memref<2x8x128xf32, #tpu.memory_space<vmem>>, vector<1x8x128xf32>
      %533 = vector.shape_cast %532 : vector<1x8x128xf32> to vector<8x128xf32>
      %534 = vector.shape_cast %520 : vector<8x128xf32> to vector<1x8x128xf32>
      tpu.vector_store %arg6[%c1, %c0_140, %c0_141], %534 {strides = array<i32>} : memref<2x8x128xf32, #tpu.memory_space<vmem>>, vector<1x8x128xf32>,
      %c0_142 = arith.constant 0 : index
      %c0_143 = arith.constant 0 : index
      %c0_144 = arith.constant 0 : index
      %535 = vector.load %arg7[%c0_142, %c0_143, %c0_144] : memref<2x8x128xf32, #tpu.memory_space<vmem>>, vector<1x8x128xf32>
      %536 = vector.shape_cast %535 : vector<1x8x128xf32> to vector<8x128xf32>
      %537 = vector.shape_cast %484 : vector<8x128xf32> to vector<1x8x128xf32>
      tpu.vector_store %arg7[%c0_142, %c0_143, %c0_144], %537 {strides = array<i32>} : memref<2x8x128xf32, #tpu.memory_space<vmem>>, vector<1x8x128xf32>,
      %c1_145 = arith.constant 1 : index
      %c0_146 = arith.constant 0 : index
      %c0_147 = arith.constant 0 : index
      %538 = vector.load %arg7[%c1_145, %c0_146, %c0_147] : memref<2x8x128xf32, #tpu.memory_space<vmem>>, vector<1x8x128xf32>
      %539 = vector.shape_cast %538 : vector<1x8x128xf32> to vector<8x128xf32>
      %540 = vector.shape_cast %518 : vector<8x128xf32> to vector<1x8x128xf32>
      tpu.vector_store %arg7[%c1_145, %c0_146, %c0_147], %540 {strides = array<i32>} : memref<2x8x128xf32, #tpu.memory_space<vmem>>, vector<1x8x128xf32>,
    } else {
    }
    return
  }
  func.func @transform_0(%arg0: i32) -> (i32, i32, i32) {
    %c0_i32 = arith.constant 0 : i32
    %c0_i32_0 = arith.constant 0 : i32
    %c0_i32_1 = arith.constant 0 : i32
    return %arg0, %c0_i32, %c0_i32_0 : i32, i32, i32
  }
  func.func @transform_1(%arg0: i32) -> (i32, i32) {
    %c0_i32 = arith.constant 0 : i32
    %c0_i32_0 = arith.constant 0 : i32
    %c0_i32_1 = arith.constant 0 : i32
    return %c0_i32, %c0_i32_0 : i32, i32
  }
  func.func @transform_2(%arg0: i32) -> (i32, i32) {
    %c0_i32 = arith.constant 0 : i32
    %c0_i32_0 = arith.constant 0 : i32
    %c0_i32_1 = arith.constant 0 : i32
    return %c0_i32, %c0_i32_0 : i32, i32
  }
  func.func @transform_3(%arg0: i32) -> (i32, i32) {
    %c0_i32 = arith.constant 0 : i32
    %c0_i32_0 = arith.constant 0 : i32
    %c0_i32_1 = arith.constant 0 : i32
    return %c0_i32, %c0_i32_0 : i32, i32
  }
  func.func @transform_4(%arg0: i32) -> (i32, i32) {
    %c0_i32 = arith.constant 0 : i32
    %c0_i32_0 = arith.constant 0 : i32
    %c0_i32_1 = arith.constant 0 : i32
    return %c0_i32, %c0_i32_0 : i32, i32
  }
  func.func @transform_5(%arg0: i32) -> (i32, i32, i32) {
    %c0_i32 = arith.constant 0 : i32
    %c0_i32_0 = arith.constant 0 : i32
    %c0_i32_1 = arith.constant 0 : i32
    %c0_i32_2 = arith.constant 0 : i32
    return %c0_i32, %c0_i32_0, %c0_i32_1 : i32, i32, i32
  }
  func.func @transform_6(%arg0: i32) -> (i32, i32, i32) {
    %c0_i32 = arith.constant 0 : i32
    %c0_i32_0 = arith.constant 0 : i32
    %c0_i32_1 = arith.constant 0 : i32
    %c0_i32_2 = arith.constant 0 : i32
    return %c0_i32, %c0_i32_0, %c0_i32_1 : i32, i32, i32
  }
}

</mosaic_0001>

<bundles_post_ra>
// kernel: tpu_custom_call.1
= control target key start
LH: loop header
LB: loop body
LE: loop exit
PB: predicated region body
PF: predicated region fallthrough
CT: control target
= control target key end

     0   :  { %12 = vsyncpa [#allocation9], 0  ;;  %s5516_s0 = inlined_call_operand.hbm [shape: bf16[8,8,128], index: 0, kind: input, shape index: {}]   ;;  %s5517_s1 = inlined_call_operand.hbm [shape: bf16[128,512], index: 1, kind: input, shape index: {}]   ;;  %s5518_s2 = inlined_call_operand.vmem [shape: f32[1,512], index: 2, kind: input, shape index: {}]   ;;  %s5519_s3 = inlined_call_operand.hbm [shape: bf16[256,1024], index: 3, kind: input, shape index: {}]   ;;  %s5520_s4 = inlined_call_operand.vmem [shape: f32[1,512], index: 4, kind: input, shape index: {}]   ;;  %s5521_s5 = inlined_call_operand.hbm [shape: f32[2,8,128], index: 5, kind: output, shape index: {0}]   ;;  %s5522_s6 = inlined_call_operand.hbm [shape: f32[2,8,128], index: 6, kind: output, shape index: {1}]  }
   0x1   :  { %13 = vsyncpa [#allocation12], 0 }
   0x2   :  { %14 = vsyncpa [#allocation10], 0 }
   0x3   :  { %15 = vsyncpa [#allocation16], 0  ;;  %s3818_s21 = smov [#allocation11]   ;;  %s3700_s25 = scalar_lea.hbm %s5517_s1, 4096 }
   0x4   :  { %s33_s22 = sshll.u32 %s3818_s21, 4  ;;  %p3701_p0 = scmp.ne.s32.totalorder %s5517_s1, %s3700_s25  ;;  %s34_s22 = int_to_ptr.vmem [resolvable:$true] %s33_s22 }
   0x5   :  { %p3704_p1 = scmp.lt.u32.totalorder %s3700_s25, %s5517_s1 }
   0x7   :  { %p3706_p2 = pnand %p3704_p1, %p3701_p0 }
   0x9   :  { %3709 = shalt.err (!%p3706_p2)
}
   0xa   :  { %s3710_s30 = scalar_lea.vmem %s34_s22, 4096  ;;  %p3715_p4 = scmp.lt.s32.totalorder %s34_s22, %s34_s22 }
   0xb   :  { %p3711_p3 = scmp.ne.s32.totalorder %s34_s22, %s3710_s30  ;;  %p3716_p5 = scmp.lt.s32.totalorder %s3710_s30, %s3710_s30 }
   0xd   :  { %p3717_p6 = por %p3716_p5, %p3715_p4 }
   0xf   :  { %p3718_p7 = pnand %p3717_p6, %p3711_p3 }
  0x11   :  { %3721 = shalt.err (!%p3718_p7)
}
  0x12   :  { %s3819_s7 = smov 256   ;;  %s3820_s8 = smov 16  }
  0x13   :  { %39 = dma.hbm_to_vmem [thread:$0]  %s5517_s1, 4096, %s34_s22, [#allocation12], %s3819_s7, %s3819_s7, %s3820_s8  }
  0x14   :  { %s3821_s11 = smov [#allocation8]   ;;  %s3722_s15 = scalar_lea.hbm %s5516_s0, 512 }
  0x15   :  { %s21_s12 = sshll.u32 %s3821_s11, 4  ;;  %p3723_p8 = scmp.ne.s32.totalorder %s5516_s0, %s3722_s15  ;;  %s22_s12 = int_to_ptr.vmem [resolvable:$true] %s21_s12 }
  0x16   :  { %p3726_p9 = scmp.lt.u32.totalorder %s3722_s15, %s5516_s0 }
  0x18   :  { %p3728_p10 = pnand %p3726_p9, %p3723_p8 }
  0x1a   :  { %3731 = shalt.err (!%p3728_p10)
}
  0x1b   :  { %s3732_s20 = scalar_lea.vmem %s22_s12, 512  ;;  %p3737_p12 = scmp.lt.s32.totalorder %s22_s12, %s22_s12 }
  0x1c   :  { %p3733_p11 = scmp.ne.s32.totalorder %s22_s12, %s3732_s20  ;;  %p3738_p13 = scmp.lt.s32.totalorder %s3732_s20, %s3732_s20 }
  0x1e   :  { %p3739_p0 = por %p3738_p13, %p3737_p12 }
  0x20   :  { %p3740_p1 = pnand %p3739_p0, %p3733_p11 }
  0x22   :  { %3743 = shalt.err (!%p3740_p1)
}
  0x23   :  { %s3822_s1 = smov 64   ;;  %s3823_s21 = smov 4  }
  0x24   :  { %27 = dma.hbm_to_vmem [thread:$0]  %s5516_s0, 512, %s22_s12, [#allocation9], %s3822_s1, %s3822_s1, %s3823_s21  }
  0x25   :  { %s3824_s24 = smov [#allocation13]   ;;  %s3744_s28 = scalar_lea.hbm %s5519_s3, 16384 }
  0x26   :  { %s47_s25 = sshll.u32 %s3824_s24, 4  ;;  %p3745_p2 = scmp.ne.s32.totalorder %s5519_s3, %s3744_s28  ;;  %s48_s25 = int_to_ptr.vmem [resolvable:$true] %s47_s25 }
  0x27   :  { %p3748_p3 = scmp.lt.u32.totalorder %s3744_s28, %s5519_s3 }
  0x29   :  { %p3750_p4 = pnand %p3748_p3, %p3745_p2 }
  0x2b   :  { %3753 = shalt.err (!%p3750_p4)
}
  0x2c   :  { %s3754_s9 = scalar_lea.vmem %s48_s25, 16384  ;;  %p3759_p6 = scmp.lt.s32.totalorder %s48_s25, %s48_s25 }
  0x2d   :  { %p3755_p5 = scmp.ne.s32.totalorder %s48_s25, %s3754_s9  ;;  %p3760_p7 = scmp.lt.s32.totalorder %s3754_s9, %s3754_s9 }
  0x2f   :  { %p3761_p8 = por %p3760_p7, %p3759_p6 }
  0x31   :  { %p3762_p9 = pnand %p3761_p8, %p3755_p5 }
  0x33   :  { %3765 = shalt.err (!%p3762_p9)
}
  0x34   :  { %s3825_s0 = smov 512   ;;  %s3826_s10 = smov 32  }
  0x35   :  { %53 = dma.hbm_to_vmem [thread:$0]  %s5519_s3, 16384, %s48_s25, [#allocation12], %s3825_s0, %s3825_s0, %s3826_s10  }
  0x36   :  { %3810 = dma.done.wait [#allocation9], 512  }
  0x37   :  { %3811 = vsyncadd [#allocation9], 4294966784 }
  0x38   :  { %3812 = dma.done.wait [#allocation12], 20480  }
  0x39   :  { %3813 = vsyncadd [#allocation12], 4294946816  ;;  %v3827_v0 = vmov 0   ;;  %v3392_v1 = vld [vmem:[#allocation11 + $0x4] ss:$16 sps:$4 sm:$0xff]   ;;  %v544_v38 = vld [vmem:[#allocation13 + $0x8] sm:$0xff] }
  0x3a   :  { %356 = vmatprep.mubr.bf16.mxu0 %v3827_v0  ;;  %429 = vmatprep.mubr.bf16.mxu1 %v3827_v0  ;;  %v3394_v2 = vld [vmem:[#allocation11] ss:$16 sps:$4 sm:$0xff]   ;;  %v3395_v3 = vld [vmem:[#allocation11 + $0x24] ss:$16 sps:$4 sm:$0xff]   ;;  %v3403_v6 = vld [vmem:[#allocation11 + $0xc] ss:$16 sps:$4 sm:$0xff]  }
  0x3b   :  { %324 = vmatprep.subr.bf16.mxu0 %v3392_v1  ;;  %v3397_v4 = vld [vmem:[#allocation11 + $0x20] ss:$16 sps:$4 sm:$0xff]   ;;  %v3398_v5 = vld [vmem:[#allocation11 + $0x44] ss:$16 sps:$4 sm:$0xff]   ;;  %v3406_v7 = vld [vmem:[#allocation11 + $0x8] ss:$16 sps:$4 sm:$0xff]   ;;  %397 = vmatprep.subr.bf16.mxu1 %v3403_v6 }
  0x3c   :  { %325 = vmatpush1.bf16.msra.mxu0 %v3394_v2  ;;  %v3400_v8 = vld [vmem:[#allocation11 + $0x40] ss:$16 sps:$4 sm:$0xff]   ;;  %v3401_v9 = vld [vmem:[#allocation11 + $0x64] ss:$16 sps:$4 sm:$0xff]   ;;  %398 = vmatpush1.bf16.msra.mxu1 %v3406_v7  ;;  %v3409_v10 = vld [vmem:[#allocation11 + $0x2c] ss:$16 sps:$4 sm:$0xff]  }
  0x3d   :  { %326 = vmatprep.subr.bf16.mxu0 %v3395_v3  ;;  %v3412_v11 = vld [vmem:[#allocation11 + $0x28] ss:$16 sps:$4 sm:$0xff]   ;;  %399 = vmatprep.subr.bf16.mxu1 %v3409_v10  ;;  %v3405_v12 = vld [vmem:[#allocation11 + $0x60] ss:$16 sps:$4 sm:$0xff]   ;;  %v3407_v13 = vld [vmem:[#allocation11 + $0x84] ss:$16 sps:$4 sm:$0xff]  }
  0x3e   :  { %v3415_v14 = vld [vmem:[#allocation11 + $0x4c] ss:$16 sps:$4 sm:$0xff]   ;;  %v3418_v15 = vld [vmem:[#allocation11 + $0x48] ss:$16 sps:$4 sm:$0xff]   ;;  %v3411_v17 = vld [vmem:[#allocation11 + $0x80] ss:$16 sps:$4 sm:$0xff]  }
  0x3f   :  { %v3421_v16 = vld [vmem:[#allocation11 + $0x6c] ss:$16 sps:$4 sm:$0xff]   ;;  %v3413_v18 = vld [vmem:[#allocation11 + $0xa4] ss:$16 sps:$4 sm:$0xff]   ;;  %v3424_v19 = vld [vmem:[#allocation11 + $0x68] ss:$16 sps:$4 sm:$0xff]  }
  0x40   :  { %327 = vmatpush1.bf16.msra.mxu0 %v3397_v4  ;;  %400 = vmatpush1.bf16.msra.mxu1 %v3412_v11  ;;  %v3427_v20 = vld [vmem:[#allocation11 + $0x8c] ss:$16 sps:$4 sm:$0xff]   ;;  %v3417_v21 = vld [vmem:[#allocation11 + $0xa0] ss:$16 sps:$4 sm:$0xff]   ;;  %v3419_v22 = vld [vmem:[#allocation11 + $0xc4] ss:$16 sps:$4 sm:$0xff]  }
  0x41   :  { %328 = vmatprep.subr.bf16.mxu0 %v3398_v5  ;;  %401 = vmatprep.subr.bf16.mxu1 %v3415_v14  ;;  %v3430_v23 = vld [vmem:[#allocation11 + $0x88] ss:$16 sps:$4 sm:$0xff]   ;;  %v3432_v24 = vld [vmem:[#allocation11 + $0xac] ss:$16 sps:$4 sm:$0xff]   ;;  %v3423_v25 = vld [vmem:[#allocation11 + $0xc0] ss:$16 sps:$4 sm:$0xff]  }
  0x42   :  { %v3425_v26 = vld [vmem:[#allocation11 + $0xe4] ss:$16 sps:$4 sm:$0xff]   ;;  %v3434_v27 = vld [vmem:[#allocation11 + $0xa8] ss:$16 sps:$4 sm:$0xff]   ;;  %v3435_v28 = vld [vmem:[#allocation11 + $0xcc] ss:$16 sps:$4 sm:$0xff]  }
  0x43   :  { %v543_v29 = vld [vmem:[#allocation13] sm:$0xff]  ;;  %v3437_v32 = vld [vmem:[#allocation11 + $0xc8] ss:$16 sps:$4 sm:$0xff]   ;;  %v3438_v33 = vld [vmem:[#allocation11 + $0xec] ss:$16 sps:$4 sm:$0xff]  }
  0x44   :  { %329 = vmatpush1.bf16.msra.mxu0 %v3400_v8  ;;  %402 = vmatpush1.bf16.msra.mxu1 %v3418_v15  ;;  %v547_v30 = vld [vmem:[#allocation13 + $0x20] sm:$0xff]  ;;  %v548_v39 = vld [vmem:[#allocation13 + $0x28] sm:$0xff] }
  0x45   :  { %330 = vmatprep.subr.bf16.mxu0 %v3401_v9  ;;  %403 = vmatprep.subr.bf16.mxu1 %v3421_v16  ;;  %v3429_v31 = vld [vmem:[#allocation11 + $0xe0] ss:$16 sps:$4 sm:$0xff]   ;;  %v3906_v36 = vcombine.high %v543_v29, %v547_v30  ;;  %v3908_v40 = vcombine.low %v543_v29, %v547_v30  ;;  %v3440_v41 = vld [vmem:[#allocation11 + $0xe8] ss:$16 sps:$4 sm:$0xff]   ;;  %v3913_v43 = vcombine.high %v544_v38, %v548_v39 }
  0x46   :  { %v551_v34 = vld [vmem:[#allocation13 + $0x40] sm:$0xff]  ;;  %v552_v46 = vld [vmem:[#allocation13 + $0x48] sm:$0xff]  ;;  %v3919_v49 = vcombine.low %v544_v38, %v548_v39 }
  0x47   :  { %v555_v35 = vld [vmem:[#allocation13 + $0x60] sm:$0xff]  ;;  %5813 = vst [vmem:[#allocation21_spill] sm:$0xff] %v3906_v36  ;;  %5814 = vst [vmem:[#allocation22_spill] sm:$0xff] %v3908_v40  ;;  %v556_v47 = vld [vmem:[#allocation13 + $0x68] sm:$0xff] }
  0x48   :  { %331 = vmatpush1.bf16.msra.mxu0 %v3405_v12  ;;  %404 = vmatpush1.bf16.msra.mxu1 %v3424_v19  ;;  %v3431_v37 = vld [vmem:[#allocation8] sm:$0xff]   ;;  %v3911_v42 = vcombine.high %v551_v34, %v555_v35  ;;  %5816 = vst [vmem:[#allocation24_spill] sm:$0xff] %v3913_v43  ;;  %v3916_v48 = vcombine.low %v551_v34, %v555_v35  ;;  %5818 = vst [vmem:[#allocation26_spill] sm:$0xff] %v3919_v49  ;;  %v560_v54 = vld [vmem:[#allocation13 + $0x88] sm:$0xff] }
  0x49   :  { %332 = vmatprep.subr.bf16.mxu0 %v3407_v13  ;;  %405 = vmatprep.subr.bf16.mxu1 %v3427_v20  ;;  %v559_v44 = vld [vmem:[#allocation13 + $0x80] sm:$0xff]  ;;  %v3925_v51 = vcombine.high %v552_v46, %v556_v47  ;;  %v564_v55 = vld [vmem:[#allocation13 + $0xa8] sm:$0xff]  ;;  %v3931_v57 = vcombine.low %v552_v46, %v556_v47 }
  0x4a   :  { %5815 = vst [vmem:[#allocation23_spill] sm:$0xff] %v3911_v42  ;;  %v563_v45 = vld [vmem:[#allocation13 + $0xa0] sm:$0xff]  ;;  %5817 = vst [vmem:[#allocation25_spill] sm:$0xff] %v3916_v48  ;;  %v3937_v59 = vcombine.high %v560_v54, %v564_v55  ;;  %v568_v60 = vld [vmem:[#allocation13 + $0xc8] sm:$0xff]  ;;  %v3944_v63 = vcombine.low %v560_v54, %v564_v55 }
  0x4b   :  { %v3922_v50 = vcombine.high %v559_v44, %v563_v45  ;;  %5820 = vst [vmem:[#allocation28_spill] sm:$0xff] %v3925_v51  ;;  %v567_v52 = vld [vmem:[#allocation13 + $0xc0] sm:$0xff]  ;;  %v3928_v56 = vcombine.low %v559_v44, %v563_v45  ;;  %5822 = vst [vmem:[#allocation30_spill] sm:$0xff] %v3931_v57  ;;  %v572_v61 = vld [vmem:[#allocation13 + $0xe8] sm:$0xff] }
  0x4c   :  { %333 = vmatpush1.bf16.msra.mxu0 %v3411_v17  ;;  %406 = vmatpush1.bf16.msra.mxu1 %v3430_v23  ;;  %v571_v53 = vld [vmem:[#allocation13 + $0xe0] sm:$0xff]  ;;  %5824 = vst [vmem:[#allocation32_spill] sm:$0xff] %v3937_v59  ;;  %5826 = vst [vmem:[#allocation34_spill] sm:$0xff] %v3944_v63  ;;  %v3948_v1 = vcombine.high %v568_v60, %v572_v61  ;;  %v3952_v2 = vcombine.low %v568_v60, %v572_v61  ;;  %v576_v5 = vld [vmem:[#allocation13 + $0x108] sm:$0xff] }
  0x4d   :  { %334 = vmatprep.subr.bf16.mxu0 %v3413_v18  ;;  %407 = vmatprep.subr.bf16.mxu1 %v3432_v24  ;;  %5819 = vst [vmem:[#allocation27_spill] sm:$0xff] %v3922_v50  ;;  %5821 = vst [vmem:[#allocation29_spill] sm:$0xff] %v3928_v56  ;;  %v3934_v58 = vcombine.high %v567_v52, %v571_v53  ;;  %v3941_v62 = vcombine.low %v567_v52, %v571_v53  ;;  %v575_v3 = vld [vmem:[#allocation13 + $0x100] sm:$0xff]  ;;  %v580_v7 = vld [vmem:[#allocation13 + $0x128] sm:$0xff] }
  0x4e   :  { %5827 = vst [vmem:[#allocation35_spill] sm:$0xff] %v3948_v1  ;;  %5828 = vst [vmem:[#allocation36_spill] sm:$0xff] %v3952_v2  ;;  %v579_v4 = vld [vmem:[#allocation13 + $0x120] sm:$0xff]  ;;  %v3958_v8 = vcombine.high %v576_v5, %v580_v7  ;;  %v3962_v10 = vcombine.low %v576_v5, %v580_v7  ;;  %v584_v13 = vld [vmem:[#allocation13 + $0x148] sm:$0xff] }
  0x4f   :  { %5823 = vst [vmem:[#allocation31_spill] sm:$0xff] %v3934_v58  ;;  %5825 = vst [vmem:[#allocation33_spill] sm:$0xff] %v3941_v62  ;;  %v3956_v6 = vcombine.high %v575_v3, %v579_v4  ;;  %v3960_v9 = vcombine.low %v575_v3, %v579_v4  ;;  %v583_v11 = vld [vmem:[#allocation13 + $0x140] sm:$0xff]  ;;  %v588_v15 = vld [vmem:[#allocation13 + $0x168] sm:$0xff] }
  0x50   :  { %335 = vmatpush1.bf16.msra.mxu0 %v3417_v21  ;;  %408 = vmatpush1.bf16.msra.mxu1 %v3434_v27  ;;  %5830 = vst [vmem:[#allocation38_spill] sm:$0xff] %v3958_v8  ;;  %5832 = vst [vmem:[#allocation40_spill] sm:$0xff] %v3962_v10  ;;  %v587_v12 = vld [vmem:[#allocation13 + $0x160] sm:$0xff]  ;;  %v3970_v16 = vcombine.high %v584_v13, %v588_v15  ;;  %v3974_v18 = vcombine.low %v584_v13, %v588_v15  ;;  %v592_v21 = vld [vmem:[#allocation13 + $0x188] sm:$0xff] }
  0x51   :  { %336 = vmatprep.subr.bf16.mxu0 %v3419_v22  ;;  %409 = vmatprep.subr.bf16.mxu1 %v3435_v28  ;;  %5829 = vst [vmem:[#allocation37_spill] sm:$0xff] %v3956_v6  ;;  %5831 = vst [vmem:[#allocation39_spill] sm:$0xff] %v3960_v9  ;;  %v3968_v14 = vcombine.high %v583_v11, %v587_v12  ;;  %v3972_v17 = vcombine.low %v583_v11, %v587_v12  ;;  %v591_v19 = vld [vmem:[#allocation13 + $0x180] sm:$0xff]  ;;  %v596_v23 = vld [vmem:[#allocation13 + $0x1a8] sm:$0xff] }
  0x52   :  { %5834 = vst [vmem:[#allocation42_spill] sm:$0xff] %v3970_v16  ;;  %5836 = vst [vmem:[#allocation44_spill] sm:$0xff] %v3974_v18  ;;  %v595_v20 = vld [vmem:[#allocation13 + $0x1a0] sm:$0xff]  ;;  %v3982_v24 = vcombine.high %v592_v21, %v596_v23  ;;  %v600_v29 = vld [vmem:[#allocation13 + $0x1c8] sm:$0xff] }
  0x53   :  { %5833 = vst [vmem:[#allocation41_spill] sm:$0xff] %v3968_v14  ;;  %5835 = vst [vmem:[#allocation43_spill] sm:$0xff] %v3972_v17  ;;  %v3980_v22 = vcombine.high %v591_v19, %v595_v20  ;;  %v599_v27 = vld [vmem:[#allocation13 + $0x1c0] sm:$0xff]  ;;  %v608_v38 = vld [vmem:[#allocation13 + $0x208] sm:$0xff] }
  0x54   :  { %337 = vmatpush1.bf16.msra.mxu0 %v3423_v25  ;;  %410 = vmatpush1.bf16.msra.mxu1 %v3437_v32  ;;  %5838 = vst [vmem:[#allocation46_spill] sm:$0xff] %v3982_v24  ;;  %v3984_v25 = vcombine.low %v591_v19, %v595_v20  ;;  %v603_v28 = vld [vmem:[#allocation13 + $0x1e0] sm:$0xff]  ;;  %v616_v53 = vld [vmem:[#allocation13 + $0x248] sm:$0xff] }
  0x55   :  { %338 = vmatprep.subr.bf16.mxu0 %v3425_v26  ;;  %411 = vmatprep.subr.bf16.mxu1 %v3438_v33  ;;  %5837 = vst [vmem:[#allocation45_spill] sm:$0xff] %v3980_v22  ;;  %v3986_v26 = vcombine.low %v592_v21, %v596_v23  ;;  %v3992_v30 = vcombine.high %v599_v27, %v603_v28  ;;  %v607_v35 = vld [vmem:[#allocation13 + $0x200] sm:$0xff]  ;;  %v620_v55 = vld [vmem:[#allocation13 + $0x268] sm:$0xff] }
  0x56   :  { %5839 = vst [vmem:[#allocation47_spill] sm:$0xff] %v3984_v25  ;;  %v3996_v33 = vcombine.low %v599_v27, %v603_v28  ;;  %v615_v47 = vld [vmem:[#allocation13 + $0x240] sm:$0xff]  ;;  %v4018_v60 = vcombine.high %v616_v53, %v620_v55  ;;  %v4022_v3 = vcombine.low %v616_v53, %v620_v55  ;;  %v3441_v4 = vld [vmem:[#allocation8 + $0x8] sm:$0xff]  }
  0x57   :  { %5840 = vst [vmem:[#allocation48_spill] sm:$0xff] %v3986_v26  ;;  %5841 = vst [vmem:[#allocation49_spill] sm:$0xff] %v3992_v30  ;;  %v619_v52 = vld [vmem:[#allocation13 + $0x260] sm:$0xff]  ;;  %v624_v11 = vld [vmem:[#allocation13 + $0x288] sm:$0xff] }
  0x58   :  { %339 = vmatpush1.bf16.msra.mxu0 %v3429_v31  ;;  %412 = vmatpush1.bf16.msra.mxu1 %v3440_v41  ;;  %v604_v31 = vld [vmem:[#allocation13 + $0x1e8] sm:$0xff]  ;;  %5843 = vst [vmem:[#allocation51_spill] sm:$0xff] %v3996_v33  ;;  %v4016_v54 = vcombine.high %v615_v47, %v619_v52  ;;  %5850 = vst [vmem:[#allocation58_spill] sm:$0xff] %v4018_v60  ;;  %v4020_v61 = vcombine.low %v615_v47, %v619_v52  ;;  %v623_v5 = vld [vmem:[#allocation13 + $0x280] sm:$0xff] }
  0x59   :  { %1311 = vmatprep.subr.bf16.mxu0 %v3906_v36  ;;  %1352 = vmatprep.subr.bf16.mxu1 %v3913_v43  ;;  %v3994_v32 = vcombine.high %v600_v29, %v604_v31  ;;  %v3998_v34 = vcombine.low %v600_v29, %v604_v31  ;;  %v612_v41 = vld [vmem:[#allocation13 + $0x228] sm:$0xff]  ;;  %5852 = vst [vmem:[#allocation60_spill] sm:$0xff] %v4022_v3  ;;  %v627_v7 = vld [vmem:[#allocation13 + $0x2a0] sm:$0xff] }
  0x5a   :  { %v4006_v44 = vcombine.high %v608_v38, %v612_v41  ;;  %v4010_v46 = vcombine.low %v608_v38, %v612_v41  ;;  %5849 = vst [vmem:[#allocation57_spill] sm:$0xff] %v4016_v54  ;;  %5851 = vst [vmem:[#allocation59_spill] sm:$0xff] %v4020_v61  ;;  %v4028_v12 = vcombine.high %v623_v5, %v627_v7  ;;  %v628_v13 = vld [vmem:[#allocation13 + $0x2a8] sm:$0xff]  ;;  %v631_v21 = vld [vmem:[#allocation13 + $0x2c0] sm:$0xff] }
  0x5b   :  { %357 = vmatmul.mubr.bf16.vlgmr.msra.gmra.mrb[0].mxu0 %v3431_v37  ;;  %430 = vmatmul.mubr.bf16.vlgmr.msra.gmra.mrb[0].mxu1 %v3431_v37  ;;  %5842 = vst [vmem:[#allocation50_spill] sm:$0xff] %v3994_v32  ;;  %5844 = vst [vmem:[#allocation52_spill] sm:$0xff] %v3998_v34  ;;  %v611_v37 = vld [vmem:[#allocation13 + $0x220] sm:$0xff]  ;;  %v4030_v15 = vcombine.high %v624_v11, %v628_v13  ;;  %v4032_v19 = vcombine.low %v623_v5, %v627_v7  ;;  %v632_v27 = vld [vmem:[#allocation13 + $0x2c8] sm:$0xff] }
  0x5c   :  { %1312 = vmatpush1.bf16.msra.mxu0 %v3908_v40  ;;  %366 = vmatprep.mubr.bf16.mxu0 %v3827_v0  ;;  %v4004_v39 = vcombine.high %v607_v35, %v611_v37  ;;  %5846 = vst [vmem:[#allocation54_spill] sm:$0xff] %v4006_v44  ;;  %v4008_v45 = vcombine.low %v607_v35, %v611_v37  ;;  %5848 = vst [vmem:[#allocation56_spill] sm:$0xff] %v4010_v46  ;;  %v635_v23 = vld [vmem:[#allocation13 + $0x2e0] sm:$0xff]  ;;  %v636_v29 = vld [vmem:[#allocation13 + $0x2e8] sm:$0xff] }
  0x5d   :  { %1313 = vmatprep.subr.bf16.mxu0 %v3911_v42  ;;  %1353 = vmatpush1.bf16.msra.mxu1 %v3919_v49  ;;  %5853 = vst [vmem:[#allocation61_spill] sm:$0xff] %v4028_v12  ;;  %5854 = vst [vmem:[#allocation62_spill] sm:$0xff] %v4030_v15  ;;  %v4034_v20 = vcombine.low %v624_v11, %v628_v13  ;;  %v4042_v28 = vcombine.high %v631_v21, %v635_v23  ;;  %v3442_v38 = vld [vmem:[#allocation8 + $0x10] sm:$0xff]   ;;  %v639_v41 = vld [vmem:[#allocation13 + $0x300] sm:$0xff] }
  0x5e   :  { %1354 = vmatprep.subr.bf16.mxu1 %v3925_v51  ;;  %439 = vmatprep.mubr.bf16.mxu1 %v3827_v0  ;;  %5845 = vst [vmem:[#allocation53_spill] sm:$0xff] %v4004_v39  ;;  %5847 = vst [vmem:[#allocation55_spill] sm:$0xff] %v4008_v45  ;;  %v4044_v31 = vcombine.high %v632_v27, %v636_v29  ;;  %v4046_v35 = vcombine.low %v631_v21, %v635_v23  ;;  %v643_v47 = vld [vmem:[#allocation13 + $0x320] sm:$0xff]  ;;  %v640_v52 = vld [vmem:[#allocation13 + $0x308] sm:$0xff] }
  0x5f   :  { %5855 = vst [vmem:[#allocation63_spill] sm:$0xff] %v4032_v19  ;;  %5856 = vst [vmem:[#allocation64_spill] sm:$0xff] %v4034_v20  ;;  %v4048_v37 = vcombine.low %v632_v27, %v636_v29  ;;  %v4054_v53 = vcombine.high %v639_v41, %v643_v47  ;;  %v644_v55 = vld [vmem:[#allocation13 + $0x328] sm:$0xff]  ;;  %v4058_v5 = vcombine.low %v639_v41, %v643_v47  ;;  %v647_v11 = vld [vmem:[#allocation13 + $0x340] sm:$0xff] }
  0x60   :  { %1314 = vmatpush1.bf16.msra.mxu0 %v3916_v48  ;;  %5857 = vst [vmem:[#allocation65_spill] sm:$0xff] %v4042_v28  ;;  %5858 = vst [vmem:[#allocation66_spill] sm:$0xff] %v4044_v31  ;;  %v4060_v7 = vcombine.low %v640_v52, %v644_v55  ;;  %v651_v13 = vld [vmem:[#allocation13 + $0x360] sm:$0xff]  ;;  %v648_v21 = vld [vmem:[#allocation13 + $0x348] sm:$0xff] }
  0x61   :  { %1315 = vmatprep.subr.bf16.mxu0 %v3922_v50  ;;  %1355 = vmatpush1.bf16.msra.mxu1 %v3931_v57  ;;  %5859 = vst [vmem:[#allocation67_spill] sm:$0xff] %v4046_v35  ;;  %5860 = vst [vmem:[#allocation68_spill] sm:$0xff] %v4048_v37  ;;  %v4068_v23 = vcombine.high %v647_v11, %v651_v13  ;;  %v652_v27 = vld [vmem:[#allocation13 + $0x368] sm:$0xff]  ;;  %v4070_v29 = vcombine.low %v647_v11, %v651_v13  ;;  %v655_v41 = vld [vmem:[#allocation13 + $0x380] sm:$0xff] }
  0x62   :  { %1356 = vmatprep.subr.bf16.mxu1 %v3937_v59  ;;  %5861 = vst [vmem:[#allocation69_spill] sm:$0xff] %v4054_v53  ;;  %5863 = vst [vmem:[#allocation71_spill] sm:$0xff] %v4058_v5  ;;  %v4072_v47 = vcombine.high %v648_v21, %v652_v27  ;;  %v668_v13 = vld [vmem:[#allocation13 + $0x3e8] sm:$0xff] }
  0x63   :  { %367 = vmatmul.mubr.bf16.gmra.mrb[4].mxu0 %v3441_v4  ;;  %440 = vmatmul.mubr.bf16.gmra.mrb[4].mxu1 %v3441_v4  ;;  %v4056_v4 = vcombine.high %v640_v52, %v644_v55  ;;  %5864 = vst [vmem:[#allocation72_spill] sm:$0xff] %v4060_v7  ;;  %5865 = vst [vmem:[#allocation73_spill] sm:$0xff] %v4068_v23  ;;  %v4074_v52 = vcombine.low %v648_v21, %v652_v27  ;;  %v656_v55 = vld [vmem:[#allocation13 + $0x388] sm:$0xff] }
  0x64   :  { %1316 = vmatpush1.bf16.msra.mxu0 %v3928_v56  ;;  %376 = vmatprep.mubr.bf16.mxu0 %v3827_v0  ;;  %5866 = vst [vmem:[#allocation74_spill] sm:$0xff] %v4070_v29  ;;  %5867 = vst [vmem:[#allocation75_spill] sm:$0xff] %v4072_v47 }
  0x65   :  { %1317 = vmatprep.subr.bf16.mxu0 %v3934_v58  ;;  %1357 = vmatpush1.bf16.msra.mxu1 %v3944_v63  ;;  %5862 = vst [vmem:[#allocation70_spill] sm:$0xff] %v4056_v4  ;;  %5868 = vst [vmem:[#allocation76_spill] sm:$0xff] %v4074_v52 }
  0x66   :  { %1358 = vmatprep.subr.bf16.mxu1 %v3948_v1  ;;  %449 = vmatprep.mubr.bf16.mxu1 %v3827_v0 }
  0x68   :  { %1318 = vmatpush1.bf16.msra.mxu0 %v3941_v62 }
  0x69   :  { %1359 = vmatpush1.bf16.msra.mxu1 %v3952_v2  ;;  %1319 = vmatprep.subr.bf16.mxu0 %v3956_v6 }
  0x6a   :  { %1360 = vmatprep.subr.bf16.mxu1 %v3958_v8 }
  0x6b   :  { %377 = vmatmul.mubr.bf16.gmra.mrb[8].mxu0 %v3442_v38  ;;  %450 = vmatmul.mubr.bf16.gmra.mrb[8].mxu1 %v3442_v38  ;;  %v3443_v38 = vld [vmem:[#allocation8 + $0x18] sm:$0xff]  }
  0x6c   :  { %1320 = vmatpush1.bf16.msra.mxu0 %v3960_v9  ;;  %386 = vmatprep.mubr.bf16.mxu0 %v3827_v0 }
  0x6d   :  { %1361 = vmatpush1.bf16.msra.mxu1 %v3962_v10  ;;  %1321 = vmatprep.subr.bf16.mxu0 %v3968_v14 }
  0x6e   :  { %1362 = vmatprep.subr.bf16.mxu1 %v3970_v16  ;;  %459 = vmatprep.mubr.bf16.mxu1 %v3827_v0  ;;  %v659_v0 = vld [vmem:[#allocation13 + $0x3a0] sm:$0xff] }
  0x6f   :  { %v4083_v11 = vcombine.low %v655_v41, %v659_v0 }
  0x70   :  { %1322 = vmatpush1.bf16.msra.mxu0 %v3972_v17 }
  0x71   :  { %1363 = vmatpush1.bf16.msra.mxu1 %v3974_v18  ;;  %1323 = vmatprep.subr.bf16.mxu0 %v3980_v22  ;;  %5871 = vst [vmem:[#allocation79_spill] sm:$0xff] %v4083_v11 }
  0x72   :  { %1364 = vmatprep.subr.bf16.mxu1 %v3982_v24 }
  0x73   :  { %387 = vmatmul.mubr.bf16.gmra.mrb[12].mxu0 %v3443_v38  ;;  %460 = vmatmul.mubr.bf16.gmra.mrb[12].mxu1 %v3443_v38 }
  0x74   :  { %1324 = vmatpush1.bf16.msra.mxu0 %v3984_v25 }
  0x75   :  { %1365 = vmatpush1.bf16.msra.mxu1 %v3986_v26  ;;  %1325 = vmatprep.subr.bf16.mxu0 %v3992_v30 }
  0x76   :  { %1366 = vmatprep.subr.bf16.mxu1 %v3994_v32 }
  0x78   :  { %1326 = vmatpush1.bf16.msra.mxu0 %v3996_v33 }
  0x79   :  { %1367 = vmatpush1.bf16.msra.mxu1 %v3998_v34  ;;  %1327 = vmatprep.subr.bf16.mxu0 %v4004_v39 }
  0x7a   :  { %1368 = vmatprep.subr.bf16.mxu1 %v4006_v44 }
  0x7c   :  { %1328 = vmatpush1.bf16.msra.mxu0 %v4008_v45 }
  0x7d   :  { %1369 = vmatpush1.bf16.msra.mxu1 %v4010_v46  ;;  %1329 = vmatprep.subr.bf16.mxu0 %v4016_v54 }
  0x7e   :  { %1370 = vmatprep.subr.bf16.mxu1 %v4018_v60 }
  0x80   :  { %1330 = vmatpush1.bf16.msra.mxu0 %v4020_v61 }
  0x81   :  { %1371 = vmatpush1.bf16.msra.mxu1 %v4022_v3  ;;  %1331 = vmatprep.subr.bf16.mxu0 %v4028_v12 }
  0x82   :  { %1372 = vmatprep.subr.bf16.mxu1 %v4030_v15 }
  0x84   :  { %1332 = vmatpush1.bf16.msra.mxu0 %v4032_v19  ;;  %v5896_v19 = vmov 0.0|0.0  }
  0x85   :  { %1373 = vmatpush1.bf16.msra.mxu1 %v4034_v20  ;;  %1333 = vmatprep.subr.bf16.mxu0 %v4042_v28  ;;  %v574_v20 = vld [vmem:[#allocation13 + $0xf8] sm:$0xff] }
  0x86   :  { %1374 = vmatprep.subr.bf16.mxu1 %v4044_v31  ;;  %v545_v31 = vld [vmem:[#allocation13 + $0x10] sm:$0xff] }
  0x88   :  { %1334 = vmatpush1.bf16.msra.mxu0 %v4046_v35  ;;  %v664_v35 = vld [vmem:[#allocation13 + $0x3c8] sm:$0xff] }
  0x89   :  { %1375 = vmatpush1.bf16.msra.mxu1 %v4048_v37  ;;  %1335 = vmatprep.subr.bf16.mxu0 %v4054_v53  ;;  %v667_v37 = vld [vmem:[#allocation13 + $0x3e0] sm:$0xff] }
  0x8a   :  { %1376 = vmatprep.subr.bf16.mxu1 %v4056_v4  ;;  %v660_v4 = vld [vmem:[#allocation13 + $0x3a8] sm:$0xff] }
  0x8b   :  { %v4079_v53 = vcombine.high %v656_v55, %v660_v4  ;;  %v4086_v21 = vcombine.low %v656_v55, %v660_v4  ;;  %v4101_v55 = vcombine.low %v664_v35, %v668_v13 }
  0x8c   :  { %1336 = vmatpush1.bf16.msra.mxu0 %v4058_v5  ;;  %v4077_v5 = vcombine.high %v655_v41, %v659_v0  ;;  %v546_v41 = vld [vmem:[#allocation13 + $0x18] sm:$0xff] }
  0x8d   :  { %1377 = vmatpush1.bf16.msra.mxu1 %v4060_v7  ;;  %1337 = vmatprep.subr.bf16.mxu0 %v4068_v23  ;;  %5870 = vst [vmem:[#allocation78_spill] sm:$0xff] %v4079_v53  ;;  %v663_v7 = vld [vmem:[#allocation13 + $0x3c0] sm:$0xff]  ;;  %5872 = vst [vmem:[#allocation80_spill] sm:$0xff] %v4086_v21  ;;  %v4092_v23 = vcombine.high %v664_v35, %v668_v13  ;;  %v550_v0 = vld [vmem:[#allocation13 + $0x38] sm:$0xff]  ;;  %v120_v35 = vlaneseq }
  0x8e   :  { %5869 = vst [vmem:[#allocation77_spill] sm:$0xff] %v4077_v5  ;;  %1378 = vmatprep.subr.bf16.mxu1 %v4072_v47  ;;  %v4088_v27 = vcombine.high %v663_v7, %v667_v37  ;;  %v549_v47 = vld [vmem:[#allocation13 + $0x30] sm:$0xff]  ;;  %v4096_v4 = vcombine.low %v663_v7, %v667_v37  ;;  %5876 = vst [vmem:[#allocation84_spill] sm:$0xff] %v4101_v55  ;;  %v4106_v38 = vcombine.high %v546_v41, %v550_v0 }
  0x8f   :  { %5874 = vst [vmem:[#allocation82_spill] sm:$0xff] %v4092_v23  ;;  %v4112_v37 = vcombine.low %v545_v31, %v549_v47  ;;  %v4114_v7 = vcombine.low %v546_v41, %v550_v0  ;;  %v4116_v13 = vshrl.u32 %v120_v35, 7 }
  0x90   :  { %1338 = vmatpush1.bf16.msra.mxu0 %v4070_v29  ;;  %5873 = vst [vmem:[#allocation81_spill] sm:$0xff] %v4088_v27  ;;  %v5545_v29 = vmov 0.0|0.0   ;;  %5875 = vst [vmem:[#allocation83_spill] sm:$0xff] %v4096_v4 }
  0x91   :  { %1379 = vmatpush1.bf16.msra.mxu1 %v4074_v52  ;;  %1339 = vmatprep.subr.bf16.mxu0 %v4077_v5  ;;  %5878 = vst [vmem:[#allocation86_spill] sm:$0xff] %v4106_v38  ;;  %5879 = vst [vmem:[#allocation87_spill] sm:$0xff] %v4114_v7 }
  0x92   :  { %1380 = vmatprep.subr.bf16.mxu1 %v4079_v53  ;;  %1343 = vmatprep.mubr.bf16.mxu0 %v5545_v29  ;;  %v4103_v53 = vcombine.high %v545_v31, %v549_v47  ;;  %5880 = vst [vmem:[#allocation88_spill] sm:$0xff] %v4116_v13  ;;  %v5571_v47 = vsub.s32 3, %v4116_v13 }
  0x93   :  { %1384 = vmatprep.mubr.bf16.mxu1 %v5545_v29  ;;  %v5561_v29 = vsub.s32 0, %v4116_v13 }
  0x94   :  { %1340 = vmatpush1.bf16.msra.mxu0 %v4083_v11  ;;  %5877 = vst [vmem:[#allocation85_spill] sm:$0xff] %v4103_v53 }
  0x95   :  { %1381 = vmatpush1.bf16.msra.mxu1 %v4086_v21  ;;  %1341 = vmatprep.subr.bf16.mxu0 %v4088_v27 }
  0x96   :  { %1382 = vmatprep.subr.bf16.mxu1 %v4092_v23  ;;  %v118_v23 = vld [vmem:[%s5518_s2] sm:$0xf] }
  0x98   :  { %1342 = vmatpush1.bf16.msra.mxu0 %v4096_v4  ;;  %v5564_v4 = vsub.s32 1, %v4116_v13 }
  0x99   :  { %1383 = vmatpush1.bf16.msra.mxu1 %v4101_v55  ;;  %1393 = vmatprep.subr.bf16.mxu0 %v4103_v53  ;;  %v4125_v53 = vrot.slane %v118_v23, %v5561_v29  ;;  %v4140_v29 = vrot.slane %v118_v23, %v5571_v47 }
  0x9a   :  { %1434 = vmatprep.subr.bf16.mxu1 %v4106_v38  ;;  %v4129_v31 = vrot.slane %v118_v23, %v5564_v4  ;;  %v5578_v4 = vsub.s32 2, %v4116_v13 }
  0x9b   :  { %5881 = vst [vmem:[#allocation89_spill] sm:$0xff] %v4125_v53  ;;  %5885 = vst [vmem:[#allocation93_spill] sm:$0xff] %v4140_v29 }
  0x9c   :  { %5882 = vst [vmem:[#allocation90_spill] sm:$0xff] %v4129_v31 }
 0x12e   :  { %v358_v41 = vpop.f32.mrb[0].mxu0  ;;  %v431_v5 = vpop.f32.mrb[0].mxu1 }
 0x12f   :  { %v359_v0 = vadd.f32 %v358_v41, %v4125_v53  ;;  %v360_v35 = vpop.f32.mrb[1].mxu0  ;;  %v433_v52 = vpop.f32.mrb[1].mxu1 }
 0x130   :  { %v361_v38 = vadd.f32 %v360_v35, %v4129_v31  ;;  %v4134_v55 = vpop.f32.mrb[2].mxu0  ;;  %v434_v41 = vadd.f32 %v433_v52, %v4140_v29  ;;  %v4144_v53 = vpop.f32.mrb[2].mxu1 }
 0x131   :  { %5883 = vst [vmem:[#allocation91_spill] sm:$0xff] %v4134_v55  ;;  %v3201_v27 = vmul.f32 -1.442695, %v359_v0  ;;  %v4136_v21 = vpop.f32.mrb[3].mxu0  ;;  %5886 = vst [vmem:[#allocation94_spill] sm:$0xff] %v4144_v53  ;;  %v4148_v0 = vrot.slane %v118_v23, %v5578_v4  ;;  %v4150_v35 = vpop.f32.mrb[3].mxu1 }
 0x132   :  { %5884 = vst [vmem:[#allocation92_spill] sm:$0xff] %v4136_v21  ;;  %v3202_v11 = vmul.f32 -1.442695, %v361_v38  ;;  %5888 = vst [vmem:[#allocation96_spill] sm:$0xff] %v4150_v35  ;;  %v3203_v21 = vmul.f32 -1.442695, %v434_v41 }
 0x133   :  { %3444 = vpow2.f32 %v3201_v27  ;;  %5887 = vst [vmem:[#allocation95_spill] sm:$0xff] %v4148_v0  ;;  %v432_v47 = vadd.f32 %v431_v5, %v4148_v0  ;;  %v570_v0 = vld [vmem:[#allocation13 + $0xd8] sm:$0xff] }
 0x134   :  { %3446 = vpow2.f32 %v3202_v11 }
 0x135   :  { %3448 = vpow2.f32 %v3203_v21  ;;  %v553_v21 = vld [vmem:[#allocation13 + $0x50] sm:$0xff] }
 0x136   :  { %3450 = vtanh.f32 %v432_v47  ;;  %v554_v47 = vld [vmem:[#allocation13 + $0x58] sm:$0xff] }
 0x13d   :  { %v3445_v38 = vpop.eup %3444 }
 0x13e   :  { %v3447_v31 = vpop.eup %3446  ;;  %v520_v27 = vadd.f32 1.0, %v3445_v38  ;;  %v557_v38 = vld [vmem:[#allocation13 + $0x70] sm:$0xff] }
 0x13f   :  { %v526_v11 = vadd.f32 1.0, %v3447_v31  ;;  %v3449_v52 = vpop.eup %3448  ;;  %v558_v31 = vld [vmem:[#allocation13 + $0x78] sm:$0xff]  ;;  %v4158_v35 = vcombine.high %v553_v21, %v557_v38 }
 0x140   :  { %3452 = vrcp.f32 %v520_v27  ;;  %v3451_v29 = vpop.eup %3450  ;;  %v533_v55 = vadd.f32 1.0, %v3449_v52  ;;  %v4160_v52 = vcombine.high %v554_v47, %v558_v31 }
 0x141   :  { %3454 = vrcp.f32 %v526_v11  ;;  %5890 = vst [vmem:[#allocation98_spill] sm:$0xff] %v4158_v35 }
 0x142   :  { %3456 = vrcp.f32 %v533_v55  ;;  %5891 = vst [vmem:[#allocation99_spill] sm:$0xff] %v4160_v52  ;;  %v4166_v55 = vcombine.low %v553_v21, %v557_v38 }
 0x144   :  { %5892 = vst [vmem:[#allocation100_spill] sm:$0xff] %v4166_v55 }
 0x14a   :  { %v3453_v53 = vpop.eup %3452 }
 0x14b   :  { %v3455_v13 = vpop.eup %3454  ;;  %v537_v23 = vmul.f32 %v3453_v53, %v3451_v29  ;;  %v561_v53 = vld [vmem:[#allocation13 + $0x90] sm:$0xff] }
 0x14c   :  { %v536_v4 = vmul.f32 0.0, %v3455_v13  ;;  %v3457_v5 = vpop.eup %3456  ;;  %v565_v29 = vld [vmem:[#allocation13 + $0xb0] sm:$0xff]  ;;  %v566_v13 = vld [vmem:[#allocation13 + $0xb8] sm:$0xff] }
 0x14d   :  { %v4180_v21 = vcombine.low %v561_v53, %v565_v29 }
 0x14e   :  { %v4153_v28 = vadd.f32 %v537_v23, %v536_v4  ;;  %v562_v4 = vld [vmem:[#allocation13 + $0x98] sm:$0xff]  ;;  %v4168_v23 = vcombine.low %v554_v47, %v558_v31  ;;  %v4188_v31 = vcombine.high %v570_v0, %v574_v20 }
 0x14f   :  { %5897 = vst [vmem:[#allocation104_spill] sm:$0xff] %v4180_v21  ;;  %v4182_v38 = vcombine.low %v562_v4, %v566_v13 }
 0x150   :  { %5889 = vst [vmem:[#allocation97_spill] sm:$0xff] %v4153_v28  ;;  %3458 = vtanh.f32 %v4153_v28  ;;  %5893 = vst [vmem:[#allocation101_spill] sm:$0xff] %v4168_v23  ;;  %v573_v28 = vld [vmem:[#allocation13 + $0xf0] sm:$0xff] }
 0x151   :  { %5898 = vst [vmem:[#allocation105_spill] sm:$0xff] %v4182_v38  ;;  %5900 = vst [vmem:[#allocation107_spill] sm:$0xff] %v4188_v31 }
 0x15a   :  { %v3459_v41 = vpop.eup %3458 }
 0x15b   :  { %v540_v27 = vmul.f32 %v3459_v41, %v3457_v5  ;;  %v4172_v5 = vcombine.high %v561_v53, %v565_v29  ;;  %v4174_v41 = vcombine.high %v562_v4, %v566_v13  ;;  %v4194_v29 = vcombine.low %v570_v0, %v574_v20 }
 0x15d   :  { %v4156_v11 = vpack.c.bf16 %v540_v27, %v540_v27  ;;  %5894 = vst [vmem:[#allocation102_spill] sm:$0xff] %v4172_v5  ;;  %5895 = vst [vmem:[#allocation103_spill] sm:$0xff] %v4174_v41  ;;  %v569_v27 = vld [vmem:[#allocation13 + $0xd0] sm:$0xff] }
 0x15e   :  { %v4186_v47 = vcombine.high %v569_v27, %v573_v28  ;;  %v4192_v53 = vcombine.low %v569_v27, %v573_v28  ;;  %5902 = vst [vmem:[#allocation109_spill] sm:$0xff] %v4194_v29 }
 0x15f   :  { %1344 = vmatmul.mubr.bf16.vlgmr.msra.gmra.mrb[16].mxu0 %v4156_v11  ;;  %1385 = vmatmul.mubr.bf16.vlgmr.msra.gmra.mrb[16].mxu1 %v4156_v11 }
 0x160   :  { %1394 = vmatpush1.bf16.msra.mxu0 %v4112_v37  ;;  %1435 = vmatpush1.bf16.msra.mxu1 %v4114_v7  ;;  %5899 = vst [vmem:[#allocation106_spill] sm:$0xff] %v4186_v47  ;;  %v578_v7 = vld [vmem:[#allocation13 + $0x118] sm:$0xff]  ;;  %5901 = vst [vmem:[#allocation108_spill] sm:$0xff] %v4192_v53 }
 0x161   :  { %1395 = vmatprep.subr.bf16.mxu0 %v4158_v35  ;;  %1436 = vmatprep.subr.bf16.mxu1 %v4160_v52  ;;  %v577_v52 = vld [vmem:[#allocation13 + $0x110] sm:$0xff] }
 0x162   :  { %1425 = vmatprep.mubr.bf16.mxu0 %v5896_v19  ;;  %1466 = vmatprep.mubr.bf16.mxu1 %v5896_v19  ;;  %v581_v35 = vld [vmem:[#allocation13 + $0x130] sm:$0xff]  ;;  %v582_v19 = vld [vmem:[#allocation13 + $0x138] sm:$0xff] }
 0x163   :  { %v4198_v4 = vcombine.high %v577_v52, %v581_v35  ;;  %v4200_v13 = vcombine.high %v578_v7, %v582_v19  ;;  %v4204_v28 = vcombine.low %v577_v52, %v581_v35  ;;  %v4206_v20 = vcombine.low %v578_v7, %v582_v19 }
 0x164   :  { %1396 = vmatpush1.bf16.msra.mxu0 %v4166_v55  ;;  %1437 = vmatpush1.bf16.msra.mxu1 %v4168_v23  ;;  %v586_v23 = vld [vmem:[#allocation13 + $0x158] sm:$0xff] }
 0x165   :  { %1397 = vmatprep.subr.bf16.mxu0 %v4172_v5  ;;  %1438 = vmatprep.subr.bf16.mxu1 %v4174_v41  ;;  %5903 = vst [vmem:[#allocation110_spill] sm:$0xff] %v4198_v4  ;;  %5904 = vst [vmem:[#allocation111_spill] sm:$0xff] %v4200_v13  ;;  %v585_v41 = vld [vmem:[#allocation13 + $0x150] sm:$0xff]  ;;  %v590_v55 = vld [vmem:[#allocation13 + $0x178] sm:$0xff] }
 0x166   :  { %v589_v5 = vld [vmem:[#allocation13 + $0x170] sm:$0xff]  ;;  %5905 = vst [vmem:[#allocation112_spill] sm:$0xff] %v4204_v28  ;;  %5906 = vst [vmem:[#allocation113_spill] sm:$0xff] %v4206_v20  ;;  %v4212_v27 = vcombine.high %v586_v23, %v590_v55  ;;  %v4218_v7 = vcombine.low %v586_v23, %v590_v55 }
 0x167   :  { %v4210_v0 = vcombine.high %v585_v41, %v589_v5  ;;  %v4216_v35 = vcombine.low %v585_v41, %v589_v5 }
 0x168   :  { %1398 = vmatpush1.bf16.msra.mxu0 %v4180_v21  ;;  %1439 = vmatpush1.bf16.msra.mxu1 %v4182_v38  ;;  %5908 = vst [vmem:[#allocation115_spill] sm:$0xff] %v4212_v27  ;;  %v594_v38 = vld [vmem:[#allocation13 + $0x198] sm:$0xff]  ;;  %5910 = vst [vmem:[#allocation117_spill] sm:$0xff] %v4218_v7 }
 0x169   :  { %1399 = vmatprep.subr.bf16.mxu0 %v4186_v47  ;;  %1440 = vmatprep.subr.bf16.mxu1 %v4188_v31  ;;  %5907 = vst [vmem:[#allocation114_spill] sm:$0xff] %v4210_v0  ;;  %v593_v31 = vld [vmem:[#allocation13 + $0x190] sm:$0xff]  ;;  %v598_v21 = vld [vmem:[#allocation13 + $0x1b8] sm:$0xff]  ;;  %5909 = vst [vmem:[#allocation116_spill] sm:$0xff] %v4216_v35 }
 0x16a   :  { %v597_v47 = vld [vmem:[#allocation13 + $0x1b0] sm:$0xff]  ;;  %v4224_v19 = vcombine.high %v594_v38, %v598_v21  ;;  %v4230_v55 = vcombine.low %v594_v38, %v598_v21 }
 0x16b   :  { %v4222_v52 = vcombine.high %v593_v31, %v597_v47  ;;  %v4228_v5 = vcombine.low %v593_v31, %v597_v47 }
 0x16c   :  { %1400 = vmatpush1.bf16.msra.mxu0 %v4192_v53  ;;  %1441 = vmatpush1.bf16.msra.mxu1 %v4194_v29  ;;  %5912 = vst [vmem:[#allocation119_spill] sm:$0xff] %v4224_v19  ;;  %v602_v29 = vld [vmem:[#allocation13 + $0x1d8] sm:$0xff]  ;;  %5914 = vst [vmem:[#allocation121_spill] sm:$0xff] %v4230_v55 }
 0x16d   :  { %1401 = vmatprep.subr.bf16.mxu0 %v4198_v4  ;;  %1442 = vmatprep.subr.bf16.mxu1 %v4200_v13  ;;  %5911 = vst [vmem:[#allocation118_spill] sm:$0xff] %v4222_v52  ;;  %v601_v13 = vld [vmem:[#allocation13 + $0x1d0] sm:$0xff]  ;;  %v606_v53 = vld [vmem:[#allocation13 + $0x1f8] sm:$0xff]  ;;  %5913 = vst [vmem:[#allocation120_spill] sm:$0xff] %v4228_v5 }
 0x16e   :  { %v605_v4 = vld [vmem:[#allocation13 + $0x1f0] sm:$0xff]  ;;  %v4236_v41 = vcombine.high %v602_v29, %v606_v53  ;;  %v4242_v21 = vcombine.low %v602_v29, %v606_v53 }
 0x16f   :  { %v4234_v23 = vcombine.high %v601_v13, %v605_v4  ;;  %v4240_v47 = vcombine.low %v601_v13, %v605_v4 }
 0x170   :  { %1402 = vmatpush1.bf16.msra.mxu0 %v4204_v28  ;;  %1443 = vmatpush1.bf16.msra.mxu1 %v4206_v20  ;;  %5916 = vst [vmem:[#allocation123_spill] sm:$0xff] %v4236_v41  ;;  %v610_v20 = vld [vmem:[#allocation13 + $0x218] sm:$0xff]  ;;  %5918 = vst [vmem:[#allocation125_spill] sm:$0xff] %v4242_v21 }
 0x171   :  { %1403 = vmatprep.subr.bf16.mxu0 %v4210_v0  ;;  %1444 = vmatprep.subr.bf16.mxu1 %v4212_v27  ;;  %5915 = vst [vmem:[#allocation122_spill] sm:$0xff] %v4234_v23  ;;  %v609_v27 = vld [vmem:[#allocation13 + $0x210] sm:$0xff]  ;;  %v614_v28 = vld [vmem:[#allocation13 + $0x238] sm:$0xff]  ;;  %5917 = vst [vmem:[#allocation124_spill] sm:$0xff] %v4240_v47 }
 0x172   :  { %v613_v0 = vld [vmem:[#allocation13 + $0x230] sm:$0xff]  ;;  %v4248_v31 = vcombine.high %v610_v20, %v614_v28  ;;  %v4254_v53 = vcombine.low %v610_v20, %v614_v28 }
 0x173   :  { %v4246_v38 = vcombine.high %v609_v27, %v613_v0  ;;  %v4252_v4 = vcombine.low %v609_v27, %v613_v0 }
 0x174   :  { %1404 = vmatpush1.bf16.msra.mxu0 %v4216_v35  ;;  %1445 = vmatpush1.bf16.msra.mxu1 %v4218_v7  ;;  %5920 = vst [vmem:[#allocation127_spill] sm:$0xff] %v4248_v31  ;;  %v618_v7 = vld [vmem:[#allocation13 + $0x258] sm:$0xff]  ;;  %5922 = vst [vmem:[#allocation129_spill] sm:$0xff] %v4254_v53 }
 0x175   :  { %1405 = vmatprep.subr.bf16.mxu0 %v4222_v52  ;;  %1446 = vmatprep.subr.bf16.mxu1 %v4224_v19  ;;  %5919 = vst [vmem:[#allocation126_spill] sm:$0xff] %v4246_v38  ;;  %v617_v19 = vld [vmem:[#allocation13 + $0x250] sm:$0xff]  ;;  %v622_v35 = vld [vmem:[#allocation13 + $0x278] sm:$0xff]  ;;  %5921 = vst [vmem:[#allocation128_spill] sm:$0xff] %v4252_v4 }
 0x176   :  { %v621_v52 = vld [vmem:[#allocation13 + $0x270] sm:$0xff]  ;;  %v4260_v13 = vcombine.high %v618_v7, %v622_v35  ;;  %v4266_v28 = vcombine.low %v618_v7, %v622_v35 }
 0x177   :  { %v4258_v29 = vcombine.high %v617_v19, %v621_v52  ;;  %v4264_v0 = vcombine.low %v617_v19, %v621_v52 }
 0x178   :  { %1406 = vmatpush1.bf16.msra.mxu0 %v4228_v5  ;;  %1447 = vmatpush1.bf16.msra.mxu1 %v4230_v55  ;;  %5924 = vst [vmem:[#allocation131_spill] sm:$0xff] %v4260_v13  ;;  %v626_v55 = vld [vmem:[#allocation13 + $0x298] sm:$0xff]  ;;  %5926 = vst [vmem:[#allocation133_spill] sm:$0xff] %v4266_v28 }
 0x179   :  { %1407 = vmatprep.subr.bf16.mxu0 %v4234_v23  ;;  %1448 = vmatprep.subr.bf16.mxu1 %v4236_v41  ;;  %5923 = vst [vmem:[#allocation130_spill] sm:$0xff] %v4258_v29  ;;  %v625_v41 = vld [vmem:[#allocation13 + $0x290] sm:$0xff]  ;;  %v630_v5 = vld [vmem:[#allocation13 + $0x2b8] sm:$0xff]  ;;  %5925 = vst [vmem:[#allocation132_spill] sm:$0xff] %v4264_v0 }
 0x17a   :  { %v629_v23 = vld [vmem:[#allocation13 + $0x2b0] sm:$0xff]  ;;  %v4272_v27 = vcombine.high %v626_v55, %v630_v5  ;;  %v4278_v35 = vcombine.low %v626_v55, %v630_v5 }
 0x17b   :  { %v4270_v20 = vcombine.high %v625_v41, %v629_v23  ;;  %v4276_v52 = vcombine.low %v625_v41, %v629_v23 }
 0x17c   :  { %1408 = vmatpush1.bf16.msra.mxu0 %v4240_v47  ;;  %1449 = vmatpush1.bf16.msra.mxu1 %v4242_v21  ;;  %5928 = vst [vmem:[#allocation135_spill] sm:$0xff] %v4272_v27  ;;  %v634_v21 = vld [vmem:[#allocation13 + $0x2d8] sm:$0xff]  ;;  %5930 = vst [vmem:[#allocation137_spill] sm:$0xff] %v4278_v35 }
 0x17d   :  { %1409 = vmatprep.subr.bf16.mxu0 %v4246_v38  ;;  %1450 = vmatprep.subr.bf16.mxu1 %v4248_v31  ;;  %5927 = vst [vmem:[#allocation134_spill] sm:$0xff] %v4270_v20  ;;  %v633_v31 = vld [vmem:[#allocation13 + $0x2d0] sm:$0xff]  ;;  %v638_v47 = vld [vmem:[#allocation13 + $0x2f8] sm:$0xff]  ;;  %5929 = vst [vmem:[#allocation136_spill] sm:$0xff] %v4276_v52 }
 0x17e   :  { %v637_v38 = vld [vmem:[#allocation13 + $0x2f0] sm:$0xff]  ;;  %v4284_v19 = vcombine.high %v634_v21, %v638_v47  ;;  %v4290_v5 = vcombine.low %v634_v21, %v638_v47 }
 0x17f   :  { %v4282_v7 = vcombine.high %v633_v31, %v637_v38  ;;  %v4288_v23 = vcombine.low %v633_v31, %v637_v38 }
 0x180   :  { %1410 = vmatpush1.bf16.msra.mxu0 %v4252_v4  ;;  %1451 = vmatpush1.bf16.msra.mxu1 %v4254_v53  ;;  %5932 = vst [vmem:[#allocation139_spill] sm:$0xff] %v4284_v19  ;;  %v642_v53 = vld [vmem:[#allocation13 + $0x318] sm:$0xff]  ;;  %5934 = vst [vmem:[#allocation141_spill] sm:$0xff] %v4290_v5 }
 0x181   :  { %1411 = vmatprep.subr.bf16.mxu0 %v4258_v29  ;;  %1452 = vmatprep.subr.bf16.mxu1 %v4260_v13  ;;  %5931 = vst [vmem:[#allocation138_spill] sm:$0xff] %v4282_v7  ;;  %v641_v13 = vld [vmem:[#allocation13 + $0x310] sm:$0xff]  ;;  %v646_v4 = vld [vmem:[#allocation13 + $0x338] sm:$0xff]  ;;  %5933 = vst [vmem:[#allocation140_spill] sm:$0xff] %v4288_v23 }
 0x182   :  { %v645_v29 = vld [vmem:[#allocation13 + $0x330] sm:$0xff]  ;;  %v4296_v41 = vcombine.high %v642_v53, %v646_v4  ;;  %v4302_v47 = vcombine.low %v642_v53, %v646_v4 }
 0x183   :  { %v4294_v55 = vcombine.high %v641_v13, %v645_v29  ;;  %v4300_v38 = vcombine.low %v641_v13, %v645_v29 }
 0x184   :  { %1412 = vmatpush1.bf16.msra.mxu0 %v4264_v0  ;;  %1453 = vmatpush1.bf16.msra.mxu1 %v4266_v28  ;;  %5936 = vst [vmem:[#allocation143_spill] sm:$0xff] %v4296_v41  ;;  %v650_v28 = vld [vmem:[#allocation13 + $0x358] sm:$0xff]  ;;  %5938 = vst [vmem:[#allocation145_spill] sm:$0xff] %v4302_v47 }
 0x185   :  { %1413 = vmatprep.subr.bf16.mxu0 %v4270_v20  ;;  %1454 = vmatprep.subr.bf16.mxu1 %v4272_v27  ;;  %5935 = vst [vmem:[#allocation142_spill] sm:$0xff] %v4294_v55  ;;  %v649_v27 = vld [vmem:[#allocation13 + $0x350] sm:$0xff]  ;;  %v654_v0 = vld [vmem:[#allocation13 + $0x378] sm:$0xff]  ;;  %5937 = vst [vmem:[#allocation144_spill] sm:$0xff] %v4300_v38 }
 0x186   :  { %v653_v20 = vld [vmem:[#allocation13 + $0x370] sm:$0xff]  ;;  %v4308_v31 = vcombine.high %v650_v28, %v654_v0  ;;  %v4314_v4 = vcombine.low %v650_v28, %v654_v0 }
 0x187   :  { %v4306_v21 = vcombine.high %v649_v27, %v653_v20  ;;  %v4312_v29 = vcombine.low %v649_v27, %v653_v20 }
 0x188   :  { %1414 = vmatpush1.bf16.msra.mxu0 %v4276_v52  ;;  %1455 = vmatpush1.bf16.msra.mxu1 %v4278_v35  ;;  %5940 = vst [vmem:[#allocation147_spill] sm:$0xff] %v4308_v31  ;;  %v658_v35 = vld [vmem:[#allocation13 + $0x398] sm:$0xff]  ;;  %5942 = vst [vmem:[#allocation149_spill] sm:$0xff] %v4314_v4 }
 0x189   :  { %1415 = vmatprep.subr.bf16.mxu0 %v4282_v7  ;;  %1456 = vmatprep.subr.bf16.mxu1 %v4284_v19  ;;  %5939 = vst [vmem:[#allocation146_spill] sm:$0xff] %v4306_v21  ;;  %v657_v19 = vld [vmem:[#allocation13 + $0x390] sm:$0xff]  ;;  %v662_v52 = vld [vmem:[#allocation13 + $0x3b8] sm:$0xff]  ;;  %5941 = vst [vmem:[#allocation148_spill] sm:$0xff] %v4312_v29 }
 0x18a   :  { %v661_v7 = vld [vmem:[#allocation13 + $0x3b0] sm:$0xff]  ;;  %v4320_v13 = vcombine.high %v658_v35, %v662_v52  ;;  %v4326_v0 = vcombine.low %v658_v35, %v662_v52  ;;  %v4344_v35 = vpop.f32.mrb[4].mxu1 }
 0x18b   :  { %v4318_v53 = vcombine.high %v657_v19, %v661_v7  ;;  %v4324_v20 = vcombine.low %v657_v19, %v661_v7  ;;  %5953 = vst [vmem:[#allocation160_spill] sm:$0xff] %v4344_v35  ;;  %v5985_v35 = vld [vmem:[#allocation73_spill] sm:$0xff] }
 0x18c   :  { %1416 = vmatpush1.bf16.msra.mxu0 %v4288_v23  ;;  %1457 = vmatpush1.bf16.msra.mxu1 %v4290_v5  ;;  %5944 = vst [vmem:[#allocation151_spill] sm:$0xff] %v4320_v13  ;;  %v666_v5 = vld [vmem:[#allocation13 + $0x3d8] sm:$0xff]  ;;  %5946 = vst [vmem:[#allocation153_spill] sm:$0xff] %v4326_v0 }
 0x18d   :  { %1417 = vmatprep.subr.bf16.mxu0 %v4294_v55  ;;  %1458 = vmatprep.subr.bf16.mxu1 %v4296_v41  ;;  %5943 = vst [vmem:[#allocation150_spill] sm:$0xff] %v4318_v53  ;;  %v665_v41 = vld [vmem:[#allocation13 + $0x3d0] sm:$0xff]  ;;  %v670_v23 = vld [vmem:[#allocation13 + $0x3f8] sm:$0xff]  ;;  %5945 = vst [vmem:[#allocation152_spill] sm:$0xff] %v4324_v20 }
 0x18e   :  { %v669_v55 = vld [vmem:[#allocation13 + $0x3f0] sm:$0xff]  ;;  %v4332_v27 = vcombine.high %v666_v5, %v670_v23  ;;  %v4340_v7 = vcombine.low %v666_v5, %v670_v23 }
 0x18f   :  { %v4330_v28 = vcombine.high %v665_v41, %v669_v55 }
 0x190   :  { %1418 = vmatpush1.bf16.msra.mxu0 %v4300_v38  ;;  %1459 = vmatpush1.bf16.msra.mxu1 %v4302_v47  ;;  %5948 = vst [vmem:[#allocation155_spill] sm:$0xff] %v4332_v27  ;;  %5951 = vst [vmem:[#allocation158_spill] sm:$0xff] %v4340_v7 }
 0x191   :  { %1419 = vmatprep.subr.bf16.mxu0 %v4306_v21  ;;  %1460 = vmatprep.subr.bf16.mxu1 %v4308_v31  ;;  %5947 = vst [vmem:[#allocation154_spill] sm:$0xff] %v4330_v28  ;;  %v4334_v31 = vpop.f32.mrb[4].mxu0 }
 0x192   :  { %5949 = vst [vmem:[#allocation156_spill] sm:$0xff] %v4334_v31  ;;  %v4342_v52 = vpop.f32.mrb[5].mxu0 }
 0x193   :  { %5952 = vst [vmem:[#allocation159_spill] sm:$0xff] %v4342_v52  ;;  %v4348_v19 = vpop.f32.mrb[6].mxu0  ;;  %v5984_v52 = vld [vmem:[#allocation72_spill] sm:$0xff] }
 0x194   :  { %1420 = vmatpush1.bf16.msra.mxu0 %v4312_v29  ;;  %1461 = vmatpush1.bf16.msra.mxu1 %v4314_v4  ;;  %v4338_v29 = vcombine.low %v665_v41, %v669_v55  ;;  %5954 = vst [vmem:[#allocation161_spill] sm:$0xff] %v4348_v19  ;;  %v4352_v31 = vpop.f32.mrb[7].mxu0  ;;  %v5982_v19 = vld [vmem:[#allocation70_spill] sm:$0xff] }
 0x195   :  { %1421 = vmatprep.subr.bf16.mxu0 %v4318_v53  ;;  %1462 = vmatprep.subr.bf16.mxu1 %v4320_v13  ;;  %v4350_v13 = vpop.f32.mrb[5].mxu1  ;;  %5956 = vst [vmem:[#allocation163_spill] sm:$0xff] %v4352_v31  ;;  %v4364_v23 = vpop.f32.mrb[8].mxu0 }
 0x196   :  { %5950 = vst [vmem:[#allocation157_spill] sm:$0xff] %v4338_v29  ;;  %5955 = vst [vmem:[#allocation162_spill] sm:$0xff] %v4350_v13  ;;  %v4366_v5 = vpop.f32.mrb[9].mxu0  ;;  %v5983_v13 = vld [vmem:[#allocation71_spill] sm:$0xff] }
 0x197   :  { %5959 = vst [vmem:[#allocation166_spill] sm:$0xff] %v4364_v23  ;;  %5960 = vst [vmem:[#allocation167_spill] sm:$0xff] %v4366_v5 }
 0x198   :  { %1422 = vmatpush1.bf16.msra.mxu0 %v4324_v20  ;;  %1463 = vmatpush1.bf16.msra.mxu1 %v4326_v0  ;;  %v4354_v20 = vpop.f32.mrb[6].mxu1 }
 0x199   :  { %1423 = vmatprep.subr.bf16.mxu0 %v4330_v28  ;;  %1464 = vmatprep.subr.bf16.mxu1 %v4332_v27  ;;  %5957 = vst [vmem:[#allocation164_spill] sm:$0xff] %v4354_v20  ;;  %v4356_v55 = vpop.f32.mrb[7].mxu1 }
 0x19a   :  { %5958 = vst [vmem:[#allocation165_spill] sm:$0xff] %v4356_v55  ;;  %v4368_v41 = vpop.f32.mrb[8].mxu1  ;;  %v4372_v55 = vpop.f32.mrb[10].mxu0 }
 0x19b   :  { %5961 = vst [vmem:[#allocation168_spill] sm:$0xff] %v4368_v41  ;;  %5962 = vst [vmem:[#allocation169_spill] sm:$0xff] %v4372_v55  ;;  %v4374_v31 = vpop.f32.mrb[9].mxu1  ;;  %v4378_v20 = vpop.f32.mrb[11].mxu0 }
 0x19c   :  { %1424 = vmatpush1.bf16.msra.mxu0 %v4338_v29  ;;  %1465 = vmatpush1.bf16.msra.mxu1 %v4340_v7  ;;  %5963 = vst [vmem:[#allocation170_spill] sm:$0xff] %v4374_v31  ;;  %5964 = vst [vmem:[#allocation171_spill] sm:$0xff] %v4378_v20  ;;  %v4388_v55 = vpop.f32.mrb[12].mxu0 }
 0x19d   :  { %1560 = vmatprep.subr.bf16.mxu0 %v3906_v36  ;;  %1601 = vmatprep.subr.bf16.mxu1 %v3913_v43  ;;  %5967 = vst [vmem:[#allocation174_spill] sm:$0xff] %v4388_v55  ;;  %v4390_v31 = vpop.f32.mrb[13].mxu0 }
 0x19e   :  { %5968 = vst [vmem:[#allocation175_spill] sm:$0xff] %v4390_v31  ;;  %v4394_v20 = vpop.f32.mrb[14].mxu0  ;;  %v5980_v31 = vld [vmem:[#allocation68_spill] sm:$0xff] }
 0x19f   :  { %1426 = vmatmul.mubr.bf16.vlgmr.msra.gmra.mrb[20].mxu0 %v4156_v11  ;;  %1467 = vmatmul.mubr.bf16.vlgmr.msra.gmra.mrb[20].mxu1 %v4156_v11  ;;  %v4380_v11 = vpop.f32.mrb[10].mxu1  ;;  %5969 = vst [vmem:[#allocation176_spill] sm:$0xff] %v4394_v20  ;;  %v5978_v20 = vld [vmem:[#allocation66_spill] sm:$0xff] }
 0x1a0   :  { %1561 = vmatpush1.bf16.msra.mxu0 %v3908_v40  ;;  %1602 = vmatpush1.bf16.msra.mxu1 %v3919_v49  ;;  %5965 = vst [vmem:[#allocation172_spill] sm:$0xff] %v4380_v11  ;;  %v4382_v23 = vpop.f32.mrb[11].mxu1 }
 0x1a1   :  { %1562 = vmatprep.subr.bf16.mxu0 %v3911_v42  ;;  %1603 = vmatprep.subr.bf16.mxu1 %v3925_v51  ;;  %5966 = vst [vmem:[#allocation173_spill] sm:$0xff] %v4382_v23  ;;  %v4396_v11 = vpop.f32.mrb[12].mxu1  ;;  %v4400_v23 = vpop.f32.mrb[15].mxu0 }
 0x1a2   :  { %5970 = vst [vmem:[#allocation177_spill] sm:$0xff] %v4396_v11  ;;  %5971 = vst [vmem:[#allocation178_spill] sm:$0xff] %v4400_v23  ;;  %v4402_v5 = vpop.f32.mrb[13].mxu1  ;;  %v5976_v23 = vld [vmem:[#allocation64_spill] sm:$0xff]  ;;  %v5981_v11 = vld [vmem:[#allocation69_spill] sm:$0xff] }
 0x1a3   :  { %5972 = vst [vmem:[#allocation179_spill] sm:$0xff] %v4402_v5  ;;  %v4404_v41 = vpop.f32.mrb[14].mxu1  ;;  %v5979_v5 = vld [vmem:[#allocation67_spill] sm:$0xff] }
 0x1a4   :  { %1563 = vmatpush1.bf16.msra.mxu0 %v3916_v48  ;;  %1604 = vmatpush1.bf16.msra.mxu1 %v3931_v57  ;;  %5973 = vst [vmem:[#allocation180_spill] sm:$0xff] %v4404_v41  ;;  %v4406_v55 = vpop.f32.mrb[15].mxu1  ;;  %v5977_v41 = vld [vmem:[#allocation65_spill] sm:$0xff] }
 0x1a5   :  { %1564 = vmatprep.subr.bf16.mxu0 %v3922_v50  ;;  %1605 = vmatprep.subr.bf16.mxu1 %v3937_v59  ;;  %5974 = vst [vmem:[#allocation181_spill] sm:$0xff] %v4406_v55  ;;  %v5975_v55 = vld [vmem:[#allocation63_spill] sm:$0xff] }
 0x1a8   :  { %1565 = vmatpush1.bf16.msra.mxu0 %v3928_v56  ;;  %1606 = vmatpush1.bf16.msra.mxu1 %v3944_v63 }
 0x1a9   :  { %1566 = vmatprep.subr.bf16.mxu0 %v3934_v58  ;;  %1607 = vmatprep.subr.bf16.mxu1 %v3948_v1 }
 0x1ac   :  { %1567 = vmatpush1.bf16.msra.mxu0 %v3941_v62  ;;  %1608 = vmatpush1.bf16.msra.mxu1 %v3952_v2 }
 0x1ad   :  { %1568 = vmatprep.subr.bf16.mxu0 %v3956_v6  ;;  %1609 = vmatprep.subr.bf16.mxu1 %v3958_v8 }
 0x1b0   :  { %1569 = vmatpush1.bf16.msra.mxu0 %v3960_v9  ;;  %1610 = vmatpush1.bf16.msra.mxu1 %v3962_v10 }
 0x1b1   :  { %1570 = vmatprep.subr.bf16.mxu0 %v3968_v14  ;;  %1611 = vmatprep.subr.bf16.mxu1 %v3970_v16 }
 0x1b4   :  { %1571 = vmatpush1.bf16.msra.mxu0 %v3972_v17  ;;  %1612 = vmatpush1.bf16.msra.mxu1 %v3974_v18 }
 0x1b5   :  { %1572 = vmatprep.subr.bf16.mxu0 %v3980_v22  ;;  %1613 = vmatprep.subr.bf16.mxu1 %v3982_v24 }
 0x1b8   :  { %1573 = vmatpush1.bf16.msra.mxu0 %v3984_v25  ;;  %1614 = vmatpush1.bf16.msra.mxu1 %v3986_v26 }
 0x1b9   :  { %1574 = vmatprep.subr.bf16.mxu0 %v3992_v30  ;;  %1615 = vmatprep.subr.bf16.mxu1 %v3994_v32 }
 0x1bc   :  { %1575 = vmatpush1.bf16.msra.mxu0 %v3996_v33  ;;  %1616 = vmatpush1.bf16.msra.mxu1 %v3998_v34 }
 0x1bd   :  { %1576 = vmatprep.subr.bf16.mxu0 %v4004_v39  ;;  %1617 = vmatprep.subr.bf16.mxu1 %v4006_v44 }
 0x1c0   :  { %1577 = vmatpush1.bf16.msra.mxu0 %v4008_v45  ;;  %1618 = vmatpush1.bf16.msra.mxu1 %v4010_v46 }
 0x1c1   :  { %1578 = vmatprep.subr.bf16.mxu0 %v4016_v54  ;;  %1619 = vmatprep.subr.bf16.mxu1 %v4018_v60  ;;  %v6006_v60 = vld [vmem:[#allocation96_spill] sm:$0xff] }
 0x1c4   :  { %1579 = vmatpush1.bf16.msra.mxu0 %v4020_v61  ;;  %1620 = vmatpush1.bf16.msra.mxu1 %v4022_v3  ;;  %v6003_v3 = vld [vmem:[#allocation90_spill] sm:$0xff] }
 0x1c5   :  { %1580 = vmatprep.subr.bf16.mxu0 %v4028_v12  ;;  %1621 = vmatprep.subr.bf16.mxu1 %v4030_v15  ;;  %v6002_v12 = vld [vmem:[#allocation94_spill] sm:$0xff] }
 0x1c8   :  { %1581 = vmatpush1.bf16.msra.mxu0 %v5975_v55  ;;  %1622 = vmatpush1.bf16.msra.mxu1 %v5976_v23  ;;  %v5986_v55 = vld [vmem:[#allocation75_spill] sm:$0xff]  ;;  %v5987_v23 = vld [vmem:[#allocation74_spill] sm:$0xff] }
 0x1c9   :  { %1582 = vmatprep.subr.bf16.mxu0 %v5977_v41  ;;  %1623 = vmatprep.subr.bf16.mxu1 %v5978_v20  ;;  %v5988_v41 = vld [vmem:[#allocation76_spill] sm:$0xff]  ;;  %v5989_v20 = vld [vmem:[#allocation77_spill] sm:$0xff] }
 0x1cc   :  { %1583 = vmatpush1.bf16.msra.mxu0 %v5979_v5  ;;  %1624 = vmatpush1.bf16.msra.mxu1 %v5980_v31  ;;  %v5990_v5 = vld [vmem:[#allocation78_spill] sm:$0xff]  ;;  %v5991_v31 = vld [vmem:[#allocation79_spill] sm:$0xff] }
 0x1cd   :  { %1584 = vmatprep.subr.bf16.mxu0 %v5981_v11  ;;  %1625 = vmatprep.subr.bf16.mxu1 %v5982_v19  ;;  %v5992_v11 = vld [vmem:[#allocation80_spill] sm:$0xff]  ;;  %v5993_v19 = vld [vmem:[#allocation81_spill] sm:$0xff] }
 0x1d0   :  { %1585 = vmatpush1.bf16.msra.mxu0 %v5983_v13  ;;  %1626 = vmatpush1.bf16.msra.mxu1 %v5984_v52  ;;  %v5994_v13 = vld [vmem:[#allocation82_spill] sm:$0xff]  ;;  %v5995_v52 = vld [vmem:[#allocation83_spill] sm:$0xff] }
 0x1d1   :  { %1586 = vmatprep.subr.bf16.mxu0 %v5985_v35  ;;  %1627 = vmatprep.subr.bf16.mxu1 %v5986_v55  ;;  %v5996_v35 = vld [vmem:[#allocation84_spill] sm:$0xff]  ;;  %v5997_v55 = vld [vmem:[#allocation85_spill] sm:$0xff] }
 0x1d4   :  { %1587 = vmatpush1.bf16.msra.mxu0 %v5987_v23  ;;  %1628 = vmatpush1.bf16.msra.mxu1 %v5988_v41  ;;  %v5998_v23 = vld [vmem:[#allocation86_spill] sm:$0xff]  ;;  %v5999_v41 = vld [vmem:[#allocation89_spill] sm:$0xff] }
 0x1d5   :  { %1588 = vmatprep.subr.bf16.mxu0 %v5989_v20  ;;  %1629 = vmatprep.subr.bf16.mxu1 %v5990_v5  ;;  %v6000_v20 = vld [vmem:[#allocation91_spill] sm:$0xff] }
 0x1d6   :  { %v363_v15 = vadd.f32 %v6000_v20, %v5999_v41  ;;  %v6001_v5 = vld [vmem:[#allocation95_spill] sm:$0xff] }
 0x1d8   :  { %1589 = vmatpush1.bf16.msra.mxu0 %v5991_v31  ;;  %1630 = vmatpush1.bf16.msra.mxu1 %v5992_v11  ;;  %v436_v31 = vadd.f32 %v6002_v12, %v6001_v5  ;;  %v6004_v11 = vld [vmem:[#allocation92_spill] sm:$0xff] }
 0x1d9   :  { %1590 = vmatprep.subr.bf16.mxu0 %v5993_v19  ;;  %1631 = vmatprep.subr.bf16.mxu1 %v5994_v13  ;;  %v365_v61 = vadd.f32 %v6004_v11, %v6003_v3  ;;  %v6005_v19 = vld [vmem:[#allocation93_spill] sm:$0xff] }
 0x1da   :  { %v438_v13 = vadd.f32 %v6006_v60, %v6005_v19 }
 0x1dc   :  { %1591 = vmatpush1.bf16.msra.mxu0 %v5995_v52  ;;  %1632 = vmatpush1.bf16.msra.mxu1 %v5996_v35 }
 0x1dd   :  { %1642 = vmatprep.subr.bf16.mxu0 %v5997_v55  ;;  %1683 = vmatprep.subr.bf16.mxu1 %v5998_v23 }
 0x232   :  { %v1345_v54 = vpop.f32.mrb[16].mxu0  ;;  %v1386_v52 = vpop.f32.mrb[16].mxu1 }
 0x233   :  { %v1530_v46 = vadd.f32 %v1345_v54, %v363_v15  ;;  %v1532_v35 = vadd.f32 %v1386_v52, %v436_v31  ;;  %v1347_v45 = vpop.f32.mrb[17].mxu0  ;;  %v1388_v55 = vpop.f32.mrb[17].mxu1 }
 0x234   :  { %v1531_v44 = vadd.f32 %v1347_v45, %v365_v61  ;;  %v1533_v23 = vadd.f32 %v1388_v55, %v438_v13  ;;  %v1349_v39 = vpop.f32.mrb[18].mxu0  ;;  %v1390_v34 = vpop.f32.mrb[18].mxu1  ;;  %v6007_v61 = vld [vmem:[#allocation97_spill] sm:$0xff] }
 0x235   :  { %v3335_v20 = vmul.f32 -1.442695, %v1530_v46  ;;  %v1350_v41 = vpop.f32.mrb[19].mxu0  ;;  %v1391_v33 = vpop.f32.mrb[19].mxu1 }
 0x236   :  { %v3336_v12 = vmul.f32 -1.442695, %v1531_v44  ;;  %v1475_v33 = vld [vmem:[%s5520_s4] sm:$0xf]  ;;  %v6008_v44 = vld [vmem:[#allocation88_spill] sm:$0xff]  ;;  %s3829_s4 = smov [#allocation15]  }
 0x237   :  { %3460 = vpow2.f32 %v3335_v20  ;;  %v6009_v46 = vsub.s32 0, %v6008_v44  ;;  %s3148_s15 = sshll.u32 %s3829_s4, 4  ;;  %s3149_s15 = int_to_ptr.vmem [resolvable:$true] %s3148_s15 }
 0x238   :  { %3462 = vpow2.f32 %v3336_v12  ;;  %s3766_s16 = scalar_lea.vmem %s3149_s15, 256  ;;  %p3771_p11 = scmp.lt.s32.totalorder %s3149_s15, %s3149_s15 }
 0x239   :  { %3464 = vtanh.f32 %v1532_v35  ;;  %v4476_v13 = vrot.slane %v1475_v33, %v6009_v46  ;;  %p3767_p10 = scmp.ne.s32.totalorder %s3149_s15, %s3766_s16  ;;  %p3772_p12 = scmp.lt.s32.totalorder %s3766_s16, %s3766_s16 }
 0x23b   :  { %6010 = vst [vmem:[#allocation91_spill] sm:$0xff] %v4476_v13  ;;  %p3773_p13 = por %p3772_p12, %p3771_p11 }
 0x23d   :  { %p3774_p0 = pnand %p3773_p13, %p3767_p10 }
 0x241   :  { %v3461_v11 = vpop.eup %3460 }
 0x242   :  { %v3463_v3 = vpop.eup %3462  ;;  %v1537_v5 = vadd.f32 1.0, %v3461_v11 }
 0x243   :  { %v1543_v60 = vadd.f32 1.0, %v3463_v3  ;;  %v3465_v54 = vpop.eup %3464  ;;  %v6011_v3 = vsub.s32 1, %v6008_v44 }
 0x244   :  { %3466 = vrcp.f32 %v1537_v5 }
 0x245   :  { %3468 = vrcp.f32 %v1543_v60  ;;  %v4480_v52 = vrot.slane %v1475_v33, %v6011_v3  ;;  %v6013_v3 = vsub.s32 2, %v6008_v44 }
 0x24e   :  { %v3467_v15 = vpop.eup %3466 }
 0x24f   :  { %v3469_v31 = vpop.eup %3468  ;;  %v1554_v45 = vmul.f32 %v3467_v15, %v3465_v54 }
 0x250   :  { %v1553_v39 = vmul.f32 %v3469_v31, %v6007_v61  ;;  %v6012_v61 = vsub.s32 3, %v6008_v44 }
 0x252   :  { %v4469_v34 = vadd.f32 %v1554_v45, %v1553_v39  ;;  %v4486_v39 = vrot.slane %v1475_v33, %v6012_v61 }
 0x272   :  { %v1427_v35 = vpop.f32.mrb[20].mxu0  ;;  %v1468_v55 = vpop.f32.mrb[20].mxu1 }
 0x273   :  { %v1497_v5 = vadd.f32 %v4476_v13, %v1427_v35  ;;  %v1429_v41 = vpop.f32.mrb[21].mxu0  ;;  %v1470_v20 = vpop.f32.mrb[21].mxu1  ;;  %v4491_v35 = vrot.slane %v1475_v33, %v6013_v3  ;;  %v3337_v13 = vmul.f32 -1.442695, %v1533_v23 }
 0x274   :  { %v1498_v12 = vadd.f32 %v4480_v52, %v1429_v41  ;;  %v1431_v11 = vpop.f32.mrb[22].mxu0  ;;  %v1472_v60 = vpop.f32.mrb[22].mxu1  ;;  %v1500_v46 = vadd.f32 %v4486_v39, %v1470_v20 }
 0x275   :  { %v3332_v54 = vmul.f32 -1.442695, %v1497_v5  ;;  %v1432_v15 = vpop.f32.mrb[23].mxu0  ;;  %v1473_v31 = vpop.f32.mrb[23].mxu1  ;;  %v1499_v11 = vadd.f32 %v4491_v35, %v1468_v55 }
 0x276   :  { %v3333_v45 = vmul.f32 -1.442695, %v1498_v12  ;;  %v3334_v41 = vmul.f32 -1.442695, %v1500_v46 }
 0x277   :  { %3470 = vpow2.f32 %v3332_v54 }
 0x278   :  { %3472 = vpow2.f32 %v3333_v45 }
 0x279   :  { %3474 = vpow2.f32 %v3337_v13 }
 0x27a   :  { %3476 = vpow2.f32 %v3334_v41 }
 0x27b   :  { %3478 = vtanh.f32 %v1499_v11 }
 0x281   :  { %v3471_v5 = vpop.eup %3470 }
 0x282   :  { %v3473_v60 = vpop.eup %3472  ;;  %v1504_v12 = vadd.f32 1.0, %v3471_v5 }
 0x283   :  { %v1510_v15 = vadd.f32 1.0, %v3473_v60  ;;  %v3475_v54 = vpop.eup %3474 }
 0x284   :  { %3480 = vrcp.f32 %v1504_v12  ;;  %v3477_v31 = vpop.eup %3476  ;;  %v1550_v44 = vadd.f32 1.0, %v3475_v54  ;;  %v6014_v54 = vld [vmem:[#allocation87_spill] sm:$0xff] }
 0x285   :  { %3482 = vrcp.f32 %v1510_v15  ;;  %v3479_v20 = vpop.eup %3478  ;;  %v1517_v23 = vadd.f32 1.0, %v3477_v31  ;;  %v6015_v31 = vld [vmem:[#allocation98_spill] sm:$0xff] }
 0x286   :  { %3484 = vtanh.f32 %v4469_v34 }
 0x287   :  { %3486 = vrcp.f32 %v1550_v44  ;;  %v6018_v44 = vld [vmem:[#allocation101_spill] sm:$0xff] }
 0x288   :  { %3488 = vrcp.f32 %v1517_v23  ;;  %v6021_v23 = vld [vmem:[#allocation104_spill] sm:$0xff] }
 0x28e   :  { %v3481_v45 = vpop.eup %3480 }
 0x28f   :  { %v3483_v33 = vpop.eup %3482  ;;  %v1521_v61 = vmul.f32 %v3481_v45, %v3479_v20  ;;  %v6016_v20 = vld [vmem:[#allocation99_spill] sm:$0xff]  ;;  %v6017_v45 = vld [vmem:[#allocation100_spill] sm:$0xff] }
 0x290   :  { %v1520_v46 = vmul.f32 0.0, %v3483_v33  ;;  %v3485_v55 = vpop.eup %3484  ;;  %v6019_v33 = vld [vmem:[#allocation102_spill] sm:$0xff] }
 0x291   :  { %v3487_v3 = vpop.eup %3486 }
 0x292   :  { %v4495_v13 = vadd.f32 %v1521_v61, %v1520_v46  ;;  %v3489_v41 = vpop.eup %3488  ;;  %v1557_v5 = vmul.f32 %v3487_v3, %v3485_v55  ;;  %v6020_v61 = vld [vmem:[#allocation103_spill] sm:$0xff]  ;;  %v6022_v46 = vld [vmem:[#allocation105_spill] sm:$0xff]  ;;  %v6023_v55 = vld [vmem:[#allocation106_spill] sm:$0xff] }
 0x293   :  { %v6024_v3 = vld [vmem:[#allocation107_spill] sm:$0xff] }
 0x294   :  { %3490 = vtanh.f32 %v4495_v13  ;;  %v4498_v15 = vpack.c.bf16 %v1557_v5, %v1557_v5  ;;  %v6027_v5 = vld [vmem:[#allocation110_spill] sm:$0xff] }
 0x29e   :  { %v3491_v11 = vpop.eup %3490 }
 0x29f   :  { %v1524_v60 = vmul.f32 %v3491_v11, %v3489_v41  ;;  %v6025_v41 = vld [vmem:[#allocation108_spill] sm:$0xff]  ;;  %v6026_v11 = vld [vmem:[#allocation109_spill] sm:$0xff] }
 0x2a1   :  { %v1559_v12 = vpack.c.bf16 %v1524_v60, %v1524_v60  ;;  %v6028_v60 = vld [vmem:[#allocation111_spill] sm:$0xff] }
 0x2a3   :  { %1592 = vmatprep.mubr.bf16.mxu0 %v1559_v12  ;;  %1633 = vmatprep.mubr.bf16.mxu1 %v1559_v12 }
 0x2a4   :  { %1593 = vmatmul.mubr.bf16.vlgmr.msra.gmra.mrb[24].mxu0 %v4498_v15  ;;  %1634 = vmatmul.mubr.bf16.vlgmr.msra.gmra.mrb[24].mxu1 %v4498_v15 }
 0x2a5   :  { %1643 = vmatpush1.bf16.msra.mxu0 %v4112_v37  ;;  %1684 = vmatpush1.bf16.msra.mxu1 %v6014_v54 }
 0x2a6   :  { %1674 = vmatprep.mubr.bf16.mxu0 %v1559_v12  ;;  %1715 = vmatprep.mubr.bf16.mxu1 %v1559_v12  ;;  %v6029_v12 = vld [vmem:[#allocation112_spill] sm:$0xff] }
 0x2a7   :  { %1644 = vmatprep.subr.bf16.mxu0 %v6015_v31  ;;  %1685 = vmatprep.subr.bf16.mxu1 %v6016_v20 }
 0x2a9   :  { %1645 = vmatpush1.bf16.msra.mxu0 %v6017_v45  ;;  %1686 = vmatpush1.bf16.msra.mxu1 %v6018_v44 }
 0x2aa   :  { %1646 = vmatprep.subr.bf16.mxu0 %v6019_v33  ;;  %1687 = vmatprep.subr.bf16.mxu1 %v6020_v61  ;;  %v6030_v33 = vld [vmem:[#allocation113_spill] sm:$0xff]  ;;  %v6031_v61 = vld [vmem:[#allocation114_spill] sm:$0xff] }
 0x2ad   :  { %1647 = vmatpush1.bf16.msra.mxu0 %v6021_v23  ;;  %1688 = vmatpush1.bf16.msra.mxu1 %v6022_v46  ;;  %v6032_v23 = vld [vmem:[#allocation115_spill] sm:$0xff]  ;;  %v6033_v46 = vld [vmem:[#allocation116_spill] sm:$0xff] }
 0x2ae   :  { %1648 = vmatprep.subr.bf16.mxu0 %v6023_v55  ;;  %1689 = vmatprep.subr.bf16.mxu1 %v6024_v3  ;;  %v6034_v55 = vld [vmem:[#allocation117_spill] sm:$0xff]  ;;  %v6035_v3 = vld [vmem:[#allocation118_spill] sm:$0xff] }
 0x2b1   :  { %1649 = vmatpush1.bf16.msra.mxu0 %v6025_v41  ;;  %1690 = vmatpush1.bf16.msra.mxu1 %v6026_v11  ;;  %v6036_v41 = vld [vmem:[#allocation119_spill] sm:$0xff]  ;;  %v6037_v11 = vld [vmem:[#allocation120_spill] sm:$0xff] }
 0x2b2   :  { %1650 = vmatprep.subr.bf16.mxu0 %v6027_v5  ;;  %1691 = vmatprep.subr.bf16.mxu1 %v6028_v60  ;;  %v6038_v5 = vld [vmem:[#allocation121_spill] sm:$0xff]  ;;  %v6039_v60 = vld [vmem:[#allocation122_spill] sm:$0xff] }
 0x2b5   :  { %1651 = vmatpush1.bf16.msra.mxu0 %v6029_v12  ;;  %1692 = vmatpush1.bf16.msra.mxu1 %v6030_v33  ;;  %v6040_v12 = vld [vmem:[#allocation123_spill] sm:$0xff]  ;;  %v6041_v33 = vld [vmem:[#allocation124_spill] sm:$0xff] }
 0x2b6   :  { %1652 = vmatprep.subr.bf16.mxu0 %v6031_v61  ;;  %1693 = vmatprep.subr.bf16.mxu1 %v6032_v23  ;;  %v6042_v61 = vld [vmem:[#allocation125_spill] sm:$0xff]  ;;  %v6043_v23 = vld [vmem:[#allocation126_spill] sm:$0xff] }
 0x2b9   :  { %1653 = vmatpush1.bf16.msra.mxu0 %v6033_v46  ;;  %1694 = vmatpush1.bf16.msra.mxu1 %v6034_v55  ;;  %v6044_v46 = vld [vmem:[#allocation127_spill] sm:$0xff]  ;;  %v6045_v55 = vld [vmem:[#allocation128_spill] sm:$0xff] }
 0x2ba   :  { %1654 = vmatprep.subr.bf16.mxu0 %v6035_v3  ;;  %1695 = vmatprep.subr.bf16.mxu1 %v6036_v41  ;;  %v6046_v3 = vld [vmem:[#allocation129_spill] sm:$0xff]  ;;  %v6047_v41 = vld [vmem:[#allocation130_spill] sm:$0xff] }
 0x2bd   :  { %1655 = vmatpush1.bf16.msra.mxu0 %v6037_v11  ;;  %1696 = vmatpush1.bf16.msra.mxu1 %v6038_v5  ;;  %v6048_v11 = vld [vmem:[#allocation131_spill] sm:$0xff]  ;;  %v6049_v5 = vld [vmem:[#allocation132_spill] sm:$0xff] }
 0x2be   :  { %1656 = vmatprep.subr.bf16.mxu0 %v6039_v60  ;;  %1697 = vmatprep.subr.bf16.mxu1 %v6040_v12  ;;  %v6050_v60 = vld [vmem:[#allocation133_spill] sm:$0xff]  ;;  %v6051_v12 = vld [vmem:[#allocation134_spill] sm:$0xff] }
 0x2c1   :  { %1657 = vmatpush1.bf16.msra.mxu0 %v6041_v33  ;;  %1698 = vmatpush1.bf16.msra.mxu1 %v6042_v61  ;;  %v6052_v33 = vld [vmem:[#allocation135_spill] sm:$0xff]  ;;  %v6053_v61 = vld [vmem:[#allocation136_spill] sm:$0xff] }
 0x2c2   :  { %1658 = vmatprep.subr.bf16.mxu0 %v6043_v23  ;;  %1699 = vmatprep.subr.bf16.mxu1 %v6044_v46  ;;  %v6054_v23 = vld [vmem:[#allocation137_spill] sm:$0xff]  ;;  %v6055_v46 = vld [vmem:[#allocation138_spill] sm:$0xff] }
 0x2c5   :  { %1659 = vmatpush1.bf16.msra.mxu0 %v6045_v55  ;;  %1700 = vmatpush1.bf16.msra.mxu1 %v6046_v3  ;;  %v6056_v55 = vld [vmem:[#allocation139_spill] sm:$0xff]  ;;  %v6057_v3 = vld [vmem:[#allocation140_spill] sm:$0xff] }
 0x2c6   :  { %1660 = vmatprep.subr.bf16.mxu0 %v6047_v41  ;;  %1701 = vmatprep.subr.bf16.mxu1 %v6048_v11  ;;  %v6058_v41 = vld [vmem:[#allocation141_spill] sm:$0xff]  ;;  %v6059_v11 = vld [vmem:[#allocation142_spill] sm:$0xff] }
 0x2c9   :  { %1661 = vmatpush1.bf16.msra.mxu0 %v6049_v5  ;;  %1702 = vmatpush1.bf16.msra.mxu1 %v6050_v60  ;;  %v6060_v5 = vld [vmem:[#allocation143_spill] sm:$0xff] }
 0x2ca   :  { %1662 = vmatprep.subr.bf16.mxu0 %v6051_v12  ;;  %1703 = vmatprep.subr.bf16.mxu1 %v6052_v33 }
 0x2cd   :  { %1663 = vmatpush1.bf16.msra.mxu0 %v6053_v61  ;;  %1704 = vmatpush1.bf16.msra.mxu1 %v6054_v23  ;;  %v6061_v61 = vld [vmem:[#allocation147_spill] sm:$0xff]  ;;  %v6062_v23 = vld [vmem:[#allocation148_spill] sm:$0xff] }
 0x2ce   :  { %1664 = vmatprep.subr.bf16.mxu0 %v6055_v46  ;;  %1705 = vmatprep.subr.bf16.mxu1 %v6056_v55 }
 0x2d1   :  { %1665 = vmatpush1.bf16.msra.mxu0 %v6057_v3  ;;  %1706 = vmatpush1.bf16.msra.mxu1 %v6058_v41  ;;  %v6063_v3 = vld [vmem:[#allocation151_spill] sm:$0xff]  ;;  %v6064_v41 = vld [vmem:[#allocation152_spill] sm:$0xff] }
 0x2d2   :  { %1666 = vmatprep.subr.bf16.mxu0 %v6059_v11  ;;  %1707 = vmatprep.subr.bf16.mxu1 %v6060_v5 }
 0x2d5   :  { %1667 = vmatpush1.bf16.msra.mxu0 %v4300_v38  ;;  %1708 = vmatpush1.bf16.msra.mxu1 %v4302_v47 }
 0x2d6   :  { %1668 = vmatprep.subr.bf16.mxu0 %v4306_v21  ;;  %1709 = vmatprep.subr.bf16.mxu1 %v6061_v61 }
 0x2d9   :  { %1669 = vmatpush1.bf16.msra.mxu0 %v6062_v23  ;;  %1710 = vmatpush1.bf16.msra.mxu1 %v4314_v4 }
 0x2da   :  { %1670 = vmatprep.subr.bf16.mxu0 %v4318_v53  ;;  %1711 = vmatprep.subr.bf16.mxu1 %v6063_v3 }
 0x2dd   :  { %1671 = vmatpush1.bf16.msra.mxu0 %v6064_v41  ;;  %1712 = vmatpush1.bf16.msra.mxu1 %v4326_v0 }
 0x2de   :  { %1672 = vmatprep.subr.bf16.mxu0 %v4330_v28  ;;  %1713 = vmatprep.subr.bf16.mxu1 %v4332_v27 }
 0x2e1   :  { %1673 = vmatpush1.bf16.msra.mxu0 %v4338_v29  ;;  %1714 = vmatpush1.bf16.msra.mxu1 %v4340_v7 }
 0x2e2   :  { %1787 = vmatprep.subr.bf16.mxu0 %v3906_v36  ;;  %1828 = vmatprep.subr.bf16.mxu1 %v3913_v43 }
 0x2e4   :  { %1675 = vmatmul.mubr.bf16.vlgmr.msra.gmra.mrb[28].mxu0 %v4498_v15  ;;  %1716 = vmatmul.mubr.bf16.vlgmr.msra.gmra.mrb[28].mxu1 %v4498_v15  ;;  %v6065_v15 = vld [vmem:[#allocation51_spill] sm:$0xff] }
 0x2e5   :  { %1788 = vmatpush1.bf16.msra.mxu0 %v3908_v40  ;;  %1829 = vmatpush1.bf16.msra.mxu1 %v3919_v49 }
 0x2e6   :  { %1789 = vmatprep.subr.bf16.mxu0 %v3911_v42  ;;  %1830 = vmatprep.subr.bf16.mxu1 %v3925_v51 }
 0x2e9   :  { %1790 = vmatpush1.bf16.msra.mxu0 %v3916_v48  ;;  %1831 = vmatpush1.bf16.msra.mxu1 %v3931_v57 }
 0x2ea   :  { %1791 = vmatprep.subr.bf16.mxu0 %v3922_v50  ;;  %1832 = vmatprep.subr.bf16.mxu1 %v3937_v59 }
 0x2ed   :  { %1792 = vmatpush1.bf16.msra.mxu0 %v3928_v56  ;;  %1833 = vmatpush1.bf16.msra.mxu1 %v3944_v63 }
 0x2ee   :  { %1793 = vmatprep.subr.bf16.mxu0 %v3934_v58  ;;  %1834 = vmatprep.subr.bf16.mxu1 %v3948_v1 }
 0x2f1   :  { %1794 = vmatpush1.bf16.msra.mxu0 %v3941_v62  ;;  %1835 = vmatpush1.bf16.msra.mxu1 %v3952_v2 }
 0x2f2   :  { %1795 = vmatprep.subr.bf16.mxu0 %v3956_v6  ;;  %1836 = vmatprep.subr.bf16.mxu1 %v3958_v8  ;;  %v6105_v8 = vld [vmem:[#allocation90_spill] sm:$0xff] }
 0x2f5   :  { %1796 = vmatpush1.bf16.msra.mxu0 %v3960_v9  ;;  %1837 = vmatpush1.bf16.msra.mxu1 %v3962_v10  ;;  %v6104_v9 = vld [vmem:[#allocation160_spill] sm:$0xff] }
 0x2f6   :  { %1797 = vmatprep.subr.bf16.mxu0 %v3968_v14  ;;  %1838 = vmatprep.subr.bf16.mxu1 %v3970_v16  ;;  %v6066_v14 = vld [vmem:[#allocation52_spill] sm:$0xff]  ;;  %v6067_v16 = vld [vmem:[#allocation53_spill] sm:$0xff] }
 0x2f9   :  { %1798 = vmatpush1.bf16.msra.mxu0 %v3972_v17  ;;  %1839 = vmatpush1.bf16.msra.mxu1 %v3974_v18  ;;  %v6068_v17 = vld [vmem:[#allocation54_spill] sm:$0xff]  ;;  %v6069_v18 = vld [vmem:[#allocation55_spill] sm:$0xff] }
 0x2fa   :  { %1799 = vmatprep.subr.bf16.mxu0 %v3980_v22  ;;  %1840 = vmatprep.subr.bf16.mxu1 %v3982_v24  ;;  %v6070_v22 = vld [vmem:[#allocation56_spill] sm:$0xff]  ;;  %v6071_v24 = vld [vmem:[#allocation57_spill] sm:$0xff] }
 0x2fd   :  { %1800 = vmatpush1.bf16.msra.mxu0 %v3984_v25  ;;  %1841 = vmatpush1.bf16.msra.mxu1 %v3986_v26  ;;  %v6072_v25 = vld [vmem:[#allocation58_spill] sm:$0xff]  ;;  %v6073_v26 = vld [vmem:[#allocation59_spill] sm:$0xff] }
 0x2fe   :  { %1801 = vmatprep.subr.bf16.mxu0 %v3992_v30  ;;  %1842 = vmatprep.subr.bf16.mxu1 %v3994_v32  ;;  %v6074_v30 = vld [vmem:[#allocation60_spill] sm:$0xff]  ;;  %v6075_v32 = vld [vmem:[#allocation61_spill] sm:$0xff] }
 0x301   :  { %1802 = vmatpush1.bf16.msra.mxu0 %v6065_v15  ;;  %1843 = vmatpush1.bf16.msra.mxu1 %v6066_v14  ;;  %v6076_v15 = vld [vmem:[#allocation62_spill] sm:$0xff]  ;;  %v6077_v14 = vld [vmem:[#allocation63_spill] sm:$0xff] }
 0x302   :  { %1803 = vmatprep.subr.bf16.mxu0 %v6067_v16  ;;  %1844 = vmatprep.subr.bf16.mxu1 %v6068_v17  ;;  %v6078_v16 = vld [vmem:[#allocation64_spill] sm:$0xff]  ;;  %v6079_v17 = vld [vmem:[#allocation65_spill] sm:$0xff] }
 0x305   :  { %1804 = vmatpush1.bf16.msra.mxu0 %v6069_v18  ;;  %1845 = vmatpush1.bf16.msra.mxu1 %v6070_v22  ;;  %v6080_v18 = vld [vmem:[#allocation66_spill] sm:$0xff]  ;;  %v6081_v22 = vld [vmem:[#allocation67_spill] sm:$0xff] }
 0x306   :  { %1805 = vmatprep.subr.bf16.mxu0 %v6071_v24  ;;  %1846 = vmatprep.subr.bf16.mxu1 %v6072_v25  ;;  %v6082_v24 = vld [vmem:[#allocation68_spill] sm:$0xff]  ;;  %v6083_v25 = vld [vmem:[#allocation69_spill] sm:$0xff] }
 0x309   :  { %1806 = vmatpush1.bf16.msra.mxu0 %v6073_v26  ;;  %1847 = vmatpush1.bf16.msra.mxu1 %v6074_v30  ;;  %v6084_v26 = vld [vmem:[#allocation70_spill] sm:$0xff]  ;;  %v6085_v30 = vld [vmem:[#allocation71_spill] sm:$0xff] }
 0x30a   :  { %1807 = vmatprep.subr.bf16.mxu0 %v6075_v32  ;;  %1848 = vmatprep.subr.bf16.mxu1 %v6076_v15  ;;  %v6086_v32 = vld [vmem:[#allocation72_spill] sm:$0xff]  ;;  %v6087_v15 = vld [vmem:[#allocation73_spill] sm:$0xff] }
 0x30d   :  { %1808 = vmatpush1.bf16.msra.mxu0 %v6077_v14  ;;  %1849 = vmatpush1.bf16.msra.mxu1 %v6078_v16  ;;  %v6088_v14 = vld [vmem:[#allocation75_spill] sm:$0xff]  ;;  %v6089_v16 = vld [vmem:[#allocation74_spill] sm:$0xff] }
 0x30e   :  { %1809 = vmatprep.subr.bf16.mxu0 %v6079_v17  ;;  %1850 = vmatprep.subr.bf16.mxu1 %v6080_v18  ;;  %v6090_v17 = vld [vmem:[#allocation76_spill] sm:$0xff]  ;;  %v6091_v18 = vld [vmem:[#allocation77_spill] sm:$0xff] }
 0x311   :  { %1810 = vmatpush1.bf16.msra.mxu0 %v6081_v22  ;;  %1851 = vmatpush1.bf16.msra.mxu1 %v6082_v24  ;;  %v6092_v22 = vld [vmem:[#allocation78_spill] sm:$0xff]  ;;  %v6093_v24 = vld [vmem:[#allocation79_spill] sm:$0xff] }
 0x312   :  { %1811 = vmatprep.subr.bf16.mxu0 %v6083_v25  ;;  %1852 = vmatprep.subr.bf16.mxu1 %v6084_v26  ;;  %v6094_v25 = vld [vmem:[#allocation80_spill] sm:$0xff]  ;;  %v6095_v26 = vld [vmem:[#allocation81_spill] sm:$0xff] }
 0x315   :  { %1812 = vmatpush1.bf16.msra.mxu0 %v6085_v30  ;;  %1853 = vmatpush1.bf16.msra.mxu1 %v6086_v32  ;;  %v6096_v30 = vld [vmem:[#allocation82_spill] sm:$0xff]  ;;  %v6097_v32 = vld [vmem:[#allocation83_spill] sm:$0xff] }
 0x316   :  { %1813 = vmatprep.subr.bf16.mxu0 %v6087_v15  ;;  %1854 = vmatprep.subr.bf16.mxu1 %v6088_v14  ;;  %v6098_v15 = vld [vmem:[#allocation84_spill] sm:$0xff]  ;;  %v6099_v14 = vld [vmem:[#allocation85_spill] sm:$0xff] }
 0x319   :  { %1814 = vmatpush1.bf16.msra.mxu0 %v6089_v16  ;;  %1855 = vmatpush1.bf16.msra.mxu1 %v6090_v17  ;;  %v6100_v16 = vld [vmem:[#allocation86_spill] sm:$0xff]  ;;  %v6101_v17 = vld [vmem:[#allocation89_spill] sm:$0xff] }
 0x31a   :  { %1815 = vmatprep.subr.bf16.mxu0 %v6091_v18  ;;  %1856 = vmatprep.subr.bf16.mxu1 %v6092_v22  ;;  %v6102_v18 = vld [vmem:[#allocation156_spill] sm:$0xff]  ;;  %v6103_v22 = vld [vmem:[#allocation95_spill] sm:$0xff] }
 0x31b   :  { %v369_v10 = vadd.f32 %v6102_v18, %v6101_v17 }
 0x31d   :  { %1816 = vmatpush1.bf16.msra.mxu0 %v6093_v24  ;;  %1857 = vmatpush1.bf16.msra.mxu1 %v6094_v25  ;;  %v442_v24 = vadd.f32 %v6104_v9, %v6103_v22  ;;  %v6106_v25 = vld [vmem:[#allocation159_spill] sm:$0xff] }
 0x31e   :  { %1817 = vmatprep.subr.bf16.mxu0 %v6095_v26  ;;  %1858 = vmatprep.subr.bf16.mxu1 %v6096_v30  ;;  %v371_v6 = vadd.f32 %v6106_v25, %v6105_v8  ;;  %v6107_v26 = vld [vmem:[#allocation162_spill] sm:$0xff] }
 0x31f   :  { %v444_v30 = vadd.f32 %v6107_v26, %v6005_v19 }
 0x321   :  { %1818 = vmatpush1.bf16.msra.mxu0 %v6097_v32  ;;  %1859 = vmatpush1.bf16.msra.mxu1 %v6098_v15 }
 0x322   :  { %1869 = vmatprep.subr.bf16.mxu0 %v6099_v14  ;;  %1910 = vmatprep.subr.bf16.mxu1 %v6100_v16 }
 0x377   :  { %v1594_v2 = vpop.f32.mrb[24].mxu0  ;;  %v1635_v32 = vpop.f32.mrb[24].mxu1 }
 0x378   :  { %v1757_v62 = vadd.f32 %v1594_v2, %v369_v10  ;;  %v1759_v15 = vadd.f32 %v1635_v32, %v442_v24  ;;  %v1596_v1 = vpop.f32.mrb[25].mxu0  ;;  %v1637_v14 = vpop.f32.mrb[25].mxu1 }
 0x379   :  { %v1758_v58 = vadd.f32 %v1596_v1, %v371_v6  ;;  %v1760_v16 = vadd.f32 %v1637_v14, %v444_v30  ;;  %v1598_v63 = vpop.f32.mrb[26].mxu0  ;;  %v1639_v56 = vpop.f32.mrb[26].mxu1 }
 0x37a   :  { %v3341_v18 = vmul.f32 -1.442695, %v1757_v62  ;;  %v1599_v17 = vpop.f32.mrb[27].mxu0  ;;  %v1640_v59 = vpop.f32.mrb[27].mxu1 }
 0x37b   :  { %v3342_v9 = vmul.f32 -1.442695, %v1758_v58  ;;  %v6108_v58 = vld [vmem:[#allocation91_spill] sm:$0xff] }
 0x37c   :  { %3492 = vpow2.f32 %v3341_v18 }
 0x37d   :  { %3494 = vpow2.f32 %v3342_v9 }
 0x37e   :  { %3496 = vtanh.f32 %v1759_v15 }
 0x386   :  { %v3493_v25 = vpop.eup %3492 }
 0x387   :  { %v3495_v8 = vpop.eup %3494  ;;  %v1764_v22 = vadd.f32 1.0, %v3493_v25  ;;  %v3343_v25 = vmul.f32 -1.442695, %v1760_v16 }
 0x388   :  { %v1770_v26 = vadd.f32 1.0, %v3495_v8  ;;  %v3497_v2 = vpop.eup %3496 }
 0x389   :  { %3498 = vrcp.f32 %v1764_v22 }
 0x38a   :  { %3500 = vrcp.f32 %v1770_v26 }
 0x393   :  { %v3499_v10 = vpop.eup %3498 }
 0x394   :  { %v3501_v24 = vpop.eup %3500  ;;  %v1781_v1 = vmul.f32 %v3499_v10, %v3497_v2 }
 0x395   :  { %v1780_v63 = vmul.f32 %v3501_v24, %v4469_v34 }
 0x397   :  { %v4641_v56 = vadd.f32 %v1781_v1, %v1780_v63 }
 0x3b7   :  { %v1676_v62 = vpop.f32.mrb[28].mxu0  ;;  %v1717_v59 = vpop.f32.mrb[28].mxu1 }
 0x3b8   :  { %v1724_v6 = vadd.f32 %v1676_v62, %v6108_v58  ;;  %v1678_v14 = vpop.f32.mrb[29].mxu0  ;;  %v1719_v17 = vpop.f32.mrb[29].mxu1  ;;  %v1726_v2 = vadd.f32 %v1717_v59, %v4491_v35 }
 0x3b9   :  { %v1725_v30 = vadd.f32 %v1678_v14, %v4480_v52  ;;  %v1680_v32 = vpop.f32.mrb[30].mxu0  ;;  %v1721_v8 = vpop.f32.mrb[30].mxu1  ;;  %v1727_v34 = vadd.f32 %v1719_v17, %v4486_v39 }
 0x3ba   :  { %v3338_v22 = vmul.f32 -1.442695, %v1724_v6  ;;  %v1681_v15 = vpop.f32.mrb[31].mxu0  ;;  %v1722_v18 = vpop.f32.mrb[31].mxu1 }
 0x3bb   :  { %v3339_v9 = vmul.f32 -1.442695, %v1725_v30  ;;  %v3340_v26 = vmul.f32 -1.442695, %v1727_v34 }
 0x3bc   :  { %3502 = vpow2.f32 %v3338_v22 }
 0x3bd   :  { %3504 = vpow2.f32 %v3339_v9 }
 0x3be   :  { %3506 = vpow2.f32 %v3343_v25 }
 0x3bf   :  { %3508 = vpow2.f32 %v3340_v26 }
 0x3c0   :  { %3510 = vtanh.f32 %v1726_v2 }
 0x3c6   :  { %v3503_v10 = vpop.eup %3502 }
 0x3c7   :  { %v3505_v24 = vpop.eup %3504  ;;  %v1731_v1 = vadd.f32 1.0, %v3503_v10 }
 0x3c8   :  { %v1737_v63 = vadd.f32 1.0, %v3505_v24  ;;  %v3507_v62 = vpop.eup %3506  ;;  %v6110_v24 = vld [vmem:[#allocation103_spill] sm:$0xff] }
 0x3c9   :  { %3512 = vrcp.f32 %v1731_v1  ;;  %v3509_v6 = vpop.eup %3508  ;;  %v1777_v32 = vadd.f32 1.0, %v3507_v62  ;;  %v6111_v1 = vld [vmem:[#allocation104_spill] sm:$0xff]  ;;  %v6113_v62 = vld [vmem:[#allocation106_spill] sm:$0xff] }
 0x3ca   :  { %3514 = vrcp.f32 %v1737_v63  ;;  %v3511_v14 = vpop.eup %3510  ;;  %v1744_v16 = vadd.f32 1.0, %v3509_v6  ;;  %v6112_v63 = vld [vmem:[#allocation105_spill] sm:$0xff]  ;;  %v6114_v6 = vld [vmem:[#allocation107_spill] sm:$0xff] }
 0x3cb   :  { %3516 = vtanh.f32 %v4641_v56 }
 0x3cc   :  { %3518 = vrcp.f32 %v1777_v32  ;;  %v6117_v32 = vld [vmem:[#allocation110_spill] sm:$0xff] }
 0x3cd   :  { %3520 = vrcp.f32 %v1744_v16  ;;  %v6120_v16 = vld [vmem:[#allocation113_spill] sm:$0xff] }
 0x3d3   :  { %v3513_v30 = vpop.eup %3512 }
 0x3d4   :  { %v3515_v8 = vpop.eup %3514  ;;  %v1748_v17 = vmul.f32 %v3513_v30, %v3511_v14  ;;  %v6115_v14 = vld [vmem:[#allocation108_spill] sm:$0xff]  ;;  %v6116_v30 = vld [vmem:[#allocation109_spill] sm:$0xff] }
 0x3d5   :  { %v1747_v22 = vmul.f32 %v3515_v8, %v4495_v13  ;;  %v3517_v15 = vpop.eup %3516  ;;  %v6109_v13 = vld [vmem:[#allocation102_spill] sm:$0xff]  ;;  %v6118_v8 = vld [vmem:[#allocation111_spill] sm:$0xff] }
 0x3d6   :  { %v3519_v18 = vpop.eup %3518 }
 0x3d7   :  { %v4649_v59 = vadd.f32 %v1748_v17, %v1747_v22  ;;  %v3521_v9 = vpop.eup %3520  ;;  %v1784_v25 = vmul.f32 %v3519_v18, %v3517_v15  ;;  %v6119_v17 = vld [vmem:[#allocation112_spill] sm:$0xff]  ;;  %v6121_v22 = vld [vmem:[#allocation114_spill] sm:$0xff]  ;;  %v6122_v15 = vld [vmem:[#allocation115_spill] sm:$0xff] }
 0x3d8   :  { %v6123_v18 = vld [vmem:[#allocation116_spill] sm:$0xff] }
 0x3d9   :  { %3522 = vtanh.f32 %v4649_v59  ;;  %v4652_v10 = vpack.c.bf16 %v1784_v25, %v1784_v25  ;;  %v6126_v25 = vld [vmem:[#allocation119_spill] sm:$0xff] }
 0x3e3   :  { %v3523_v34 = vpop.eup %3522 }
 0x3e4   :  { %v1751_v26 = vmul.f32 %v3523_v34, %v3521_v9  ;;  %v6124_v9 = vld [vmem:[#allocation117_spill] sm:$0xff]  ;;  %v6125_v34 = vld [vmem:[#allocation118_spill] sm:$0xff] }
 0x3e6   :  { %v1786_v2 = vpack.c.bf16 %v1751_v26, %v1751_v26  ;;  %v6127_v26 = vld [vmem:[#allocation120_spill] sm:$0xff] }
 0x3e8   :  { %1819 = vmatprep.mubr.bf16.mxu0 %v1786_v2  ;;  %1860 = vmatprep.mubr.bf16.mxu1 %v1786_v2 }
 0x3e9   :  { %1820 = vmatmul.mubr.bf16.vlgmr.msra.gmra.mrb[32].mxu0 %v4652_v10  ;;  %1861 = vmatmul.mubr.bf16.vlgmr.msra.gmra.mrb[32].mxu1 %v4652_v10 }
 0x3ea   :  { %1870 = vmatpush1.bf16.msra.mxu0 %v4112_v37  ;;  %1911 = vmatpush1.bf16.msra.mxu1 %v6014_v54 }
 0x3eb   :  { %1901 = vmatprep.mubr.bf16.mxu0 %v1786_v2  ;;  %1942 = vmatprep.mubr.bf16.mxu1 %v1786_v2  ;;  %v6128_v2 = vld [vmem:[#allocation121_spill] sm:$0xff] }
 0x3ec   :  { %1871 = vmatprep.subr.bf16.mxu0 %v6015_v31  ;;  %1912 = vmatprep.subr.bf16.mxu1 %v6016_v20 }
 0x3ee   :  { %1872 = vmatpush1.bf16.msra.mxu0 %v6017_v45  ;;  %1913 = vmatpush1.bf16.msra.mxu1 %v6018_v44 }
 0x3ef   :  { %1873 = vmatprep.subr.bf16.mxu0 %v6109_v13  ;;  %1914 = vmatprep.subr.bf16.mxu1 %v6110_v24 }
 0x3f2   :  { %1874 = vmatpush1.bf16.msra.mxu0 %v6111_v1  ;;  %1915 = vmatpush1.bf16.msra.mxu1 %v6112_v63 }
 0x3f3   :  { %1875 = vmatprep.subr.bf16.mxu0 %v6113_v62  ;;  %1916 = vmatprep.subr.bf16.mxu1 %v6114_v6 }
 0x3f6   :  { %1876 = vmatpush1.bf16.msra.mxu0 %v6115_v14  ;;  %1917 = vmatpush1.bf16.msra.mxu1 %v6116_v30 }
 0x3f7   :  { %1877 = vmatprep.subr.bf16.mxu0 %v6117_v32  ;;  %1918 = vmatprep.subr.bf16.mxu1 %v6118_v8  ;;  %v6129_v8 = vld [vmem:[#allocation122_spill] sm:$0xff] }
 0x3fa   :  { %1878 = vmatpush1.bf16.msra.mxu0 %v6119_v17  ;;  %1919 = vmatpush1.bf16.msra.mxu1 %v6120_v16  ;;  %v6130_v17 = vld [vmem:[#allocation123_spill] sm:$0xff]  ;;  %v6131_v16 = vld [vmem:[#allocation124_spill] sm:$0xff] }
 0x3fb   :  { %1879 = vmatprep.subr.bf16.mxu0 %v6121_v22  ;;  %1920 = vmatprep.subr.bf16.mxu1 %v6122_v15  ;;  %v6132_v22 = vld [vmem:[#allocation125_spill] sm:$0xff]  ;;  %v6133_v15 = vld [vmem:[#allocation126_spill] sm:$0xff] }
 0x3fe   :  { %1880 = vmatpush1.bf16.msra.mxu0 %v6123_v18  ;;  %1921 = vmatpush1.bf16.msra.mxu1 %v6124_v9  ;;  %v6134_v18 = vld [vmem:[#allocation127_spill] sm:$0xff]  ;;  %v6135_v9 = vld [vmem:[#allocation128_spill] sm:$0xff] }
 0x3ff   :  { %1881 = vmatprep.subr.bf16.mxu0 %v6125_v34  ;;  %1922 = vmatprep.subr.bf16.mxu1 %v6126_v25  ;;  %v6136_v34 = vld [vmem:[#allocation129_spill] sm:$0xff]  ;;  %v6137_v25 = vld [vmem:[#allocation130_spill] sm:$0xff] }
 0x402   :  { %1882 = vmatpush1.bf16.msra.mxu0 %v6127_v26  ;;  %1923 = vmatpush1.bf16.msra.mxu1 %v6128_v2  ;;  %v6138_v26 = vld [vmem:[#allocation131_spill] sm:$0xff]  ;;  %v6139_v2 = vld [vmem:[#allocation132_spill] sm:$0xff] }
 0x403   :  { %1883 = vmatprep.subr.bf16.mxu0 %v6129_v8  ;;  %1924 = vmatprep.subr.bf16.mxu1 %v6130_v17 }
 0x406   :  { %1884 = vmatpush1.bf16.msra.mxu0 %v6131_v16  ;;  %1925 = vmatpush1.bf16.msra.mxu1 %v6132_v22  ;;  %v6140_v22 = vld [vmem:[#allocation136_spill] sm:$0xff] }
 0x407   :  { %1885 = vmatprep.subr.bf16.mxu0 %v6133_v15  ;;  %1926 = vmatprep.subr.bf16.mxu1 %v6134_v18  ;;  %v6141_v15 = vld [vmem:[#allocation137_spill] sm:$0xff] }
 0x40a   :  { %1886 = vmatpush1.bf16.msra.mxu0 %v6135_v9  ;;  %1927 = vmatpush1.bf16.msra.mxu1 %v6136_v34  ;;  %v6142_v34 = vld [vmem:[#allocation140_spill] sm:$0xff] }
 0x40b   :  { %1887 = vmatprep.subr.bf16.mxu0 %v6137_v25  ;;  %1928 = vmatprep.subr.bf16.mxu1 %v6138_v26  ;;  %v6143_v25 = vld [vmem:[#allocation141_spill] sm:$0xff] }
 0x40e   :  { %1888 = vmatpush1.bf16.msra.mxu0 %v6139_v2  ;;  %1929 = vmatpush1.bf16.msra.mxu1 %v6050_v60 }
 0x40f   :  { %1889 = vmatprep.subr.bf16.mxu0 %v6051_v12  ;;  %1930 = vmatprep.subr.bf16.mxu1 %v6052_v33 }
 0x412   :  { %1890 = vmatpush1.bf16.msra.mxu0 %v6140_v22  ;;  %1931 = vmatpush1.bf16.msra.mxu1 %v6141_v15 }
 0x413   :  { %1891 = vmatprep.subr.bf16.mxu0 %v6055_v46  ;;  %1932 = vmatprep.subr.bf16.mxu1 %v6056_v55 }
 0x416   :  { %1892 = vmatpush1.bf16.msra.mxu0 %v6142_v34  ;;  %1933 = vmatpush1.bf16.msra.mxu1 %v6143_v25 }
 0x417   :  { %1893 = vmatprep.subr.bf16.mxu0 %v6059_v11  ;;  %1934 = vmatprep.subr.bf16.mxu1 %v6060_v5 }
 0x41a   :  { %1894 = vmatpush1.bf16.msra.mxu0 %v4300_v38  ;;  %1935 = vmatpush1.bf16.msra.mxu1 %v4302_v47 }
 0x41b   :  { %1895 = vmatprep.subr.bf16.mxu0 %v4306_v21  ;;  %1936 = vmatprep.subr.bf16.mxu1 %v6061_v61 }
 0x41e   :  { %1896 = vmatpush1.bf16.msra.mxu0 %v6062_v23  ;;  %1937 = vmatpush1.bf16.msra.mxu1 %v4314_v4 }
 0x41f   :  { %1897 = vmatprep.subr.bf16.mxu0 %v4318_v53  ;;  %1938 = vmatprep.subr.bf16.mxu1 %v6063_v3 }
 0x422   :  { %1898 = vmatpush1.bf16.msra.mxu0 %v6064_v41  ;;  %1939 = vmatpush1.bf16.msra.mxu1 %v4326_v0 }
 0x423   :  { %1899 = vmatprep.subr.bf16.mxu0 %v4330_v28  ;;  %1940 = vmatprep.subr.bf16.mxu1 %v4332_v27  ;;  %v6204_v27 = vld [vmem:[#allocation164_spill] sm:$0xff]  ;;  %v6205_v28 = vld [vmem:[#allocation90_spill] sm:$0xff] }
 0x426   :  { %1900 = vmatpush1.bf16.msra.mxu0 %v4338_v29  ;;  %1941 = vmatpush1.bf16.msra.mxu1 %v4340_v7  ;;  %v6146_v7 = vld [vmem:[#allocation34_spill] sm:$0xff] }
 0x427   :  { %2014 = vmatprep.subr.bf16.mxu0 %v3906_v36  ;;  %2055 = vmatprep.subr.bf16.mxu1 %v3913_v43  ;;  %v6144_v36 = vld [vmem:[#allocation32_spill] sm:$0xff]  ;;  %v6145_v43 = vld [vmem:[#allocation29_spill] sm:$0xff] }
 0x429   :  { %1902 = vmatmul.mubr.bf16.vlgmr.msra.gmra.mrb[36].mxu0 %v4652_v10  ;;  %1943 = vmatmul.mubr.bf16.vlgmr.msra.gmra.mrb[36].mxu1 %v4652_v10  ;;  %v6147_v10 = vld [vmem:[#allocation31_spill] sm:$0xff] }
 0x42a   :  { %2015 = vmatpush1.bf16.msra.mxu0 %v3908_v40  ;;  %2056 = vmatpush1.bf16.msra.mxu1 %v3919_v49  ;;  %v6148_v40 = vld [vmem:[#allocation35_spill] sm:$0xff]  ;;  %v6149_v49 = vld [vmem:[#allocation33_spill] sm:$0xff] }
 0x42b   :  { %2016 = vmatprep.subr.bf16.mxu0 %v3911_v42  ;;  %2057 = vmatprep.subr.bf16.mxu1 %v3925_v51  ;;  %v6150_v42 = vld [vmem:[#allocation36_spill] sm:$0xff]  ;;  %v6151_v51 = vld [vmem:[#allocation37_spill] sm:$0xff] }
 0x42e   :  { %2017 = vmatpush1.bf16.msra.mxu0 %v3916_v48  ;;  %2058 = vmatpush1.bf16.msra.mxu1 %v3931_v57  ;;  %v6152_v48 = vld [vmem:[#allocation38_spill] sm:$0xff]  ;;  %v6153_v57 = vld [vmem:[#allocation39_spill] sm:$0xff] }
 0x42f   :  { %2018 = vmatprep.subr.bf16.mxu0 %v3922_v50  ;;  %2059 = vmatprep.subr.bf16.mxu1 %v6144_v36  ;;  %v6154_v50 = vld [vmem:[#allocation40_spill] sm:$0xff]  ;;  %v6155_v36 = vld [vmem:[#allocation41_spill] sm:$0xff] }
 0x432   :  { %2019 = vmatpush1.bf16.msra.mxu0 %v6145_v43  ;;  %2060 = vmatpush1.bf16.msra.mxu1 %v6146_v7  ;;  %v6156_v43 = vld [vmem:[#allocation42_spill] sm:$0xff]  ;;  %v6157_v7 = vld [vmem:[#allocation43_spill] sm:$0xff] }
 0x433   :  { %2020 = vmatprep.subr.bf16.mxu0 %v6147_v10  ;;  %2061 = vmatprep.subr.bf16.mxu1 %v6148_v40  ;;  %v6158_v10 = vld [vmem:[#allocation44_spill] sm:$0xff]  ;;  %v6159_v40 = vld [vmem:[#allocation45_spill] sm:$0xff] }
 0x436   :  { %2021 = vmatpush1.bf16.msra.mxu0 %v6149_v49  ;;  %2062 = vmatpush1.bf16.msra.mxu1 %v6150_v42  ;;  %v6160_v49 = vld [vmem:[#allocation46_spill] sm:$0xff]  ;;  %v6161_v42 = vld [vmem:[#allocation47_spill] sm:$0xff] }
 0x437   :  { %2022 = vmatprep.subr.bf16.mxu0 %v6151_v51  ;;  %2063 = vmatprep.subr.bf16.mxu1 %v6152_v48  ;;  %v6162_v51 = vld [vmem:[#allocation48_spill] sm:$0xff]  ;;  %v6163_v48 = vld [vmem:[#allocation49_spill] sm:$0xff] }
 0x43a   :  { %2023 = vmatpush1.bf16.msra.mxu0 %v6153_v57  ;;  %2064 = vmatpush1.bf16.msra.mxu1 %v6154_v50  ;;  %v6164_v57 = vld [vmem:[#allocation50_spill] sm:$0xff]  ;;  %v6165_v50 = vld [vmem:[#allocation51_spill] sm:$0xff] }
 0x43b   :  { %2024 = vmatprep.subr.bf16.mxu0 %v6155_v36  ;;  %2065 = vmatprep.subr.bf16.mxu1 %v6156_v43  ;;  %v6166_v36 = vld [vmem:[#allocation52_spill] sm:$0xff]  ;;  %v6167_v43 = vld [vmem:[#allocation53_spill] sm:$0xff] }
 0x43e   :  { %2025 = vmatpush1.bf16.msra.mxu0 %v6157_v7  ;;  %2066 = vmatpush1.bf16.msra.mxu1 %v6158_v10  ;;  %v6168_v7 = vld [vmem:[#allocation54_spill] sm:$0xff]  ;;  %v6169_v10 = vld [vmem:[#allocation55_spill] sm:$0xff] }
 0x43f   :  { %2026 = vmatprep.subr.bf16.mxu0 %v6159_v40  ;;  %2067 = vmatprep.subr.bf16.mxu1 %v6160_v49  ;;  %v6170_v40 = vld [vmem:[#allocation56_spill] sm:$0xff]  ;;  %v6171_v49 = vld [vmem:[#allocation57_spill] sm:$0xff] }
 0x442   :  { %2027 = vmatpush1.bf16.msra.mxu0 %v6161_v42  ;;  %2068 = vmatpush1.bf16.msra.mxu1 %v6162_v51  ;;  %v6172_v42 = vld [vmem:[#allocation58_spill] sm:$0xff]  ;;  %v6173_v51 = vld [vmem:[#allocation59_spill] sm:$0xff] }
 0x443   :  { %2028 = vmatprep.subr.bf16.mxu0 %v6163_v48  ;;  %2069 = vmatprep.subr.bf16.mxu1 %v6164_v57  ;;  %v6174_v48 = vld [vmem:[#allocation60_spill] sm:$0xff]  ;;  %v6175_v57 = vld [vmem:[#allocation61_spill] sm:$0xff] }
 0x446   :  { %2029 = vmatpush1.bf16.msra.mxu0 %v6165_v50  ;;  %2070 = vmatpush1.bf16.msra.mxu1 %v6166_v36  ;;  %v6176_v50 = vld [vmem:[#allocation62_spill] sm:$0xff]  ;;  %v6177_v36 = vld [vmem:[#allocation63_spill] sm:$0xff] }
 0x447   :  { %2030 = vmatprep.subr.bf16.mxu0 %v6167_v43  ;;  %2071 = vmatprep.subr.bf16.mxu1 %v6168_v7  ;;  %v6178_v43 = vld [vmem:[#allocation64_spill] sm:$0xff]  ;;  %v6179_v7 = vld [vmem:[#allocation65_spill] sm:$0xff] }
 0x44a   :  { %2031 = vmatpush1.bf16.msra.mxu0 %v6169_v10  ;;  %2072 = vmatpush1.bf16.msra.mxu1 %v6170_v40  ;;  %v6180_v10 = vld [vmem:[#allocation66_spill] sm:$0xff]  ;;  %v6181_v40 = vld [vmem:[#allocation67_spill] sm:$0xff] }
 0x44b   :  { %2032 = vmatprep.subr.bf16.mxu0 %v6171_v49  ;;  %2073 = vmatprep.subr.bf16.mxu1 %v6172_v42  ;;  %v6182_v49 = vld [vmem:[#allocation68_spill] sm:$0xff]  ;;  %v6183_v42 = vld [vmem:[#allocation69_spill] sm:$0xff] }
 0x44e   :  { %2033 = vmatpush1.bf16.msra.mxu0 %v6173_v51  ;;  %2074 = vmatpush1.bf16.msra.mxu1 %v6174_v48  ;;  %v6184_v51 = vld [vmem:[#allocation70_spill] sm:$0xff]  ;;  %v6185_v48 = vld [vmem:[#allocation71_spill] sm:$0xff] }
 0x44f   :  { %2034 = vmatprep.subr.bf16.mxu0 %v6175_v57  ;;  %2075 = vmatprep.subr.bf16.mxu1 %v6176_v50  ;;  %v6186_v57 = vld [vmem:[#allocation72_spill] sm:$0xff]  ;;  %v6187_v50 = vld [vmem:[#allocation73_spill] sm:$0xff] }
 0x452   :  { %2035 = vmatpush1.bf16.msra.mxu0 %v6177_v36  ;;  %2076 = vmatpush1.bf16.msra.mxu1 %v6178_v43  ;;  %v6188_v36 = vld [vmem:[#allocation75_spill] sm:$0xff]  ;;  %v6189_v43 = vld [vmem:[#allocation74_spill] sm:$0xff] }
 0x453   :  { %2036 = vmatprep.subr.bf16.mxu0 %v6179_v7  ;;  %2077 = vmatprep.subr.bf16.mxu1 %v6180_v10  ;;  %v6190_v7 = vld [vmem:[#allocation76_spill] sm:$0xff]  ;;  %v6191_v10 = vld [vmem:[#allocation77_spill] sm:$0xff] }
 0x456   :  { %2037 = vmatpush1.bf16.msra.mxu0 %v6181_v40  ;;  %2078 = vmatpush1.bf16.msra.mxu1 %v6182_v49  ;;  %v6192_v40 = vld [vmem:[#allocation78_spill] sm:$0xff]  ;;  %v6193_v49 = vld [vmem:[#allocation79_spill] sm:$0xff] }
 0x457   :  { %2038 = vmatprep.subr.bf16.mxu0 %v6183_v42  ;;  %2079 = vmatprep.subr.bf16.mxu1 %v6184_v51  ;;  %v6194_v42 = vld [vmem:[#allocation80_spill] sm:$0xff]  ;;  %v6195_v51 = vld [vmem:[#allocation81_spill] sm:$0xff] }
 0x45a   :  { %2039 = vmatpush1.bf16.msra.mxu0 %v6185_v48  ;;  %2080 = vmatpush1.bf16.msra.mxu1 %v6186_v57  ;;  %v6196_v48 = vld [vmem:[#allocation82_spill] sm:$0xff]  ;;  %v6197_v57 = vld [vmem:[#allocation83_spill] sm:$0xff] }
 0x45b   :  { %2040 = vmatprep.subr.bf16.mxu0 %v6187_v50  ;;  %2081 = vmatprep.subr.bf16.mxu1 %v6188_v36  ;;  %v6198_v50 = vld [vmem:[#allocation84_spill] sm:$0xff]  ;;  %v6199_v36 = vld [vmem:[#allocation85_spill] sm:$0xff] }
 0x45e   :  { %2041 = vmatpush1.bf16.msra.mxu0 %v6189_v43  ;;  %2082 = vmatpush1.bf16.msra.mxu1 %v6190_v7  ;;  %v6200_v43 = vld [vmem:[#allocation86_spill] sm:$0xff]  ;;  %v6201_v7 = vld [vmem:[#allocation89_spill] sm:$0xff] }
 0x45f   :  { %2042 = vmatprep.subr.bf16.mxu0 %v6191_v10  ;;  %2083 = vmatprep.subr.bf16.mxu1 %v6192_v40  ;;  %v6202_v10 = vld [vmem:[#allocation161_spill] sm:$0xff]  ;;  %v6203_v40 = vld [vmem:[#allocation95_spill] sm:$0xff] }
 0x460   :  { %v373_v29 = vadd.f32 %v6202_v10, %v6201_v7 }
 0x462   :  { %2043 = vmatpush1.bf16.msra.mxu0 %v6193_v49  ;;  %2084 = vmatpush1.bf16.msra.mxu1 %v6194_v42  ;;  %v446_v49 = vadd.f32 %v6204_v27, %v6203_v40  ;;  %v6206_v42 = vld [vmem:[#allocation163_spill] sm:$0xff] }
 0x463   :  { %2044 = vmatprep.subr.bf16.mxu0 %v6195_v51  ;;  %2085 = vmatprep.subr.bf16.mxu1 %v6196_v48  ;;  %v375_v0 = vadd.f32 %v6206_v42, %v6205_v28  ;;  %v6207_v51 = vld [vmem:[#allocation165_spill] sm:$0xff] }
 0x464   :  { %v448_v48 = vadd.f32 %v6207_v51, %v6005_v19 }
 0x466   :  { %2045 = vmatpush1.bf16.msra.mxu0 %v6197_v57  ;;  %2086 = vmatpush1.bf16.msra.mxu1 %v6198_v50 }
 0x467   :  { %2096 = vmatprep.subr.bf16.mxu0 %v6199_v36  ;;  %2137 = vmatprep.subr.bf16.mxu1 %v6200_v43 }
 0x4bc   :  { %v1821_v41 = vpop.f32.mrb[32].mxu0  ;;  %v1862_v57 = vpop.f32.mrb[32].mxu1 }
 0x4bd   :  { %v1984_v3 = vadd.f32 %v1821_v41, %v373_v29  ;;  %v1986_v50 = vadd.f32 %v1862_v57, %v446_v49  ;;  %v1823_v53 = vpop.f32.mrb[33].mxu0  ;;  %v1864_v36 = vpop.f32.mrb[33].mxu1 }
 0x4be   :  { %v1985_v4 = vadd.f32 %v1823_v53, %v375_v0  ;;  %v1987_v43 = vadd.f32 %v1864_v36, %v448_v48  ;;  %v1825_v23 = vpop.f32.mrb[34].mxu0  ;;  %v1866_v61 = vpop.f32.mrb[34].mxu1 }
 0x4bf   :  { %v3347_v10 = vmul.f32 -1.442695, %v1984_v3  ;;  %v1826_v7 = vpop.f32.mrb[35].mxu0  ;;  %v1867_v21 = vpop.f32.mrb[35].mxu1 }
 0x4c0   :  { %v3348_v27 = vmul.f32 -1.442695, %v1985_v4 }
 0x4c1   :  { %3524 = vpow2.f32 %v3347_v10 }
 0x4c2   :  { %3526 = vpow2.f32 %v3348_v27  ;;  %v3349_v27 = vmul.f32 -1.442695, %v1987_v43 }
 0x4c3   :  { %3528 = vtanh.f32 %v1986_v50 }
 0x4cb   :  { %v3525_v42 = vpop.eup %3524 }
 0x4cc   :  { %v3527_v28 = vpop.eup %3526  ;;  %v1991_v40 = vadd.f32 1.0, %v3525_v42 }
 0x4cd   :  { %v1997_v51 = vadd.f32 1.0, %v3527_v28  ;;  %v3529_v49 = vpop.eup %3528 }
 0x4ce   :  { %3530 = vrcp.f32 %v1991_v40 }
 0x4cf   :  { %3532 = vrcp.f32 %v1997_v51 }
 0x4d8   :  { %v3531_v57 = vpop.eup %3530 }
 0x4d9   :  { %v3533_v29 = vpop.eup %3532  ;;  %v2008_v53 = vmul.f32 %v3531_v57, %v3529_v49 }
 0x4da   :  { %v2007_v36 = vmul.f32 %v3533_v29, %v4641_v56 }
 0x4dc   :  { %v4795_v48 = vadd.f32 %v2008_v53, %v2007_v36 }
 0x4fc   :  { %v1903_v0 = vpop.f32.mrb[36].mxu0  ;;  %v1944_v21 = vpop.f32.mrb[36].mxu1 }
 0x4fd   :  { %v1951_v4 = vadd.f32 %v1903_v0, %v6108_v58  ;;  %v1905_v7 = vpop.f32.mrb[37].mxu0  ;;  %v1946_v61 = vpop.f32.mrb[37].mxu1  ;;  %v1953_v51 = vadd.f32 %v1944_v21, %v4491_v35 }
 0x4fe   :  { %v1952_v23 = vadd.f32 %v1905_v7, %v4480_v52  ;;  %v1907_v50 = vpop.f32.mrb[38].mxu0  ;;  %v1948_v28 = vpop.f32.mrb[38].mxu1  ;;  %v1954_v56 = vadd.f32 %v1946_v61, %v4486_v39 }
 0x4ff   :  { %v3344_v40 = vmul.f32 -1.442695, %v1951_v4  ;;  %v1908_v3 = vpop.f32.mrb[39].mxu0  ;;  %v1949_v41 = vpop.f32.mrb[39].mxu1 }
 0x500   :  { %v3345_v10 = vmul.f32 -1.442695, %v1952_v23  ;;  %v3346_v42 = vmul.f32 -1.442695, %v1954_v56 }
 0x501   :  { %3534 = vpow2.f32 %v3344_v40 }
 0x502   :  { %3536 = vpow2.f32 %v3345_v10 }
 0x503   :  { %3538 = vpow2.f32 %v3349_v27 }
 0x504   :  { %3540 = vpow2.f32 %v3346_v42 }
 0x505   :  { %3542 = vtanh.f32 %v1953_v51 }
 0x50b   :  { %v3535_v49 = vpop.eup %3534 }
 0x50c   :  { %v3537_v57 = vpop.eup %3536  ;;  %v1958_v29 = vadd.f32 1.0, %v3535_v49  ;;  %v6209_v49 = vld [vmem:[#allocation112_spill] sm:$0xff] }
 0x50d   :  { %v1964_v53 = vadd.f32 1.0, %v3537_v57  ;;  %v3539_v36 = vpop.eup %3538  ;;  %v6210_v57 = vld [vmem:[#allocation113_spill] sm:$0xff] }
 0x50e   :  { %3544 = vrcp.f32 %v1958_v29  ;;  %v3541_v0 = vpop.eup %3540  ;;  %v2004_v23 = vadd.f32 1.0, %v3539_v36  ;;  %v6211_v29 = vld [vmem:[#allocation114_spill] sm:$0xff]  ;;  %v6213_v36 = vld [vmem:[#allocation116_spill] sm:$0xff] }
 0x50f   :  { %3546 = vrcp.f32 %v1964_v53  ;;  %v3543_v4 = vpop.eup %3542  ;;  %v1971_v43 = vadd.f32 1.0, %v3541_v0  ;;  %v6212_v53 = vld [vmem:[#allocation115_spill] sm:$0xff]  ;;  %v6214_v0 = vld [vmem:[#allocation117_spill] sm:$0xff] }
 0x510   :  { %3548 = vtanh.f32 %v4795_v48 }
 0x511   :  { %3550 = vrcp.f32 %v2004_v23  ;;  %v6217_v23 = vld [vmem:[#allocation120_spill] sm:$0xff] }
 0x512   :  { %3552 = vrcp.f32 %v1971_v43  ;;  %v6220_v43 = vld [vmem:[#allocation126_spill] sm:$0xff] }
 0x518   :  { %v3545_v7 = vpop.eup %3544 }
 0x519   :  { %v3547_v50 = vpop.eup %3546  ;;  %v1975_v61 = vmul.f32 %v3545_v7, %v3543_v4  ;;  %v6215_v4 = vld [vmem:[#allocation118_spill] sm:$0xff]  ;;  %v6216_v7 = vld [vmem:[#allocation119_spill] sm:$0xff] }
 0x51a   :  { %v1974_v28 = vmul.f32 %v3547_v50, %v4649_v59  ;;  %v3549_v40 = vpop.eup %3548  ;;  %v6208_v59 = vld [vmem:[#allocation111_spill] sm:$0xff]  ;;  %v6218_v50 = vld [vmem:[#allocation121_spill] sm:$0xff] }
 0x51b   :  { %v3551_v3 = vpop.eup %3550 }
 0x51c   :  { %v4803_v21 = vadd.f32 %v1975_v61, %v1974_v28  ;;  %v3553_v41 = vpop.eup %3552  ;;  %v2011_v56 = vmul.f32 %v3551_v3, %v3549_v40  ;;  %v6219_v61 = vld [vmem:[#allocation125_spill] sm:$0xff]  ;;  %v6222_v40 = vld [vmem:[#allocation130_spill] sm:$0xff] }
 0x51d   :  { %v6221_v28 = vld [vmem:[#allocation129_spill] sm:$0xff]  ;;  %v6223_v3 = vld [vmem:[#allocation146_spill] sm:$0xff] }
 0x51e   :  { %3554 = vtanh.f32 %v4803_v21  ;;  %v4806_v51 = vpack.c.bf16 %v2011_v56, %v2011_v56  ;;  %v6226_v56 = vld [vmem:[#allocation149_spill] sm:$0xff] }
 0x528   :  { %v3555_v10 = vpop.eup %3554 }
 0x529   :  { %v1978_v27 = vmul.f32 %v3555_v10, %v3553_v41  ;;  %v6224_v41 = vld [vmem:[#allocation147_spill] sm:$0xff]  ;;  %v6225_v10 = vld [vmem:[#allocation148_spill] sm:$0xff] }
 0x52b   :  { %v2013_v42 = vpack.c.bf16 %v1978_v27, %v1978_v27  ;;  %v6227_v27 = vld [vmem:[#allocation150_spill] sm:$0xff] }
 0x52d   :  { %2046 = vmatprep.mubr.bf16.mxu0 %v2013_v42  ;;  %2087 = vmatprep.mubr.bf16.mxu1 %v2013_v42 }
 0x52e   :  { %2047 = vmatmul.mubr.bf16.vlgmr.msra.gmra.mrb[40].mxu0 %v4806_v51  ;;  %2088 = vmatmul.mubr.bf16.vlgmr.msra.gmra.mrb[40].mxu1 %v4806_v51 }
 0x52f   :  { %2097 = vmatpush1.bf16.msra.mxu0 %v4112_v37  ;;  %2138 = vmatpush1.bf16.msra.mxu1 %v6014_v54 }
 0x530   :  { %2128 = vmatprep.mubr.bf16.mxu0 %v2013_v42  ;;  %2169 = vmatprep.mubr.bf16.mxu1 %v2013_v42  ;;  %v6228_v42 = vld [vmem:[#allocation151_spill] sm:$0xff] }
 0x531   :  { %2098 = vmatprep.subr.bf16.mxu0 %v6015_v31  ;;  %2139 = vmatprep.subr.bf16.mxu1 %v6016_v20 }
 0x533   :  { %2099 = vmatpush1.bf16.msra.mxu0 %v6017_v45  ;;  %2140 = vmatpush1.bf16.msra.mxu1 %v6018_v44 }
 0x534   :  { %2100 = vmatprep.subr.bf16.mxu0 %v6109_v13  ;;  %2141 = vmatprep.subr.bf16.mxu1 %v6110_v24 }
 0x537   :  { %2101 = vmatpush1.bf16.msra.mxu0 %v6111_v1  ;;  %2142 = vmatpush1.bf16.msra.mxu1 %v6112_v63 }
 0x538   :  { %2102 = vmatprep.subr.bf16.mxu0 %v6113_v62  ;;  %2143 = vmatprep.subr.bf16.mxu1 %v6114_v6 }
 0x53b   :  { %2103 = vmatpush1.bf16.msra.mxu0 %v6115_v14  ;;  %2144 = vmatpush1.bf16.msra.mxu1 %v6116_v30 }
 0x53c   :  { %2104 = vmatprep.subr.bf16.mxu0 %v6117_v32  ;;  %2145 = vmatprep.subr.bf16.mxu1 %v6208_v59 }
 0x53f   :  { %2105 = vmatpush1.bf16.msra.mxu0 %v6209_v49  ;;  %2146 = vmatpush1.bf16.msra.mxu1 %v6210_v57 }
 0x540   :  { %2106 = vmatprep.subr.bf16.mxu0 %v6211_v29  ;;  %2147 = vmatprep.subr.bf16.mxu1 %v6212_v53 }
 0x543   :  { %2107 = vmatpush1.bf16.msra.mxu0 %v6213_v36  ;;  %2148 = vmatpush1.bf16.msra.mxu1 %v6214_v0 }
 0x544   :  { %2108 = vmatprep.subr.bf16.mxu0 %v6215_v4  ;;  %2149 = vmatprep.subr.bf16.mxu1 %v6216_v7 }
 0x547   :  { %2109 = vmatpush1.bf16.msra.mxu0 %v6217_v23  ;;  %2150 = vmatpush1.bf16.msra.mxu1 %v6218_v50 }
 0x548   :  { %2110 = vmatprep.subr.bf16.mxu0 %v6129_v8  ;;  %2151 = vmatprep.subr.bf16.mxu1 %v6130_v17 }
 0x54b   :  { %2111 = vmatpush1.bf16.msra.mxu0 %v6131_v16  ;;  %2152 = vmatpush1.bf16.msra.mxu1 %v6219_v61 }
 0x54c   :  { %2112 = vmatprep.subr.bf16.mxu0 %v6220_v43  ;;  %2153 = vmatprep.subr.bf16.mxu1 %v6134_v18 }
 0x54f   :  { %2113 = vmatpush1.bf16.msra.mxu0 %v6135_v9  ;;  %2154 = vmatpush1.bf16.msra.mxu1 %v6221_v28 }
 0x550   :  { %2114 = vmatprep.subr.bf16.mxu0 %v6222_v40  ;;  %2155 = vmatprep.subr.bf16.mxu1 %v6138_v26 }
 0x553   :  { %2115 = vmatpush1.bf16.msra.mxu0 %v6139_v2  ;;  %2156 = vmatpush1.bf16.msra.mxu1 %v6050_v60 }
 0x554   :  { %2116 = vmatprep.subr.bf16.mxu0 %v6051_v12  ;;  %2157 = vmatprep.subr.bf16.mxu1 %v6052_v33 }
 0x557   :  { %2117 = vmatpush1.bf16.msra.mxu0 %v6140_v22  ;;  %2158 = vmatpush1.bf16.msra.mxu1 %v6141_v15 }
 0x558   :  { %2118 = vmatprep.subr.bf16.mxu0 %v6055_v46  ;;  %2159 = vmatprep.subr.bf16.mxu1 %v6056_v55  ;;  %v6305_v55 = vld [vmem:[#allocation90_spill] sm:$0xff] }
 0x55b   :  { %2119 = vmatpush1.bf16.msra.mxu0 %v6142_v34  ;;  %2160 = vmatpush1.bf16.msra.mxu1 %v6143_v25  ;;  %v6229_v25 = vld [vmem:[#allocation152_spill] sm:$0xff] }
 0x55c   :  { %2120 = vmatprep.subr.bf16.mxu0 %v6059_v11  ;;  %2161 = vmatprep.subr.bf16.mxu1 %v6060_v5  ;;  %v6230_v11 = vld [vmem:[#allocation153_spill] sm:$0xff]  ;;  %v6231_v5 = vld [vmem:[#allocation154_spill] sm:$0xff]  ;;  %v6304_v34 = vld [vmem:[#allocation168_spill] sm:$0xff] }
 0x55f   :  { %2121 = vmatpush1.bf16.msra.mxu0 %v4300_v38  ;;  %2162 = vmatpush1.bf16.msra.mxu1 %v4302_v47  ;;  %v6232_v38 = vld [vmem:[#allocation155_spill] sm:$0xff]  ;;  %v6233_v47 = vld [vmem:[#allocation157_spill] sm:$0xff] }
 0x560   :  { %2122 = vmatprep.subr.bf16.mxu0 %v6223_v3  ;;  %2163 = vmatprep.subr.bf16.mxu1 %v6224_v41  ;;  %v6234_v3 = vld [vmem:[#allocation158_spill] sm:$0xff]  ;;  %v6235_v41 = vld [vmem:[#allocation21_spill] sm:$0xff] }
 0x563   :  { %2123 = vmatpush1.bf16.msra.mxu0 %v6225_v10  ;;  %2164 = vmatpush1.bf16.msra.mxu1 %v6226_v56  ;;  %v6236_v10 = vld [vmem:[#allocation24_spill] sm:$0xff] }
 0x564   :  { %2124 = vmatprep.subr.bf16.mxu0 %v6227_v27  ;;  %2165 = vmatprep.subr.bf16.mxu1 %v6228_v42  ;;  %v6237_v42 = vld [vmem:[#allocation22_spill] sm:$0xff] }
 0x565   :  { %v6246_v27 = vld [vmem:[#allocation34_spill] sm:$0xff] }
 0x567   :  { %2125 = vmatpush1.bf16.msra.mxu0 %v6229_v25  ;;  %2166 = vmatpush1.bf16.msra.mxu1 %v6230_v11  ;;  %v6238_v25 = vld [vmem:[#allocation26_spill] sm:$0xff]  ;;  %v6239_v11 = vld [vmem:[#allocation23_spill] sm:$0xff] }
 0x568   :  { %2126 = vmatprep.subr.bf16.mxu0 %v6231_v5  ;;  %2167 = vmatprep.subr.bf16.mxu1 %v6232_v38  ;;  %v6240_v5 = vld [vmem:[#allocation28_spill] sm:$0xff]  ;;  %v6241_v38 = vld [vmem:[#allocation25_spill] sm:$0xff] }
 0x56b   :  { %2127 = vmatpush1.bf16.msra.mxu0 %v6233_v47  ;;  %2168 = vmatpush1.bf16.msra.mxu1 %v6234_v3  ;;  %v6242_v47 = vld [vmem:[#allocation30_spill] sm:$0xff]  ;;  %v6243_v3 = vld [vmem:[#allocation27_spill] sm:$0xff] }
 0x56c   :  { %2241 = vmatprep.subr.bf16.mxu0 %v6235_v41  ;;  %2282 = vmatprep.subr.bf16.mxu1 %v6236_v10  ;;  %v6244_v41 = vld [vmem:[#allocation32_spill] sm:$0xff]  ;;  %v6245_v10 = vld [vmem:[#allocation29_spill] sm:$0xff] }
 0x56e   :  { %2129 = vmatmul.mubr.bf16.vlgmr.msra.gmra.mrb[44].mxu0 %v4806_v51  ;;  %2170 = vmatmul.mubr.bf16.vlgmr.msra.gmra.mrb[44].mxu1 %v4806_v51  ;;  %v6247_v51 = vld [vmem:[#allocation31_spill] sm:$0xff] }
 0x56f   :  { %2242 = vmatpush1.bf16.msra.mxu0 %v6237_v42  ;;  %2283 = vmatpush1.bf16.msra.mxu1 %v6238_v25  ;;  %v6248_v42 = vld [vmem:[#allocation35_spill] sm:$0xff]  ;;  %v6249_v25 = vld [vmem:[#allocation33_spill] sm:$0xff] }
 0x570   :  { %2243 = vmatprep.subr.bf16.mxu0 %v6239_v11  ;;  %2284 = vmatprep.subr.bf16.mxu1 %v6240_v5  ;;  %v6250_v11 = vld [vmem:[#allocation36_spill] sm:$0xff]  ;;  %v6251_v5 = vld [vmem:[#allocation37_spill] sm:$0xff] }
 0x573   :  { %2244 = vmatpush1.bf16.msra.mxu0 %v6241_v38  ;;  %2285 = vmatpush1.bf16.msra.mxu1 %v6242_v47  ;;  %v6252_v38 = vld [vmem:[#allocation38_spill] sm:$0xff]  ;;  %v6253_v47 = vld [vmem:[#allocation39_spill] sm:$0xff] }
 0x574   :  { %2245 = vmatprep.subr.bf16.mxu0 %v6243_v3  ;;  %2286 = vmatprep.subr.bf16.mxu1 %v6244_v41  ;;  %v6254_v3 = vld [vmem:[#allocation40_spill] sm:$0xff]  ;;  %v6255_v41 = vld [vmem:[#allocation41_spill] sm:$0xff] }
 0x577   :  { %2246 = vmatpush1.bf16.msra.mxu0 %v6245_v10  ;;  %2287 = vmatpush1.bf16.msra.mxu1 %v6246_v27  ;;  %v6256_v10 = vld [vmem:[#allocation42_spill] sm:$0xff]  ;;  %v6257_v27 = vld [vmem:[#allocation43_spill] sm:$0xff] }
 0x578   :  { %2247 = vmatprep.subr.bf16.mxu0 %v6247_v51  ;;  %2288 = vmatprep.subr.bf16.mxu1 %v6248_v42  ;;  %v6258_v51 = vld [vmem:[#allocation44_spill] sm:$0xff]  ;;  %v6259_v42 = vld [vmem:[#allocation45_spill] sm:$0xff] }
 0x57b   :  { %2248 = vmatpush1.bf16.msra.mxu0 %v6249_v25  ;;  %2289 = vmatpush1.bf16.msra.mxu1 %v6250_v11  ;;  %v6260_v25 = vld [vmem:[#allocation46_spill] sm:$0xff]  ;;  %v6261_v11 = vld [vmem:[#allocation47_spill] sm:$0xff] }
 0x57c   :  { %2249 = vmatprep.subr.bf16.mxu0 %v6251_v5  ;;  %2290 = vmatprep.subr.bf16.mxu1 %v6252_v38  ;;  %v6262_v5 = vld [vmem:[#allocation48_spill] sm:$0xff]  ;;  %v6263_v38 = vld [vmem:[#allocation49_spill] sm:$0xff] }
 0x57f   :  { %2250 = vmatpush1.bf16.msra.mxu0 %v6253_v47  ;;  %2291 = vmatpush1.bf16.msra.mxu1 %v6254_v3  ;;  %v6264_v47 = vld [vmem:[#allocation50_spill] sm:$0xff]  ;;  %v6265_v3 = vld [vmem:[#allocation51_spill] sm:$0xff] }
 0x580   :  { %2251 = vmatprep.subr.bf16.mxu0 %v6255_v41  ;;  %2292 = vmatprep.subr.bf16.mxu1 %v6256_v10  ;;  %v6266_v41 = vld [vmem:[#allocation52_spill] sm:$0xff]  ;;  %v6267_v10 = vld [vmem:[#allocation53_spill] sm:$0xff] }
 0x583   :  { %2252 = vmatpush1.bf16.msra.mxu0 %v6257_v27  ;;  %2293 = vmatpush1.bf16.msra.mxu1 %v6258_v51  ;;  %v6268_v27 = vld [vmem:[#allocation54_spill] sm:$0xff]  ;;  %v6269_v51 = vld [vmem:[#allocation55_spill] sm:$0xff] }
 0x584   :  { %2253 = vmatprep.subr.bf16.mxu0 %v6259_v42  ;;  %2294 = vmatprep.subr.bf16.mxu1 %v6260_v25  ;;  %v6270_v42 = vld [vmem:[#allocation56_spill] sm:$0xff]  ;;  %v6271_v25 = vld [vmem:[#allocation57_spill] sm:$0xff] }
 0x587   :  { %2254 = vmatpush1.bf16.msra.mxu0 %v6261_v11  ;;  %2295 = vmatpush1.bf16.msra.mxu1 %v6262_v5  ;;  %v6272_v11 = vld [vmem:[#allocation58_spill] sm:$0xff]  ;;  %v6273_v5 = vld [vmem:[#allocation59_spill] sm:$0xff] }
 0x588   :  { %2255 = vmatprep.subr.bf16.mxu0 %v6263_v38  ;;  %2296 = vmatprep.subr.bf16.mxu1 %v6264_v47  ;;  %v6274_v38 = vld [vmem:[#allocation60_spill] sm:$0xff]  ;;  %v6275_v47 = vld [vmem:[#allocation61_spill] sm:$0xff] }
 0x58b   :  { %2256 = vmatpush1.bf16.msra.mxu0 %v6265_v3  ;;  %2297 = vmatpush1.bf16.msra.mxu1 %v6266_v41  ;;  %v6276_v3 = vld [vmem:[#allocation62_spill] sm:$0xff]  ;;  %v6277_v41 = vld [vmem:[#allocation63_spill] sm:$0xff] }
 0x58c   :  { %2257 = vmatprep.subr.bf16.mxu0 %v6267_v10  ;;  %2298 = vmatprep.subr.bf16.mxu1 %v6268_v27  ;;  %v6278_v10 = vld [vmem:[#allocation64_spill] sm:$0xff]  ;;  %v6279_v27 = vld [vmem:[#allocation65_spill] sm:$0xff] }
 0x58f   :  { %2258 = vmatpush1.bf16.msra.mxu0 %v6269_v51  ;;  %2299 = vmatpush1.bf16.msra.mxu1 %v6270_v42  ;;  %v6280_v51 = vld [vmem:[#allocation66_spill] sm:$0xff]  ;;  %v6281_v42 = vld [vmem:[#allocation67_spill] sm:$0xff] }
 0x590   :  { %2259 = vmatprep.subr.bf16.mxu0 %v6271_v25  ;;  %2300 = vmatprep.subr.bf16.mxu1 %v6272_v11  ;;  %v6282_v25 = vld [vmem:[#allocation68_spill] sm:$0xff]  ;;  %v6283_v11 = vld [vmem:[#allocation69_spill] sm:$0xff] }
 0x593   :  { %2260 = vmatpush1.bf16.msra.mxu0 %v6273_v5  ;;  %2301 = vmatpush1.bf16.msra.mxu1 %v6274_v38  ;;  %v6284_v5 = vld [vmem:[#allocation70_spill] sm:$0xff]  ;;  %v6285_v38 = vld [vmem:[#allocation71_spill] sm:$0xff] }
 0x594   :  { %2261 = vmatprep.subr.bf16.mxu0 %v6275_v47  ;;  %2302 = vmatprep.subr.bf16.mxu1 %v6276_v3  ;;  %v6286_v47 = vld [vmem:[#allocation72_spill] sm:$0xff]  ;;  %v6287_v3 = vld [vmem:[#allocation73_spill] sm:$0xff] }
 0x597   :  { %2262 = vmatpush1.bf16.msra.mxu0 %v6277_v41  ;;  %2303 = vmatpush1.bf16.msra.mxu1 %v6278_v10  ;;  %v6288_v41 = vld [vmem:[#allocation75_spill] sm:$0xff]  ;;  %v6289_v10 = vld [vmem:[#allocation74_spill] sm:$0xff] }
 0x598   :  { %2263 = vmatprep.subr.bf16.mxu0 %v6279_v27  ;;  %2304 = vmatprep.subr.bf16.mxu1 %v6280_v51  ;;  %v6290_v27 = vld [vmem:[#allocation76_spill] sm:$0xff]  ;;  %v6291_v51 = vld [vmem:[#allocation77_spill] sm:$0xff] }
 0x59b   :  { %2264 = vmatpush1.bf16.msra.mxu0 %v6281_v42  ;;  %2305 = vmatpush1.bf16.msra.mxu1 %v6282_v25  ;;  %v6292_v42 = vld [vmem:[#allocation78_spill] sm:$0xff]  ;;  %v6293_v25 = vld [vmem:[#allocation79_spill] sm:$0xff] }
 0x59c   :  { %2265 = vmatprep.subr.bf16.mxu0 %v6283_v11  ;;  %2306 = vmatprep.subr.bf16.mxu1 %v6284_v5  ;;  %v6294_v11 = vld [vmem:[#allocation80_spill] sm:$0xff]  ;;  %v6295_v5 = vld [vmem:[#allocation81_spill] sm:$0xff] }
 0x59f   :  { %2266 = vmatpush1.bf16.msra.mxu0 %v6285_v38  ;;  %2307 = vmatpush1.bf16.msra.mxu1 %v6286_v47  ;;  %v6296_v38 = vld [vmem:[#allocation82_spill] sm:$0xff]  ;;  %v6297_v47 = vld [vmem:[#allocation83_spill] sm:$0xff] }
 0x5a0   :  { %2267 = vmatprep.subr.bf16.mxu0 %v6287_v3  ;;  %2308 = vmatprep.subr.bf16.mxu1 %v6288_v41  ;;  %v6298_v3 = vld [vmem:[#allocation84_spill] sm:$0xff]  ;;  %v6299_v41 = vld [vmem:[#allocation85_spill] sm:$0xff] }
 0x5a3   :  { %2268 = vmatpush1.bf16.msra.mxu0 %v6289_v10  ;;  %2309 = vmatpush1.bf16.msra.mxu1 %v6290_v27  ;;  %v6300_v10 = vld [vmem:[#allocation86_spill] sm:$0xff]  ;;  %v6301_v27 = vld [vmem:[#allocation89_spill] sm:$0xff] }
 0x5a4   :  { %2269 = vmatprep.subr.bf16.mxu0 %v6291_v51  ;;  %2310 = vmatprep.subr.bf16.mxu1 %v6292_v42  ;;  %v6302_v51 = vld [vmem:[#allocation166_spill] sm:$0xff]  ;;  %v6303_v42 = vld [vmem:[#allocation95_spill] sm:$0xff] }
 0x5a5   :  { %v379_v56 = vadd.f32 %v6302_v51, %v6301_v27 }
 0x5a7   :  { %2270 = vmatpush1.bf16.msra.mxu0 %v6293_v25  ;;  %2311 = vmatpush1.bf16.msra.mxu1 %v6294_v11  ;;  %v452_v25 = vadd.f32 %v6304_v34, %v6303_v42  ;;  %v6306_v11 = vld [vmem:[#allocation167_spill] sm:$0xff] }
 0x5a8   :  { %2271 = vmatprep.subr.bf16.mxu0 %v6295_v5  ;;  %2312 = vmatprep.subr.bf16.mxu1 %v6296_v38  ;;  %v381_v46 = vadd.f32 %v6306_v11, %v6305_v55  ;;  %v6307_v5 = vld [vmem:[#allocation170_spill] sm:$0xff] }
 0x5a9   :  { %v454_v38 = vadd.f32 %v6307_v5, %v6005_v19 }
 0x5ab   :  { %2272 = vmatpush1.bf16.msra.mxu0 %v6297_v47  ;;  %2313 = vmatpush1.bf16.msra.mxu1 %v6298_v3 }
 0x5ac   :  { %2323 = vmatprep.subr.bf16.mxu0 %v6299_v41  ;;  %2364 = vmatprep.subr.bf16.mxu1 %v6300_v10 }
 0x601   :  { %v2048_v15 = vpop.f32.mrb[40].mxu0  ;;  %v2089_v47 = vpop.f32.mrb[40].mxu1 }
 0x602   :  { %v2211_v22 = vadd.f32 %v2048_v15, %v379_v56  ;;  %v2213_v3 = vadd.f32 %v2089_v47, %v452_v25  ;;  %v2050_v33 = vpop.f32.mrb[41].mxu0  ;;  %v2091_v41 = vpop.f32.mrb[41].mxu1 }
 0x603   :  { %v2212_v12 = vadd.f32 %v2050_v33, %v381_v46  ;;  %v2214_v10 = vadd.f32 %v2091_v41, %v454_v38  ;;  %v2052_v60 = vpop.f32.mrb[42].mxu0  ;;  %v2093_v2 = vpop.f32.mrb[42].mxu1 }
 0x604   :  { %v3353_v51 = vmul.f32 -1.442695, %v2211_v22  ;;  %v2053_v27 = vpop.f32.mrb[43].mxu0  ;;  %v2094_v26 = vpop.f32.mrb[43].mxu1 }
 0x605   :  { %v3354_v34 = vmul.f32 -1.442695, %v2212_v12 }
 0x606   :  { %3556 = vpow2.f32 %v3353_v51 }
 0x607   :  { %3558 = vpow2.f32 %v3354_v34  ;;  %v3355_v34 = vmul.f32 -1.442695, %v2214_v10 }
 0x608   :  { %3560 = vtanh.f32 %v2213_v3 }
 0x610   :  { %v3557_v11 = vpop.eup %3556 }
 0x611   :  { %v3559_v55 = vpop.eup %3558  ;;  %v2218_v42 = vadd.f32 1.0, %v3557_v11 }
 0x612   :  { %v2224_v5 = vadd.f32 1.0, %v3559_v55  ;;  %v3561_v47 = vpop.eup %3560 }
 0x613   :  { %3562 = vrcp.f32 %v2218_v42 }
 0x614   :  { %3564 = vrcp.f32 %v2224_v5 }
 0x61d   :  { %v3563_v15 = vpop.eup %3562 }
 0x61e   :  { %v3565_v25 = vpop.eup %3564  ;;  %v2235_v33 = vmul.f32 %v3563_v15, %v3561_v47 }
 0x61f   :  { %v2234_v38 = vmul.f32 %v3565_v25, %v4795_v48 }
 0x621   :  { %v4949_v46 = vadd.f32 %v2235_v33, %v2234_v38 }
 0x641   :  { %v2130_v60 = vpop.f32.mrb[44].mxu0  ;;  %v2171_v22 = vpop.f32.mrb[44].mxu1 }
 0x642   :  { %v2178_v12 = vadd.f32 %v2130_v60, %v6108_v58  ;;  %v2132_v26 = vpop.f32.mrb[45].mxu0  ;;  %v2173_v2 = vpop.f32.mrb[45].mxu1  ;;  %v2180_v5 = vadd.f32 %v2171_v22, %v4491_v35 }
 0x643   :  { %v2179_v41 = vadd.f32 %v2132_v26, %v4480_v52  ;;  %v2134_v3 = vpop.f32.mrb[46].mxu0  ;;  %v2175_v55 = vpop.f32.mrb[46].mxu1  ;;  %v2181_v48 = vadd.f32 %v2173_v2, %v4486_v39 }
 0x644   :  { %v3350_v56 = vmul.f32 -1.442695, %v2178_v12  ;;  %v2135_v27 = vpop.f32.mrb[47].mxu0  ;;  %v2176_v42 = vpop.f32.mrb[47].mxu1 }
 0x645   :  { %v3351_v51 = vmul.f32 -1.442695, %v2179_v41  ;;  %v3352_v11 = vmul.f32 -1.442695, %v2181_v48 }
 0x646   :  { %3566 = vpow2.f32 %v3350_v56 }
 0x647   :  { %3568 = vpow2.f32 %v3351_v51 }
 0x648   :  { %3570 = vpow2.f32 %v3355_v34 }
 0x649   :  { %3572 = vpow2.f32 %v3352_v11 }
 0x64a   :  { %3574 = vtanh.f32 %v2180_v5 }
 0x650   :  { %v3567_v47 = vpop.eup %3566 }
 0x651   :  { %v3569_v15 = vpop.eup %3568  ;;  %v2185_v25 = vadd.f32 1.0, %v3567_v47  ;;  %v6309_v47 = vld [vmem:[#allocation132_spill] sm:$0xff] }
 0x652   :  { %v2191_v33 = vadd.f32 1.0, %v3569_v15  ;;  %v3571_v38 = vpop.eup %3570  ;;  %v6310_v15 = vld [vmem:[#allocation133_spill] sm:$0xff] }
 0x653   :  { %3576 = vrcp.f32 %v2185_v25  ;;  %v3573_v60 = vpop.eup %3572  ;;  %v2231_v41 = vadd.f32 1.0, %v3571_v38  ;;  %v6311_v25 = vld [vmem:[#allocation134_spill] sm:$0xff]  ;;  %v6313_v38 = vld [vmem:[#allocation136_spill] sm:$0xff] }
 0x654   :  { %3578 = vrcp.f32 %v2191_v33  ;;  %v3575_v12 = vpop.eup %3574  ;;  %v2198_v10 = vadd.f32 1.0, %v3573_v60  ;;  %v6312_v33 = vld [vmem:[#allocation135_spill] sm:$0xff]  ;;  %v6314_v60 = vld [vmem:[#allocation137_spill] sm:$0xff] }
 0x655   :  { %3580 = vtanh.f32 %v4949_v46 }
 0x656   :  { %3582 = vrcp.f32 %v2231_v41  ;;  %v6317_v41 = vld [vmem:[#allocation140_spill] sm:$0xff] }
 0x657   :  { %3584 = vrcp.f32 %v2198_v10  ;;  %v6320_v10 = vld [vmem:[#allocation143_spill] sm:$0xff] }
 0x65d   :  { %v3577_v26 = vpop.eup %3576 }
 0x65e   :  { %v3579_v3 = vpop.eup %3578  ;;  %v2202_v2 = vmul.f32 %v3577_v26, %v3575_v12  ;;  %v6315_v12 = vld [vmem:[#allocation138_spill] sm:$0xff]  ;;  %v6316_v26 = vld [vmem:[#allocation139_spill] sm:$0xff] }
 0x65f   :  { %v2201_v55 = vmul.f32 %v3579_v3, %v4803_v21  ;;  %v3581_v56 = vpop.eup %3580  ;;  %v6308_v21 = vld [vmem:[#allocation131_spill] sm:$0xff]  ;;  %v6318_v3 = vld [vmem:[#allocation141_spill] sm:$0xff] }
 0x660   :  { %v3583_v27 = vpop.eup %3582 }
 0x661   :  { %v4957_v22 = vadd.f32 %v2202_v2, %v2201_v55  ;;  %v3585_v42 = vpop.eup %3584  ;;  %v2238_v48 = vmul.f32 %v3583_v27, %v3581_v56  ;;  %v6319_v2 = vld [vmem:[#allocation142_spill] sm:$0xff]  ;;  %v6321_v55 = vld [vmem:[#allocation144_spill] sm:$0xff]  ;;  %v6322_v56 = vld [vmem:[#allocation145_spill] sm:$0xff] }
 0x662   :  { %v6323_v27 = vld [vmem:[#allocation146_spill] sm:$0xff] }
 0x663   :  { %3586 = vtanh.f32 %v4957_v22  ;;  %v4960_v5 = vpack.c.bf16 %v2238_v48, %v2238_v48  ;;  %v6326_v48 = vld [vmem:[#allocation149_spill] sm:$0xff] }
 0x66d   :  { %v3587_v51 = vpop.eup %3586 }
 0x66e   :  { %v2205_v34 = vmul.f32 %v3587_v51, %v3585_v42  ;;  %v6324_v42 = vld [vmem:[#allocation147_spill] sm:$0xff]  ;;  %v6325_v51 = vld [vmem:[#allocation148_spill] sm:$0xff] }
 0x670   :  { %v2240_v11 = vpack.c.bf16 %v2205_v34, %v2205_v34  ;;  %v6327_v34 = vld [vmem:[#allocation150_spill] sm:$0xff] }
 0x672   :  { %2273 = vmatprep.mubr.bf16.mxu0 %v2240_v11  ;;  %2314 = vmatprep.mubr.bf16.mxu1 %v2240_v11 }
 0x673   :  { %2274 = vmatmul.mubr.bf16.vlgmr.msra.gmra.mrb[48].mxu0 %v4960_v5  ;;  %2315 = vmatmul.mubr.bf16.vlgmr.msra.gmra.mrb[48].mxu1 %v4960_v5 }
 0x674   :  { %2324 = vmatpush1.bf16.msra.mxu0 %v4112_v37  ;;  %2365 = vmatpush1.bf16.msra.mxu1 %v6014_v54 }
 0x675   :  { %2355 = vmatprep.mubr.bf16.mxu0 %v2240_v11  ;;  %2396 = vmatprep.mubr.bf16.mxu1 %v2240_v11  ;;  %v6328_v11 = vld [vmem:[#allocation151_spill] sm:$0xff] }
 0x676   :  { %2325 = vmatprep.subr.bf16.mxu0 %v6015_v31  ;;  %2366 = vmatprep.subr.bf16.mxu1 %v6016_v20 }
 0x678   :  { %2326 = vmatpush1.bf16.msra.mxu0 %v6017_v45  ;;  %2367 = vmatpush1.bf16.msra.mxu1 %v6018_v44 }
 0x679   :  { %2327 = vmatprep.subr.bf16.mxu0 %v6109_v13  ;;  %2368 = vmatprep.subr.bf16.mxu1 %v6110_v24 }
 0x67c   :  { %2328 = vmatpush1.bf16.msra.mxu0 %v6111_v1  ;;  %2369 = vmatpush1.bf16.msra.mxu1 %v6112_v63 }
 0x67d   :  { %2329 = vmatprep.subr.bf16.mxu0 %v6113_v62  ;;  %2370 = vmatprep.subr.bf16.mxu1 %v6114_v6 }
 0x680   :  { %2330 = vmatpush1.bf16.msra.mxu0 %v6115_v14  ;;  %2371 = vmatpush1.bf16.msra.mxu1 %v6116_v30 }
 0x681   :  { %2331 = vmatprep.subr.bf16.mxu0 %v6117_v32  ;;  %2372 = vmatprep.subr.bf16.mxu1 %v6208_v59 }
 0x684   :  { %2332 = vmatpush1.bf16.msra.mxu0 %v6209_v49  ;;  %2373 = vmatpush1.bf16.msra.mxu1 %v6210_v57 }
 0x685   :  { %2333 = vmatprep.subr.bf16.mxu0 %v6211_v29  ;;  %2374 = vmatprep.subr.bf16.mxu1 %v6212_v53 }
 0x688   :  { %2334 = vmatpush1.bf16.msra.mxu0 %v6213_v36  ;;  %2375 = vmatpush1.bf16.msra.mxu1 %v6214_v0 }
 0x689   :  { %2335 = vmatprep.subr.bf16.mxu0 %v6215_v4  ;;  %2376 = vmatprep.subr.bf16.mxu1 %v6216_v7 }
 0x68c   :  { %2336 = vmatpush1.bf16.msra.mxu0 %v6217_v23  ;;  %2377 = vmatpush1.bf16.msra.mxu1 %v6218_v50 }
 0x68d   :  { %2337 = vmatprep.subr.bf16.mxu0 %v6129_v8  ;;  %2378 = vmatprep.subr.bf16.mxu1 %v6130_v17 }
 0x690   :  { %2338 = vmatpush1.bf16.msra.mxu0 %v6131_v16  ;;  %2379 = vmatpush1.bf16.msra.mxu1 %v6219_v61 }
 0x691   :  { %2339 = vmatprep.subr.bf16.mxu0 %v6220_v43  ;;  %2380 = vmatprep.subr.bf16.mxu1 %v6134_v18 }
 0x694   :  { %2340 = vmatpush1.bf16.msra.mxu0 %v6135_v9  ;;  %2381 = vmatpush1.bf16.msra.mxu1 %v6221_v28 }
 0x695   :  { %2341 = vmatprep.subr.bf16.mxu0 %v6222_v40  ;;  %2382 = vmatprep.subr.bf16.mxu1 %v6308_v21 }
 0x698   :  { %2342 = vmatpush1.bf16.msra.mxu0 %v6309_v47  ;;  %2383 = vmatpush1.bf16.msra.mxu1 %v6310_v15 }
 0x699   :  { %2343 = vmatprep.subr.bf16.mxu0 %v6311_v25  ;;  %2384 = vmatprep.subr.bf16.mxu1 %v6312_v33 }
 0x69c   :  { %2344 = vmatpush1.bf16.msra.mxu0 %v6313_v38  ;;  %2385 = vmatpush1.bf16.msra.mxu1 %v6314_v60 }
 0x69d   :  { %2345 = vmatprep.subr.bf16.mxu0 %v6315_v12  ;;  %2386 = vmatprep.subr.bf16.mxu1 %v6316_v26  ;;  %v6405_v26 = vld [vmem:[#allocation90_spill] sm:$0xff] }
 0x6a0   :  { %2346 = vmatpush1.bf16.msra.mxu0 %v6317_v41  ;;  %2387 = vmatpush1.bf16.msra.mxu1 %v6318_v3  ;;  %v6329_v3 = vld [vmem:[#allocation152_spill] sm:$0xff] }
 0x6a1   :  { %2347 = vmatprep.subr.bf16.mxu0 %v6319_v2  ;;  %2388 = vmatprep.subr.bf16.mxu1 %v6320_v10  ;;  %v6330_v2 = vld [vmem:[#allocation153_spill] sm:$0xff]  ;;  %v6331_v10 = vld [vmem:[#allocation154_spill] sm:$0xff]  ;;  %v6404_v41 = vld [vmem:[#allocation172_spill] sm:$0xff] }
 0x6a4   :  { %2348 = vmatpush1.bf16.msra.mxu0 %v6321_v55  ;;  %2389 = vmatpush1.bf16.msra.mxu1 %v6322_v56  ;;  %v6332_v55 = vld [vmem:[#allocation155_spill] sm:$0xff]  ;;  %v6333_v56 = vld [vmem:[#allocation157_spill] sm:$0xff] }
 0x6a5   :  { %2349 = vmatprep.subr.bf16.mxu0 %v6323_v27  ;;  %2390 = vmatprep.subr.bf16.mxu1 %v6324_v42  ;;  %v6334_v27 = vld [vmem:[#allocation158_spill] sm:$0xff]  ;;  %v6335_v42 = vld [vmem:[#allocation21_spill] sm:$0xff] }
 0x6a8   :  { %2350 = vmatpush1.bf16.msra.mxu0 %v6325_v51  ;;  %2391 = vmatpush1.bf16.msra.mxu1 %v6326_v48  ;;  %v6336_v51 = vld [vmem:[#allocation24_spill] sm:$0xff] }
 0x6a9   :  { %2351 = vmatprep.subr.bf16.mxu0 %v6327_v34  ;;  %2392 = vmatprep.subr.bf16.mxu1 %v6328_v11  ;;  %v6337_v11 = vld [vmem:[#allocation22_spill] sm:$0xff] }
 0x6aa   :  { %v6346_v34 = vld [vmem:[#allocation34_spill] sm:$0xff] }
 0x6ac   :  { %2352 = vmatpush1.bf16.msra.mxu0 %v6329_v3  ;;  %2393 = vmatpush1.bf16.msra.mxu1 %v6330_v2  ;;  %v6338_v3 = vld [vmem:[#allocation26_spill] sm:$0xff]  ;;  %v6339_v2 = vld [vmem:[#allocation23_spill] sm:$0xff] }
 0x6ad   :  { %2353 = vmatprep.subr.bf16.mxu0 %v6331_v10  ;;  %2394 = vmatprep.subr.bf16.mxu1 %v6332_v55  ;;  %v6340_v10 = vld [vmem:[#allocation28_spill] sm:$0xff]  ;;  %v6341_v55 = vld [vmem:[#allocation25_spill] sm:$0xff] }
 0x6b0   :  { %2354 = vmatpush1.bf16.msra.mxu0 %v6333_v56  ;;  %2395 = vmatpush1.bf16.msra.mxu1 %v6334_v27  ;;  %v6342_v56 = vld [vmem:[#allocation30_spill] sm:$0xff]  ;;  %v6343_v27 = vld [vmem:[#allocation27_spill] sm:$0xff] }
 0x6b1   :  { %2468 = vmatprep.subr.bf16.mxu0 %v6335_v42  ;;  %2509 = vmatprep.subr.bf16.mxu1 %v6336_v51  ;;  %v6344_v42 = vld [vmem:[#allocation32_spill] sm:$0xff]  ;;  %v6345_v51 = vld [vmem:[#allocation29_spill] sm:$0xff] }
 0x6b3   :  { %2356 = vmatmul.mubr.bf16.vlgmr.msra.gmra.mrb[52].mxu0 %v4960_v5  ;;  %2397 = vmatmul.mubr.bf16.vlgmr.msra.gmra.mrb[52].mxu1 %v4960_v5  ;;  %v6347_v5 = vld [vmem:[#allocation31_spill] sm:$0xff] }
 0x6b4   :  { %2469 = vmatpush1.bf16.msra.mxu0 %v6337_v11  ;;  %2510 = vmatpush1.bf16.msra.mxu1 %v6338_v3  ;;  %v6348_v11 = vld [vmem:[#allocation35_spill] sm:$0xff]  ;;  %v6349_v3 = vld [vmem:[#allocation33_spill] sm:$0xff] }
 0x6b5   :  { %2470 = vmatprep.subr.bf16.mxu0 %v6339_v2  ;;  %2511 = vmatprep.subr.bf16.mxu1 %v6340_v10  ;;  %v6350_v2 = vld [vmem:[#allocation36_spill] sm:$0xff]  ;;  %v6351_v10 = vld [vmem:[#allocation37_spill] sm:$0xff] }
 0x6b8   :  { %2471 = vmatpush1.bf16.msra.mxu0 %v6341_v55  ;;  %2512 = vmatpush1.bf16.msra.mxu1 %v6342_v56  ;;  %v6352_v55 = vld [vmem:[#allocation38_spill] sm:$0xff]  ;;  %v6353_v56 = vld [vmem:[#allocation39_spill] sm:$0xff] }
 0x6b9   :  { %2472 = vmatprep.subr.bf16.mxu0 %v6343_v27  ;;  %2513 = vmatprep.subr.bf16.mxu1 %v6344_v42  ;;  %v6354_v27 = vld [vmem:[#allocation40_spill] sm:$0xff]  ;;  %v6355_v42 = vld [vmem:[#allocation41_spill] sm:$0xff] }
 0x6bc   :  { %2473 = vmatpush1.bf16.msra.mxu0 %v6345_v51  ;;  %2514 = vmatpush1.bf16.msra.mxu1 %v6346_v34  ;;  %v6356_v51 = vld [vmem:[#allocation42_spill] sm:$0xff]  ;;  %v6357_v34 = vld [vmem:[#allocation43_spill] sm:$0xff] }
 0x6bd   :  { %2474 = vmatprep.subr.bf16.mxu0 %v6347_v5  ;;  %2515 = vmatprep.subr.bf16.mxu1 %v6348_v11  ;;  %v6358_v5 = vld [vmem:[#allocation44_spill] sm:$0xff]  ;;  %v6359_v11 = vld [vmem:[#allocation45_spill] sm:$0xff] }
 0x6c0   :  { %2475 = vmatpush1.bf16.msra.mxu0 %v6349_v3  ;;  %2516 = vmatpush1.bf16.msra.mxu1 %v6350_v2  ;;  %v6360_v3 = vld [vmem:[#allocation46_spill] sm:$0xff]  ;;  %v6361_v2 = vld [vmem:[#allocation47_spill] sm:$0xff] }
 0x6c1   :  { %2476 = vmatprep.subr.bf16.mxu0 %v6351_v10  ;;  %2517 = vmatprep.subr.bf16.mxu1 %v6352_v55  ;;  %v6362_v10 = vld [vmem:[#allocation48_spill] sm:$0xff]  ;;  %v6363_v55 = vld [vmem:[#allocation49_spill] sm:$0xff] }
 0x6c4   :  { %2477 = vmatpush1.bf16.msra.mxu0 %v6353_v56  ;;  %2518 = vmatpush1.bf16.msra.mxu1 %v6354_v27  ;;  %v6364_v56 = vld [vmem:[#allocation50_spill] sm:$0xff]  ;;  %v6365_v27 = vld [vmem:[#allocation51_spill] sm:$0xff] }
 0x6c5   :  { %2478 = vmatprep.subr.bf16.mxu0 %v6355_v42  ;;  %2519 = vmatprep.subr.bf16.mxu1 %v6356_v51  ;;  %v6366_v42 = vld [vmem:[#allocation52_spill] sm:$0xff]  ;;  %v6367_v51 = vld [vmem:[#allocation53_spill] sm:$0xff] }
 0x6c8   :  { %2479 = vmatpush1.bf16.msra.mxu0 %v6357_v34  ;;  %2520 = vmatpush1.bf16.msra.mxu1 %v6358_v5  ;;  %v6368_v34 = vld [vmem:[#allocation54_spill] sm:$0xff]  ;;  %v6369_v5 = vld [vmem:[#allocation55_spill] sm:$0xff] }
 0x6c9   :  { %2480 = vmatprep.subr.bf16.mxu0 %v6359_v11  ;;  %2521 = vmatprep.subr.bf16.mxu1 %v6360_v3  ;;  %v6370_v11 = vld [vmem:[#allocation56_spill] sm:$0xff]  ;;  %v6371_v3 = vld [vmem:[#allocation57_spill] sm:$0xff] }
 0x6cc   :  { %2481 = vmatpush1.bf16.msra.mxu0 %v6361_v2  ;;  %2522 = vmatpush1.bf16.msra.mxu1 %v6362_v10  ;;  %v6372_v2 = vld [vmem:[#allocation58_spill] sm:$0xff]  ;;  %v6373_v10 = vld [vmem:[#allocation59_spill] sm:$0xff] }
 0x6cd   :  { %2482 = vmatprep.subr.bf16.mxu0 %v6363_v55  ;;  %2523 = vmatprep.subr.bf16.mxu1 %v6364_v56  ;;  %v6374_v55 = vld [vmem:[#allocation60_spill] sm:$0xff]  ;;  %v6375_v56 = vld [vmem:[#allocation61_spill] sm:$0xff] }
 0x6d0   :  { %2483 = vmatpush1.bf16.msra.mxu0 %v6365_v27  ;;  %2524 = vmatpush1.bf16.msra.mxu1 %v6366_v42  ;;  %v6376_v27 = vld [vmem:[#allocation62_spill] sm:$0xff]  ;;  %v6377_v42 = vld [vmem:[#allocation63_spill] sm:$0xff] }
 0x6d1   :  { %2484 = vmatprep.subr.bf16.mxu0 %v6367_v51  ;;  %2525 = vmatprep.subr.bf16.mxu1 %v6368_v34  ;;  %v6378_v51 = vld [vmem:[#allocation64_spill] sm:$0xff]  ;;  %v6379_v34 = vld [vmem:[#allocation65_spill] sm:$0xff] }
 0x6d4   :  { %2485 = vmatpush1.bf16.msra.mxu0 %v6369_v5  ;;  %2526 = vmatpush1.bf16.msra.mxu1 %v6370_v11  ;;  %v6380_v5 = vld [vmem:[#allocation66_spill] sm:$0xff]  ;;  %v6381_v11 = vld [vmem:[#allocation67_spill] sm:$0xff] }
 0x6d5   :  { %2486 = vmatprep.subr.bf16.mxu0 %v6371_v3  ;;  %2527 = vmatprep.subr.bf16.mxu1 %v6372_v2  ;;  %v6382_v3 = vld [vmem:[#allocation68_spill] sm:$0xff]  ;;  %v6383_v2 = vld [vmem:[#allocation69_spill] sm:$0xff] }
 0x6d8   :  { %2487 = vmatpush1.bf16.msra.mxu0 %v6373_v10  ;;  %2528 = vmatpush1.bf16.msra.mxu1 %v6374_v55  ;;  %v6384_v10 = vld [vmem:[#allocation70_spill] sm:$0xff]  ;;  %v6385_v55 = vld [vmem:[#allocation71_spill] sm:$0xff] }
 0x6d9   :  { %2488 = vmatprep.subr.bf16.mxu0 %v6375_v56  ;;  %2529 = vmatprep.subr.bf16.mxu1 %v6376_v27  ;;  %v6386_v56 = vld [vmem:[#allocation72_spill] sm:$0xff]  ;;  %v6387_v27 = vld [vmem:[#allocation73_spill] sm:$0xff] }
 0x6dc   :  { %2489 = vmatpush1.bf16.msra.mxu0 %v6377_v42  ;;  %2530 = vmatpush1.bf16.msra.mxu1 %v6378_v51  ;;  %v6388_v42 = vld [vmem:[#allocation75_spill] sm:$0xff]  ;;  %v6389_v51 = vld [vmem:[#allocation74_spill] sm:$0xff] }
 0x6dd   :  { %2490 = vmatprep.subr.bf16.mxu0 %v6379_v34  ;;  %2531 = vmatprep.subr.bf16.mxu1 %v6380_v5  ;;  %v6390_v34 = vld [vmem:[#allocation76_spill] sm:$0xff]  ;;  %v6391_v5 = vld [vmem:[#allocation77_spill] sm:$0xff] }
 0x6e0   :  { %2491 = vmatpush1.bf16.msra.mxu0 %v6381_v11  ;;  %2532 = vmatpush1.bf16.msra.mxu1 %v6382_v3  ;;  %v6392_v11 = vld [vmem:[#allocation78_spill] sm:$0xff]  ;;  %v6393_v3 = vld [vmem:[#allocation79_spill] sm:$0xff] }
 0x6e1   :  { %2492 = vmatprep.subr.bf16.mxu0 %v6383_v2  ;;  %2533 = vmatprep.subr.bf16.mxu1 %v6384_v10  ;;  %v6394_v2 = vld [vmem:[#allocation80_spill] sm:$0xff]  ;;  %v6395_v10 = vld [vmem:[#allocation81_spill] sm:$0xff] }
 0x6e4   :  { %2493 = vmatpush1.bf16.msra.mxu0 %v6385_v55  ;;  %2534 = vmatpush1.bf16.msra.mxu1 %v6386_v56  ;;  %v6396_v55 = vld [vmem:[#allocation82_spill] sm:$0xff]  ;;  %v6397_v56 = vld [vmem:[#allocation83_spill] sm:$0xff] }
 0x6e5   :  { %2494 = vmatprep.subr.bf16.mxu0 %v6387_v27  ;;  %2535 = vmatprep.subr.bf16.mxu1 %v6388_v42  ;;  %v6398_v27 = vld [vmem:[#allocation84_spill] sm:$0xff]  ;;  %v6399_v42 = vld [vmem:[#allocation85_spill] sm:$0xff] }
 0x6e8   :  { %2495 = vmatpush1.bf16.msra.mxu0 %v6389_v51  ;;  %2536 = vmatpush1.bf16.msra.mxu1 %v6390_v34  ;;  %v6400_v51 = vld [vmem:[#allocation86_spill] sm:$0xff]  ;;  %v6401_v34 = vld [vmem:[#allocation89_spill] sm:$0xff] }
 0x6e9   :  { %2496 = vmatprep.subr.bf16.mxu0 %v6391_v5  ;;  %2537 = vmatprep.subr.bf16.mxu1 %v6392_v11  ;;  %v6402_v5 = vld [vmem:[#allocation169_spill] sm:$0xff]  ;;  %v6403_v11 = vld [vmem:[#allocation95_spill] sm:$0xff] }
 0x6ea   :  { %v383_v48 = vadd.f32 %v6402_v5, %v6401_v34 }
 0x6ec   :  { %2497 = vmatpush1.bf16.msra.mxu0 %v6393_v3  ;;  %2538 = vmatpush1.bf16.msra.mxu1 %v6394_v2  ;;  %v456_v3 = vadd.f32 %v6404_v41, %v6403_v11  ;;  %v6406_v2 = vld [vmem:[#allocation171_spill] sm:$0xff] }
 0x6ed   :  { %2498 = vmatprep.subr.bf16.mxu0 %v6395_v10  ;;  %2539 = vmatprep.subr.bf16.mxu1 %v6396_v55  ;;  %v385_v12 = vadd.f32 %v6406_v2, %v6405_v26  ;;  %v6407_v10 = vld [vmem:[#allocation173_spill] sm:$0xff] }
 0x6ee   :  { %v458_v55 = vadd.f32 %v6407_v10, %v6005_v19 }
 0x6f0   :  { %2499 = vmatpush1.bf16.msra.mxu0 %v6397_v56  ;;  %2540 = vmatpush1.bf16.msra.mxu1 %v6398_v27 }
 0x6f1   :  { %2550 = vmatprep.subr.bf16.mxu0 %v6399_v42  ;;  %2591 = vmatprep.subr.bf16.mxu1 %v6400_v51 }
 0x746   :  { %v2275_v60 = vpop.f32.mrb[48].mxu0  ;;  %v2316_v56 = vpop.f32.mrb[48].mxu1 }
 0x747   :  { %v2438_v38 = vadd.f32 %v2275_v60, %v383_v48  ;;  %v2440_v27 = vadd.f32 %v2316_v56, %v456_v3  ;;  %v2277_v33 = vpop.f32.mrb[49].mxu0  ;;  %v2318_v42 = vpop.f32.mrb[49].mxu1 }
 0x748   :  { %v2439_v25 = vadd.f32 %v2277_v33, %v385_v12  ;;  %v2441_v51 = vadd.f32 %v2318_v42, %v458_v55  ;;  %v2279_v15 = vpop.f32.mrb[50].mxu0  ;;  %v2320_v47 = vpop.f32.mrb[50].mxu1 }
 0x749   :  { %v3359_v5 = vmul.f32 -1.442695, %v2438_v38  ;;  %v2280_v34 = vpop.f32.mrb[51].mxu0  ;;  %v2321_v21 = vpop.f32.mrb[51].mxu1 }
 0x74a   :  { %v3360_v41 = vmul.f32 -1.442695, %v2439_v25 }
 0x74b   :  { %3588 = vpow2.f32 %v3359_v5 }
 0x74c   :  { %3590 = vpow2.f32 %v3360_v41  ;;  %v3361_v41 = vmul.f32 -1.442695, %v2441_v51 }
 0x74d   :  { %3592 = vtanh.f32 %v2440_v27 }
 0x755   :  { %v3589_v2 = vpop.eup %3588 }
 0x756   :  { %v3591_v26 = vpop.eup %3590  ;;  %v2445_v11 = vadd.f32 1.0, %v3589_v2 }
 0x757   :  { %v2451_v10 = vadd.f32 1.0, %v3591_v26  ;;  %v3593_v60 = vpop.eup %3592 }
 0x758   :  { %3594 = vrcp.f32 %v2445_v11 }
 0x759   :  { %3596 = vrcp.f32 %v2451_v10 }
 0x762   :  { %v3595_v3 = vpop.eup %3594 }
 0x763   :  { %v3597_v56 = vpop.eup %3596  ;;  %v2462_v33 = vmul.f32 %v3595_v3, %v3593_v60 }
 0x764   :  { %v2461_v15 = vmul.f32 %v3597_v56, %v4949_v46 }
 0x766   :  { %v5103_v47 = vadd.f32 %v2462_v33, %v2461_v15 }
 0x786   :  { %v2357_v38 = vpop.f32.mrb[52].mxu0  ;;  %v2398_v21 = vpop.f32.mrb[52].mxu1 }
 0x787   :  { %v2405_v25 = vadd.f32 %v2357_v38, %v6108_v58  ;;  %v2359_v12 = vpop.f32.mrb[53].mxu0  ;;  %v2400_v55 = vpop.f32.mrb[53].mxu1  ;;  %v2407_v10 = vadd.f32 %v2398_v21, %v4491_v35 }
 0x788   :  { %v2406_v42 = vadd.f32 %v2359_v12, %v4480_v52  ;;  %v2361_v27 = vpop.f32.mrb[54].mxu0  ;;  %v2402_v26 = vpop.f32.mrb[54].mxu1  ;;  %v2408_v46 = vadd.f32 %v2400_v55, %v4486_v39 }
 0x789   :  { %v3356_v48 = vmul.f32 -1.442695, %v2405_v25  ;;  %v2362_v34 = vpop.f32.mrb[55].mxu0  ;;  %v2403_v11 = vpop.f32.mrb[55].mxu1 }
 0x78a   :  { %v3357_v5 = vmul.f32 -1.442695, %v2406_v42  ;;  %v3358_v2 = vmul.f32 -1.442695, %v2408_v46 }
 0x78b   :  { %3598 = vpow2.f32 %v3356_v48 }
 0x78c   :  { %3600 = vpow2.f32 %v3357_v5 }
 0x78d   :  { %3602 = vpow2.f32 %v3361_v41 }
 0x78e   :  { %3604 = vpow2.f32 %v3358_v2 }
 0x78f   :  { %3606 = vtanh.f32 %v2407_v10 }
 0x795   :  { %v3599_v60 = vpop.eup %3598 }
 0x796   :  { %v3601_v3 = vpop.eup %3600  ;;  %v2412_v56 = vadd.f32 1.0, %v3599_v60  ;;  %v6409_v60 = vld [vmem:[#allocation132_spill] sm:$0xff] }
 0x797   :  { %v2418_v33 = vadd.f32 1.0, %v3601_v3  ;;  %v3603_v15 = vpop.eup %3602  ;;  %v6410_v3 = vld [vmem:[#allocation133_spill] sm:$0xff] }
 0x798   :  { %3608 = vrcp.f32 %v2412_v56  ;;  %v3605_v38 = vpop.eup %3604  ;;  %v2458_v42 = vadd.f32 1.0, %v3603_v15  ;;  %v6411_v56 = vld [vmem:[#allocation134_spill] sm:$0xff]  ;;  %v6413_v15 = vld [vmem:[#allocation136_spill] sm:$0xff] }
 0x799   :  { %3610 = vrcp.f32 %v2418_v33  ;;  %v3607_v25 = vpop.eup %3606  ;;  %v2425_v51 = vadd.f32 1.0, %v3605_v38  ;;  %v6412_v33 = vld [vmem:[#allocation135_spill] sm:$0xff]  ;;  %v6414_v38 = vld [vmem:[#allocation137_spill] sm:$0xff] }
 0x79a   :  { %3612 = vtanh.f32 %v5103_v47 }
 0x79b   :  { %3614 = vrcp.f32 %v2458_v42  ;;  %v6417_v42 = vld [vmem:[#allocation140_spill] sm:$0xff] }
 0x79c   :  { %3616 = vrcp.f32 %v2425_v51  ;;  %v6420_v51 = vld [vmem:[#allocation143_spill] sm:$0xff] }
 0x7a2   :  { %v3609_v12 = vpop.eup %3608 }
 0x7a3   :  { %v3611_v27 = vpop.eup %3610  ;;  %v2429_v55 = vmul.f32 %v3609_v12, %v3607_v25  ;;  %v6415_v25 = vld [vmem:[#allocation138_spill] sm:$0xff]  ;;  %v6416_v12 = vld [vmem:[#allocation139_spill] sm:$0xff] }
 0x7a4   :  { %v2428_v26 = vmul.f32 %v3611_v27, %v4957_v22  ;;  %v3613_v48 = vpop.eup %3612  ;;  %v6408_v22 = vld [vmem:[#allocation131_spill] sm:$0xff]  ;;  %v6418_v27 = vld [vmem:[#allocation141_spill] sm:$0xff] }
 0x7a5   :  { %v3615_v34 = vpop.eup %3614 }
 0x7a6   :  { %v5111_v21 = vadd.f32 %v2429_v55, %v2428_v26  ;;  %v3617_v11 = vpop.eup %3616  ;;  %v2465_v46 = vmul.f32 %v3615_v34, %v3613_v48  ;;  %v6419_v55 = vld [vmem:[#allocation142_spill] sm:$0xff]  ;;  %v6421_v26 = vld [vmem:[#allocation144_spill] sm:$0xff]  ;;  %v6422_v48 = vld [vmem:[#allocation145_spill] sm:$0xff] }
 0x7a7   :  { %v6423_v34 = vld [vmem:[#allocation146_spill] sm:$0xff] }
 0x7a8   :  { %3618 = vtanh.f32 %v5111_v21  ;;  %v5114_v10 = vpack.c.bf16 %v2465_v46, %v2465_v46  ;;  %v6426_v46 = vld [vmem:[#allocation149_spill] sm:$0xff] }
 0x7b2   :  { %v3619_v5 = vpop.eup %3618 }
 0x7b3   :  { %v2432_v41 = vmul.f32 %v3619_v5, %v3617_v11  ;;  %v6424_v11 = vld [vmem:[#allocation147_spill] sm:$0xff]  ;;  %v6425_v5 = vld [vmem:[#allocation148_spill] sm:$0xff] }
 0x7b5   :  { %v2467_v2 = vpack.c.bf16 %v2432_v41, %v2432_v41  ;;  %v6427_v41 = vld [vmem:[#allocation150_spill] sm:$0xff] }
 0x7b7   :  { %2500 = vmatprep.mubr.bf16.mxu0 %v2467_v2  ;;  %2541 = vmatprep.mubr.bf16.mxu1 %v2467_v2 }
 0x7b8   :  { %2501 = vmatmul.mubr.bf16.vlgmr.msra.gmra.mrb[56].mxu0 %v5114_v10  ;;  %2542 = vmatmul.mubr.bf16.vlgmr.msra.gmra.mrb[56].mxu1 %v5114_v10 }
 0x7b9   :  { %2551 = vmatpush1.bf16.msra.mxu0 %v4112_v37  ;;  %2592 = vmatpush1.bf16.msra.mxu1 %v6014_v54 }
 0x7ba   :  { %2582 = vmatprep.mubr.bf16.mxu0 %v2467_v2  ;;  %2623 = vmatprep.mubr.bf16.mxu1 %v2467_v2  ;;  %v6428_v2 = vld [vmem:[#allocation151_spill] sm:$0xff] }
 0x7bb   :  { %2552 = vmatprep.subr.bf16.mxu0 %v6015_v31  ;;  %2593 = vmatprep.subr.bf16.mxu1 %v6016_v20 }
 0x7bd   :  { %2553 = vmatpush1.bf16.msra.mxu0 %v6017_v45  ;;  %2594 = vmatpush1.bf16.msra.mxu1 %v6018_v44 }
 0x7be   :  { %2554 = vmatprep.subr.bf16.mxu0 %v6109_v13  ;;  %2595 = vmatprep.subr.bf16.mxu1 %v6110_v24 }
 0x7c1   :  { %2555 = vmatpush1.bf16.msra.mxu0 %v6111_v1  ;;  %2596 = vmatpush1.bf16.msra.mxu1 %v6112_v63 }
 0x7c2   :  { %2556 = vmatprep.subr.bf16.mxu0 %v6113_v62  ;;  %2597 = vmatprep.subr.bf16.mxu1 %v6114_v6 }
 0x7c5   :  { %2557 = vmatpush1.bf16.msra.mxu0 %v6115_v14  ;;  %2598 = vmatpush1.bf16.msra.mxu1 %v6116_v30 }
 0x7c6   :  { %2558 = vmatprep.subr.bf16.mxu0 %v6117_v32  ;;  %2599 = vmatprep.subr.bf16.mxu1 %v6208_v59 }
 0x7c9   :  { %2559 = vmatpush1.bf16.msra.mxu0 %v6209_v49  ;;  %2600 = vmatpush1.bf16.msra.mxu1 %v6210_v57 }
 0x7ca   :  { %2560 = vmatprep.subr.bf16.mxu0 %v6211_v29  ;;  %2601 = vmatprep.subr.bf16.mxu1 %v6212_v53 }
 0x7cd   :  { %2561 = vmatpush1.bf16.msra.mxu0 %v6213_v36  ;;  %2602 = vmatpush1.bf16.msra.mxu1 %v6214_v0 }
 0x7ce   :  { %2562 = vmatprep.subr.bf16.mxu0 %v6215_v4  ;;  %2603 = vmatprep.subr.bf16.mxu1 %v6216_v7 }
 0x7d1   :  { %2563 = vmatpush1.bf16.msra.mxu0 %v6217_v23  ;;  %2604 = vmatpush1.bf16.msra.mxu1 %v6218_v50 }
 0x7d2   :  { %2564 = vmatprep.subr.bf16.mxu0 %v6129_v8  ;;  %2605 = vmatprep.subr.bf16.mxu1 %v6130_v17 }
 0x7d5   :  { %2565 = vmatpush1.bf16.msra.mxu0 %v6131_v16  ;;  %2606 = vmatpush1.bf16.msra.mxu1 %v6219_v61 }
 0x7d6   :  { %2566 = vmatprep.subr.bf16.mxu0 %v6220_v43  ;;  %2607 = vmatprep.subr.bf16.mxu1 %v6134_v18 }
 0x7d9   :  { %2567 = vmatpush1.bf16.msra.mxu0 %v6135_v9  ;;  %2608 = vmatpush1.bf16.msra.mxu1 %v6221_v28 }
 0x7da   :  { %2568 = vmatprep.subr.bf16.mxu0 %v6222_v40  ;;  %2609 = vmatprep.subr.bf16.mxu1 %v6408_v22 }
 0x7dd   :  { %2569 = vmatpush1.bf16.msra.mxu0 %v6409_v60  ;;  %2610 = vmatpush1.bf16.msra.mxu1 %v6410_v3 }
 0x7de   :  { %2570 = vmatprep.subr.bf16.mxu0 %v6411_v56  ;;  %2611 = vmatprep.subr.bf16.mxu1 %v6412_v33 }
 0x7e1   :  { %2571 = vmatpush1.bf16.msra.mxu0 %v6413_v15  ;;  %2612 = vmatpush1.bf16.msra.mxu1 %v6414_v38 }
 0x7e2   :  { %2572 = vmatprep.subr.bf16.mxu0 %v6415_v25  ;;  %2613 = vmatprep.subr.bf16.mxu1 %v6416_v12  ;;  %v6505_v12 = vld [vmem:[#allocation90_spill] sm:$0xff] }
 0x7e5   :  { %2573 = vmatpush1.bf16.msra.mxu0 %v6417_v42  ;;  %2614 = vmatpush1.bf16.msra.mxu1 %v6418_v27  ;;  %v6429_v27 = vld [vmem:[#allocation152_spill] sm:$0xff]  ;;  %v6504_v42 = vld [vmem:[#allocation177_spill] sm:$0xff] }
 0x7e6   :  { %2574 = vmatprep.subr.bf16.mxu0 %v6419_v55  ;;  %2615 = vmatprep.subr.bf16.mxu1 %v6420_v51  ;;  %v6430_v55 = vld [vmem:[#allocation153_spill] sm:$0xff]  ;;  %v6431_v51 = vld [vmem:[#allocation154_spill] sm:$0xff] }
 0x7e9   :  { %2575 = vmatpush1.bf16.msra.mxu0 %v6421_v26  ;;  %2616 = vmatpush1.bf16.msra.mxu1 %v6422_v48  ;;  %v6432_v26 = vld [vmem:[#allocation155_spill] sm:$0xff]  ;;  %v6433_v48 = vld [vmem:[#allocation157_spill] sm:$0xff] }
 0x7ea   :  { %2576 = vmatprep.subr.bf16.mxu0 %v6423_v34  ;;  %2617 = vmatprep.subr.bf16.mxu1 %v6424_v11  ;;  %v6434_v34 = vld [vmem:[#allocation158_spill] sm:$0xff]  ;;  %v6435_v11 = vld [vmem:[#allocation21_spill] sm:$0xff] }
 0x7ed   :  { %2577 = vmatpush1.bf16.msra.mxu0 %v6425_v5  ;;  %2618 = vmatpush1.bf16.msra.mxu1 %v6426_v46  ;;  %v6436_v5 = vld [vmem:[#allocation24_spill] sm:$0xff] }
 0x7ee   :  { %2578 = vmatprep.subr.bf16.mxu0 %v6427_v41  ;;  %2619 = vmatprep.subr.bf16.mxu1 %v6428_v2  ;;  %v6437_v2 = vld [vmem:[#allocation22_spill] sm:$0xff] }
 0x7ef   :  { %v6446_v41 = vld [vmem:[#allocation34_spill] sm:$0xff] }
 0x7f1   :  { %2579 = vmatpush1.bf16.msra.mxu0 %v6429_v27  ;;  %2620 = vmatpush1.bf16.msra.mxu1 %v6430_v55  ;;  %v6438_v27 = vld [vmem:[#allocation26_spill] sm:$0xff]  ;;  %v6439_v55 = vld [vmem:[#allocation23_spill] sm:$0xff] }
 0x7f2   :  { %2580 = vmatprep.subr.bf16.mxu0 %v6431_v51  ;;  %2621 = vmatprep.subr.bf16.mxu1 %v6432_v26  ;;  %v6440_v51 = vld [vmem:[#allocation28_spill] sm:$0xff]  ;;  %v6441_v26 = vld [vmem:[#allocation25_spill] sm:$0xff] }
 0x7f5   :  { %2581 = vmatpush1.bf16.msra.mxu0 %v6433_v48  ;;  %2622 = vmatpush1.bf16.msra.mxu1 %v6434_v34  ;;  %v6442_v48 = vld [vmem:[#allocation30_spill] sm:$0xff]  ;;  %v6443_v34 = vld [vmem:[#allocation27_spill] sm:$0xff] }
 0x7f6   :  { %2695 = vmatprep.subr.bf16.mxu0 %v6435_v11  ;;  %2736 = vmatprep.subr.bf16.mxu1 %v6436_v5  ;;  %v6444_v11 = vld [vmem:[#allocation32_spill] sm:$0xff]  ;;  %v6445_v5 = vld [vmem:[#allocation29_spill] sm:$0xff] }
 0x7f8   :  { %2583 = vmatmul.mubr.bf16.vlgmr.msra.gmra.mrb[60].mxu0 %v5114_v10  ;;  %2624 = vmatmul.mubr.bf16.vlgmr.msra.gmra.mrb[60].mxu1 %v5114_v10  ;;  %v6447_v10 = vld [vmem:[#allocation31_spill] sm:$0xff] }
 0x7f9   :  { %2696 = vmatpush1.bf16.msra.mxu0 %v6437_v2  ;;  %2737 = vmatpush1.bf16.msra.mxu1 %v6438_v27  ;;  %v6448_v2 = vld [vmem:[#allocation35_spill] sm:$0xff]  ;;  %v6449_v27 = vld [vmem:[#allocation33_spill] sm:$0xff] }
 0x7fa   :  { %2697 = vmatprep.subr.bf16.mxu0 %v6439_v55  ;;  %2738 = vmatprep.subr.bf16.mxu1 %v6440_v51  ;;  %v6450_v55 = vld [vmem:[#allocation36_spill] sm:$0xff]  ;;  %v6451_v51 = vld [vmem:[#allocation37_spill] sm:$0xff] }
 0x7fd   :  { %2698 = vmatpush1.bf16.msra.mxu0 %v6441_v26  ;;  %2739 = vmatpush1.bf16.msra.mxu1 %v6442_v48  ;;  %v6452_v26 = vld [vmem:[#allocation38_spill] sm:$0xff]  ;;  %v6453_v48 = vld [vmem:[#allocation39_spill] sm:$0xff] }
 0x7fe   :  { %2699 = vmatprep.subr.bf16.mxu0 %v6443_v34  ;;  %2740 = vmatprep.subr.bf16.mxu1 %v6444_v11  ;;  %v6454_v34 = vld [vmem:[#allocation40_spill] sm:$0xff]  ;;  %v6455_v11 = vld [vmem:[#allocation41_spill] sm:$0xff] }
 0x801   :  { %2700 = vmatpush1.bf16.msra.mxu0 %v6445_v5  ;;  %2741 = vmatpush1.bf16.msra.mxu1 %v6446_v41  ;;  %v6456_v5 = vld [vmem:[#allocation42_spill] sm:$0xff]  ;;  %v6457_v41 = vld [vmem:[#allocation43_spill] sm:$0xff] }
 0x802   :  { %2701 = vmatprep.subr.bf16.mxu0 %v6447_v10  ;;  %2742 = vmatprep.subr.bf16.mxu1 %v6448_v2  ;;  %v6458_v10 = vld [vmem:[#allocation44_spill] sm:$0xff]  ;;  %v6459_v2 = vld [vmem:[#allocation45_spill] sm:$0xff] }
 0x805   :  { %2702 = vmatpush1.bf16.msra.mxu0 %v6449_v27  ;;  %2743 = vmatpush1.bf16.msra.mxu1 %v6450_v55  ;;  %v6460_v27 = vld [vmem:[#allocation46_spill] sm:$0xff]  ;;  %v6461_v55 = vld [vmem:[#allocation47_spill] sm:$0xff] }
 0x806   :  { %2703 = vmatprep.subr.bf16.mxu0 %v6451_v51  ;;  %2744 = vmatprep.subr.bf16.mxu1 %v6452_v26  ;;  %v6462_v51 = vld [vmem:[#allocation48_spill] sm:$0xff]  ;;  %v6463_v26 = vld [vmem:[#allocation49_spill] sm:$0xff] }
 0x809   :  { %2704 = vmatpush1.bf16.msra.mxu0 %v6453_v48  ;;  %2745 = vmatpush1.bf16.msra.mxu1 %v6454_v34  ;;  %v6464_v48 = vld [vmem:[#allocation50_spill] sm:$0xff]  ;;  %v6465_v34 = vld [vmem:[#allocation51_spill] sm:$0xff] }
 0x80a   :  { %2705 = vmatprep.subr.bf16.mxu0 %v6455_v11  ;;  %2746 = vmatprep.subr.bf16.mxu1 %v6456_v5  ;;  %v6466_v11 = vld [vmem:[#allocation52_spill] sm:$0xff]  ;;  %v6467_v5 = vld [vmem:[#allocation53_spill] sm:$0xff] }
 0x80d   :  { %2706 = vmatpush1.bf16.msra.mxu0 %v6457_v41  ;;  %2747 = vmatpush1.bf16.msra.mxu1 %v6458_v10  ;;  %v6468_v41 = vld [vmem:[#allocation54_spill] sm:$0xff]  ;;  %v6469_v10 = vld [vmem:[#allocation55_spill] sm:$0xff] }
 0x80e   :  { %2707 = vmatprep.subr.bf16.mxu0 %v6459_v2  ;;  %2748 = vmatprep.subr.bf16.mxu1 %v6460_v27  ;;  %v6470_v2 = vld [vmem:[#allocation56_spill] sm:$0xff]  ;;  %v6471_v27 = vld [vmem:[#allocation57_spill] sm:$0xff] }
 0x811   :  { %2708 = vmatpush1.bf16.msra.mxu0 %v6461_v55  ;;  %2749 = vmatpush1.bf16.msra.mxu1 %v6462_v51  ;;  %v6472_v55 = vld [vmem:[#allocation58_spill] sm:$0xff]  ;;  %v6473_v51 = vld [vmem:[#allocation59_spill] sm:$0xff] }
 0x812   :  { %2709 = vmatprep.subr.bf16.mxu0 %v6463_v26  ;;  %2750 = vmatprep.subr.bf16.mxu1 %v6464_v48  ;;  %v6474_v26 = vld [vmem:[#allocation60_spill] sm:$0xff]  ;;  %v6475_v48 = vld [vmem:[#allocation61_spill] sm:$0xff] }
 0x815   :  { %2710 = vmatpush1.bf16.msra.mxu0 %v6465_v34  ;;  %2751 = vmatpush1.bf16.msra.mxu1 %v6466_v11  ;;  %v6476_v34 = vld [vmem:[#allocation62_spill] sm:$0xff]  ;;  %v6477_v11 = vld [vmem:[#allocation63_spill] sm:$0xff] }
 0x816   :  { %2711 = vmatprep.subr.bf16.mxu0 %v6467_v5  ;;  %2752 = vmatprep.subr.bf16.mxu1 %v6468_v41  ;;  %v6478_v5 = vld [vmem:[#allocation64_spill] sm:$0xff]  ;;  %v6479_v41 = vld [vmem:[#allocation65_spill] sm:$0xff] }
 0x819   :  { %2712 = vmatpush1.bf16.msra.mxu0 %v6469_v10  ;;  %2753 = vmatpush1.bf16.msra.mxu1 %v6470_v2  ;;  %v6480_v10 = vld [vmem:[#allocation66_spill] sm:$0xff]  ;;  %v6481_v2 = vld [vmem:[#allocation67_spill] sm:$0xff] }
 0x81a   :  { %2713 = vmatprep.subr.bf16.mxu0 %v6471_v27  ;;  %2754 = vmatprep.subr.bf16.mxu1 %v6472_v55  ;;  %v6482_v27 = vld [vmem:[#allocation68_spill] sm:$0xff]  ;;  %v6483_v55 = vld [vmem:[#allocation69_spill] sm:$0xff] }
 0x81d   :  { %2714 = vmatpush1.bf16.msra.mxu0 %v6473_v51  ;;  %2755 = vmatpush1.bf16.msra.mxu1 %v6474_v26  ;;  %v6484_v51 = vld [vmem:[#allocation70_spill] sm:$0xff]  ;;  %v6485_v26 = vld [vmem:[#allocation71_spill] sm:$0xff] }
 0x81e   :  { %2715 = vmatprep.subr.bf16.mxu0 %v6475_v48  ;;  %2756 = vmatprep.subr.bf16.mxu1 %v6476_v34  ;;  %v6486_v48 = vld [vmem:[#allocation72_spill] sm:$0xff]  ;;  %v6487_v34 = vld [vmem:[#allocation73_spill] sm:$0xff] }
 0x821   :  { %2716 = vmatpush1.bf16.msra.mxu0 %v6477_v11  ;;  %2757 = vmatpush1.bf16.msra.mxu1 %v6478_v5  ;;  %v6488_v11 = vld [vmem:[#allocation75_spill] sm:$0xff]  ;;  %v6489_v5 = vld [vmem:[#allocation74_spill] sm:$0xff] }
 0x822   :  { %2717 = vmatprep.subr.bf16.mxu0 %v6479_v41  ;;  %2758 = vmatprep.subr.bf16.mxu1 %v6480_v10  ;;  %v6490_v41 = vld [vmem:[#allocation76_spill] sm:$0xff]  ;;  %v6491_v10 = vld [vmem:[#allocation77_spill] sm:$0xff] }
 0x825   :  { %2718 = vmatpush1.bf16.msra.mxu0 %v6481_v2  ;;  %2759 = vmatpush1.bf16.msra.mxu1 %v6482_v27  ;;  %v6492_v2 = vld [vmem:[#allocation78_spill] sm:$0xff]  ;;  %v6493_v27 = vld [vmem:[#allocation79_spill] sm:$0xff] }
 0x826   :  { %2719 = vmatprep.subr.bf16.mxu0 %v6483_v55  ;;  %2760 = vmatprep.subr.bf16.mxu1 %v6484_v51  ;;  %v6494_v55 = vld [vmem:[#allocation80_spill] sm:$0xff]  ;;  %v6495_v51 = vld [vmem:[#allocation81_spill] sm:$0xff] }
 0x829   :  { %2720 = vmatpush1.bf16.msra.mxu0 %v6485_v26  ;;  %2761 = vmatpush1.bf16.msra.mxu1 %v6486_v48  ;;  %v6496_v26 = vld [vmem:[#allocation82_spill] sm:$0xff]  ;;  %v6497_v48 = vld [vmem:[#allocation83_spill] sm:$0xff] }
 0x82a   :  { %2721 = vmatprep.subr.bf16.mxu0 %v6487_v34  ;;  %2762 = vmatprep.subr.bf16.mxu1 %v6488_v11  ;;  %v6498_v34 = vld [vmem:[#allocation84_spill] sm:$0xff]  ;;  %v6499_v11 = vld [vmem:[#allocation85_spill] sm:$0xff] }
 0x82d   :  { %2722 = vmatpush1.bf16.msra.mxu0 %v6489_v5  ;;  %2763 = vmatpush1.bf16.msra.mxu1 %v6490_v41  ;;  %v6500_v5 = vld [vmem:[#allocation86_spill] sm:$0xff]  ;;  %v6501_v41 = vld [vmem:[#allocation89_spill] sm:$0xff] }
 0x82e   :  { %2723 = vmatprep.subr.bf16.mxu0 %v6491_v10  ;;  %2764 = vmatprep.subr.bf16.mxu1 %v6492_v2  ;;  %v6502_v10 = vld [vmem:[#allocation174_spill] sm:$0xff]  ;;  %v6503_v2 = vld [vmem:[#allocation95_spill] sm:$0xff] }
 0x82f   :  { %v389_v46 = vadd.f32 %v6502_v10, %v6501_v41 }
 0x831   :  { %2724 = vmatpush1.bf16.msra.mxu0 %v6493_v27  ;;  %2765 = vmatpush1.bf16.msra.mxu1 %v6494_v55  ;;  %v462_v27 = vadd.f32 %v6504_v42, %v6503_v2  ;;  %v6506_v55 = vld [vmem:[#allocation175_spill] sm:$0xff] }
 0x832   :  { %2725 = vmatprep.subr.bf16.mxu0 %v6495_v51  ;;  %2766 = vmatprep.subr.bf16.mxu1 %v6496_v26  ;;  %v391_v25 = vadd.f32 %v6506_v55, %v6505_v12  ;;  %v6507_v51 = vld [vmem:[#allocation179_spill] sm:$0xff] }
 0x833   :  { %v464_v26 = vadd.f32 %v6507_v51, %v6005_v19 }
 0x835   :  { %2726 = vmatpush1.bf16.msra.mxu0 %v6497_v48  ;;  %2767 = vmatpush1.bf16.msra.mxu1 %v6498_v34 }
 0x836   :  { %2777 = vmatprep.subr.bf16.mxu0 %v6499_v11  ;;  %2818 = vmatprep.subr.bf16.mxu1 %v6500_v5 }
 0x88b   :  { %v2502_v38 = vpop.f32.mrb[56].mxu0  ;;  %v2543_v48 = vpop.f32.mrb[56].mxu1 }
 0x88c   :  { %v2665_v15 = vadd.f32 %v2502_v38, %v389_v46  ;;  %v2667_v34 = vadd.f32 %v2543_v48, %v462_v27  ;;  %v2504_v33 = vpop.f32.mrb[57].mxu0  ;;  %v2545_v11 = vpop.f32.mrb[57].mxu1 }
 0x88d   :  { %v2666_v56 = vadd.f32 %v2504_v33, %v391_v25  ;;  %v2668_v5 = vadd.f32 %v2545_v11, %v464_v26  ;;  %v2506_v3 = vpop.f32.mrb[58].mxu0  ;;  %v2547_v60 = vpop.f32.mrb[58].mxu1 }
 0x88e   :  { %v3365_v10 = vmul.f32 -1.442695, %v2665_v15  ;;  %v2507_v41 = vpop.f32.mrb[59].mxu0  ;;  %v2548_v22 = vpop.f32.mrb[59].mxu1 }
 0x88f   :  { %v3366_v42 = vmul.f32 -1.442695, %v2666_v56 }
 0x890   :  { %3620 = vpow2.f32 %v3365_v10 }
 0x891   :  { %3622 = vpow2.f32 %v3366_v42  ;;  %v3367_v42 = vmul.f32 -1.442695, %v2668_v5 }
 0x892   :  { %3624 = vtanh.f32 %v2667_v34 }
 0x89a   :  { %v3621_v55 = vpop.eup %3620 }
 0x89b   :  { %v3623_v12 = vpop.eup %3622  ;;  %v2672_v2 = vadd.f32 1.0, %v3621_v55 }
 0x89c   :  { %v2678_v51 = vadd.f32 1.0, %v3623_v12  ;;  %v3625_v38 = vpop.eup %3624 }
 0x89d   :  { %3626 = vrcp.f32 %v2672_v2 }
 0x89e   :  { %3628 = vrcp.f32 %v2678_v51 }
 0x8a7   :  { %v3627_v27 = vpop.eup %3626 }
 0x8a8   :  { %v3629_v48 = vpop.eup %3628  ;;  %v2689_v33 = vmul.f32 %v3627_v27, %v3625_v38 }
 0x8a9   :  { %v2688_v3 = vmul.f32 %v3629_v48, %v5103_v47 }
 0x8ab   :  { %v5257_v60 = vadd.f32 %v2689_v33, %v2688_v3 }
 0x8cb   :  { %v2584_v15 = vpop.f32.mrb[60].mxu0  ;;  %v2625_v22 = vpop.f32.mrb[60].mxu1 }
 0x8cc   :  { %v2632_v56 = vadd.f32 %v2584_v15, %v6108_v58  ;;  %v2586_v25 = vpop.f32.mrb[61].mxu0  ;;  %v2627_v26 = vpop.f32.mrb[61].mxu1  ;;  %v2634_v51 = vadd.f32 %v2625_v22, %v4491_v35 }
 0x8cd   :  { %v2633_v11 = vadd.f32 %v2586_v25, %v4480_v52  ;;  %v2588_v34 = vpop.f32.mrb[62].mxu0  ;;  %v2629_v12 = vpop.f32.mrb[62].mxu1  ;;  %v2635_v47 = vadd.f32 %v2627_v26, %v4486_v39 }
 0x8ce   :  { %v3362_v46 = vmul.f32 -1.442695, %v2632_v56  ;;  %v2589_v41 = vpop.f32.mrb[63].mxu0  ;;  %v2630_v2 = vpop.f32.mrb[63].mxu1 }
 0x8cf   :  { %v3363_v10 = vmul.f32 -1.442695, %v2633_v11  ;;  %v3364_v55 = vmul.f32 -1.442695, %v2635_v47 }
 0x8d0   :  { %3630 = vpow2.f32 %v3362_v46 }
 0x8d1   :  { %3632 = vpow2.f32 %v3363_v10 }
 0x8d2   :  { %3634 = vpow2.f32 %v3367_v42 }
 0x8d3   :  { %3636 = vpow2.f32 %v3364_v55 }
 0x8d4   :  { %3638 = vtanh.f32 %v2634_v51 }
 0x8da   :  { %v3631_v38 = vpop.eup %3630 }
 0x8db   :  { %v3633_v27 = vpop.eup %3632  ;;  %v2639_v48 = vadd.f32 1.0, %v3631_v38  ;;  %v6509_v38 = vld [vmem:[#allocation132_spill] sm:$0xff] }
 0x8dc   :  { %v2645_v33 = vadd.f32 1.0, %v3633_v27  ;;  %v3635_v3 = vpop.eup %3634  ;;  %v6510_v27 = vld [vmem:[#allocation133_spill] sm:$0xff] }
 0x8dd   :  { %3640 = vrcp.f32 %v2639_v48  ;;  %v3637_v15 = vpop.eup %3636  ;;  %v2685_v11 = vadd.f32 1.0, %v3635_v3  ;;  %v6511_v48 = vld [vmem:[#allocation134_spill] sm:$0xff]  ;;  %v6513_v3 = vld [vmem:[#allocation136_spill] sm:$0xff] }
 0x8de   :  { %3642 = vrcp.f32 %v2645_v33  ;;  %v3639_v56 = vpop.eup %3638  ;;  %v2652_v5 = vadd.f32 1.0, %v3637_v15  ;;  %v6512_v33 = vld [vmem:[#allocation135_spill] sm:$0xff]  ;;  %v6514_v15 = vld [vmem:[#allocation137_spill] sm:$0xff] }
 0x8df   :  { %3644 = vtanh.f32 %v5257_v60 }
 0x8e0   :  { %3646 = vrcp.f32 %v2685_v11  ;;  %v6517_v11 = vld [vmem:[#allocation140_spill] sm:$0xff] }
 0x8e1   :  { %3648 = vrcp.f32 %v2652_v5  ;;  %v6520_v5 = vld [vmem:[#allocation143_spill] sm:$0xff] }
 0x8e7   :  { %v3641_v25 = vpop.eup %3640 }
 0x8e8   :  { %v3643_v34 = vpop.eup %3642  ;;  %v2656_v26 = vmul.f32 %v3641_v25, %v3639_v56  ;;  %v6515_v56 = vld [vmem:[#allocation138_spill] sm:$0xff]  ;;  %v6516_v25 = vld [vmem:[#allocation139_spill] sm:$0xff] }
 0x8e9   :  { %v2655_v12 = vmul.f32 %v3643_v34, %v5111_v21  ;;  %v3645_v46 = vpop.eup %3644  ;;  %v6508_v21 = vld [vmem:[#allocation131_spill] sm:$0xff]  ;;  %v6518_v34 = vld [vmem:[#allocation141_spill] sm:$0xff] }
 0x8ea   :  { %v3647_v41 = vpop.eup %3646 }
 0x8eb   :  { %v5265_v22 = vadd.f32 %v2656_v26, %v2655_v12  ;;  %v3649_v2 = vpop.eup %3648  ;;  %v2692_v47 = vmul.f32 %v3647_v41, %v3645_v46  ;;  %v6519_v26 = vld [vmem:[#allocation142_spill] sm:$0xff]  ;;  %v6521_v12 = vld [vmem:[#allocation144_spill] sm:$0xff]  ;;  %v6522_v46 = vld [vmem:[#allocation145_spill] sm:$0xff] }
 0x8ec   :  { %v6523_v41 = vld [vmem:[#allocation146_spill] sm:$0xff] }
 0x8ed   :  { %3650 = vtanh.f32 %v5265_v22  ;;  %v5268_v51 = vpack.c.bf16 %v2692_v47, %v2692_v47  ;;  %v6526_v47 = vld [vmem:[#allocation149_spill] sm:$0xff] }
 0x8f7   :  { %v3651_v10 = vpop.eup %3650 }
 0x8f8   :  { %v2659_v42 = vmul.f32 %v3651_v10, %v3649_v2  ;;  %v6524_v2 = vld [vmem:[#allocation147_spill] sm:$0xff]  ;;  %v6525_v10 = vld [vmem:[#allocation148_spill] sm:$0xff] }
 0x8fa   :  { %v2694_v55 = vpack.c.bf16 %v2659_v42, %v2659_v42  ;;  %v6527_v42 = vld [vmem:[#allocation150_spill] sm:$0xff] }
 0x8fc   :  { %2727 = vmatprep.mubr.bf16.mxu0 %v2694_v55  ;;  %2768 = vmatprep.mubr.bf16.mxu1 %v2694_v55 }
 0x8fd   :  { %2728 = vmatmul.mubr.bf16.vlgmr.msra.gmra.mrb[64].mxu0 %v5268_v51  ;;  %2769 = vmatmul.mubr.bf16.vlgmr.msra.gmra.mrb[64].mxu1 %v5268_v51 }
 0x8fe   :  { %2778 = vmatpush1.bf16.msra.mxu0 %v4112_v37  ;;  %2819 = vmatpush1.bf16.msra.mxu1 %v6014_v54 }
 0x8ff   :  { %2809 = vmatprep.mubr.bf16.mxu0 %v2694_v55  ;;  %2850 = vmatprep.mubr.bf16.mxu1 %v2694_v55  ;;  %v6528_v55 = vld [vmem:[#allocation151_spill] sm:$0xff] }
 0x900   :  { %2779 = vmatprep.subr.bf16.mxu0 %v6015_v31  ;;  %2820 = vmatprep.subr.bf16.mxu1 %v6016_v20 }
 0x902   :  { %2780 = vmatpush1.bf16.msra.mxu0 %v6017_v45  ;;  %2821 = vmatpush1.bf16.msra.mxu1 %v6018_v44 }
 0x903   :  { %2781 = vmatprep.subr.bf16.mxu0 %v6109_v13  ;;  %2822 = vmatprep.subr.bf16.mxu1 %v6110_v24 }
 0x906   :  { %2782 = vmatpush1.bf16.msra.mxu0 %v6111_v1  ;;  %2823 = vmatpush1.bf16.msra.mxu1 %v6112_v63 }
 0x907   :  { %2783 = vmatprep.subr.bf16.mxu0 %v6113_v62  ;;  %2824 = vmatprep.subr.bf16.mxu1 %v6114_v6 }
 0x90a   :  { %2784 = vmatpush1.bf16.msra.mxu0 %v6115_v14  ;;  %2825 = vmatpush1.bf16.msra.mxu1 %v6116_v30 }
 0x90b   :  { %2785 = vmatprep.subr.bf16.mxu0 %v6117_v32  ;;  %2826 = vmatprep.subr.bf16.mxu1 %v6208_v59 }
 0x90e   :  { %2786 = vmatpush1.bf16.msra.mxu0 %v6209_v49  ;;  %2827 = vmatpush1.bf16.msra.mxu1 %v6210_v57 }
 0x90f   :  { %2787 = vmatprep.subr.bf16.mxu0 %v6211_v29  ;;  %2828 = vmatprep.subr.bf16.mxu1 %v6212_v53 }
 0x912   :  { %2788 = vmatpush1.bf16.msra.mxu0 %v6213_v36  ;;  %2829 = vmatpush1.bf16.msra.mxu1 %v6214_v0 }
 0x913   :  { %2789 = vmatprep.subr.bf16.mxu0 %v6215_v4  ;;  %2830 = vmatprep.subr.bf16.mxu1 %v6216_v7 }
 0x916   :  { %2790 = vmatpush1.bf16.msra.mxu0 %v6217_v23  ;;  %2831 = vmatpush1.bf16.msra.mxu1 %v6218_v50 }
 0x917   :  { %2791 = vmatprep.subr.bf16.mxu0 %v6129_v8  ;;  %2832 = vmatprep.subr.bf16.mxu1 %v6130_v17 }
 0x91a   :  { %2792 = vmatpush1.bf16.msra.mxu0 %v6131_v16  ;;  %2833 = vmatpush1.bf16.msra.mxu1 %v6219_v61 }
 0x91b   :  { %2793 = vmatprep.subr.bf16.mxu0 %v6220_v43  ;;  %2834 = vmatprep.subr.bf16.mxu1 %v6134_v18 }
 0x91e   :  { %2794 = vmatpush1.bf16.msra.mxu0 %v6135_v9  ;;  %2835 = vmatpush1.bf16.msra.mxu1 %v6221_v28 }
 0x91f   :  { %2795 = vmatprep.subr.bf16.mxu0 %v6222_v40  ;;  %2836 = vmatprep.subr.bf16.mxu1 %v6508_v21 }
 0x922   :  { %2796 = vmatpush1.bf16.msra.mxu0 %v6509_v38  ;;  %2837 = vmatpush1.bf16.msra.mxu1 %v6510_v27 }
 0x923   :  { %2797 = vmatprep.subr.bf16.mxu0 %v6511_v48  ;;  %2838 = vmatprep.subr.bf16.mxu1 %v6512_v33 }
 0x926   :  { %2798 = vmatpush1.bf16.msra.mxu0 %v6513_v3  ;;  %2839 = vmatpush1.bf16.msra.mxu1 %v6514_v15 }
 0x927   :  { %2799 = vmatprep.subr.bf16.mxu0 %v6515_v56  ;;  %2840 = vmatprep.subr.bf16.mxu1 %v6516_v25  ;;  %v6605_v25 = vld [vmem:[#allocation90_spill] sm:$0xff] }
 0x92a   :  { %2800 = vmatpush1.bf16.msra.mxu0 %v6517_v11  ;;  %2841 = vmatpush1.bf16.msra.mxu1 %v6518_v34  ;;  %v6529_v34 = vld [vmem:[#allocation152_spill] sm:$0xff] }
 0x92b   :  { %2801 = vmatprep.subr.bf16.mxu0 %v6519_v26  ;;  %2842 = vmatprep.subr.bf16.mxu1 %v6520_v5  ;;  %v6530_v26 = vld [vmem:[#allocation153_spill] sm:$0xff]  ;;  %v6531_v5 = vld [vmem:[#allocation154_spill] sm:$0xff]  ;;  %v6604_v11 = vld [vmem:[#allocation180_spill] sm:$0xff] }
 0x92e   :  { %2802 = vmatpush1.bf16.msra.mxu0 %v6521_v12  ;;  %2843 = vmatpush1.bf16.msra.mxu1 %v6522_v46  ;;  %v6532_v12 = vld [vmem:[#allocation155_spill] sm:$0xff]  ;;  %v6533_v46 = vld [vmem:[#allocation157_spill] sm:$0xff] }
 0x92f   :  { %2803 = vmatprep.subr.bf16.mxu0 %v6523_v41  ;;  %2844 = vmatprep.subr.bf16.mxu1 %v6524_v2  ;;  %v6534_v41 = vld [vmem:[#allocation158_spill] sm:$0xff]  ;;  %v6535_v2 = vld [vmem:[#allocation21_spill] sm:$0xff] }
 0x932   :  { %2804 = vmatpush1.bf16.msra.mxu0 %v6525_v10  ;;  %2845 = vmatpush1.bf16.msra.mxu1 %v6526_v47  ;;  %v6536_v10 = vld [vmem:[#allocation24_spill] sm:$0xff] }
 0x933   :  { %2805 = vmatprep.subr.bf16.mxu0 %v6527_v42  ;;  %2846 = vmatprep.subr.bf16.mxu1 %v6528_v55  ;;  %v6537_v55 = vld [vmem:[#allocation22_spill] sm:$0xff] }
 0x934   :  { %v6546_v42 = vld [vmem:[#allocation34_spill] sm:$0xff] }
 0x936   :  { %2806 = vmatpush1.bf16.msra.mxu0 %v6529_v34  ;;  %2847 = vmatpush1.bf16.msra.mxu1 %v6530_v26  ;;  %v6538_v34 = vld [vmem:[#allocation26_spill] sm:$0xff]  ;;  %v6539_v26 = vld [vmem:[#allocation23_spill] sm:$0xff] }
 0x937   :  { %2807 = vmatprep.subr.bf16.mxu0 %v6531_v5  ;;  %2848 = vmatprep.subr.bf16.mxu1 %v6532_v12  ;;  %v6540_v5 = vld [vmem:[#allocation28_spill] sm:$0xff]  ;;  %v6541_v12 = vld [vmem:[#allocation25_spill] sm:$0xff] }
 0x93a   :  { %2808 = vmatpush1.bf16.msra.mxu0 %v6533_v46  ;;  %2849 = vmatpush1.bf16.msra.mxu1 %v6534_v41  ;;  %v6542_v46 = vld [vmem:[#allocation30_spill] sm:$0xff]  ;;  %v6543_v41 = vld [vmem:[#allocation27_spill] sm:$0xff] }
 0x93b   :  { %2922 = vmatprep.subr.bf16.mxu0 %v6535_v2  ;;  %2963 = vmatprep.subr.bf16.mxu1 %v6536_v10  ;;  %v6544_v2 = vld [vmem:[#allocation32_spill] sm:$0xff]  ;;  %v6545_v10 = vld [vmem:[#allocation29_spill] sm:$0xff] }
 0x93d   :  { %2810 = vmatmul.mubr.bf16.vlgmr.msra.gmra.mrb[68].mxu0 %v5268_v51  ;;  %2851 = vmatmul.mubr.bf16.vlgmr.msra.gmra.mrb[68].mxu1 %v5268_v51  ;;  %v6547_v51 = vld [vmem:[#allocation31_spill] sm:$0xff] }
 0x93e   :  { %2923 = vmatpush1.bf16.msra.mxu0 %v6537_v55  ;;  %2964 = vmatpush1.bf16.msra.mxu1 %v6538_v34  ;;  %v6548_v55 = vld [vmem:[#allocation35_spill] sm:$0xff]  ;;  %v6549_v34 = vld [vmem:[#allocation33_spill] sm:$0xff] }
 0x93f   :  { %2924 = vmatprep.subr.bf16.mxu0 %v6539_v26  ;;  %2965 = vmatprep.subr.bf16.mxu1 %v6540_v5  ;;  %v6550_v26 = vld [vmem:[#allocation36_spill] sm:$0xff]  ;;  %v6551_v5 = vld [vmem:[#allocation37_spill] sm:$0xff] }
 0x942   :  { %2925 = vmatpush1.bf16.msra.mxu0 %v6541_v12  ;;  %2966 = vmatpush1.bf16.msra.mxu1 %v6542_v46  ;;  %v6552_v12 = vld [vmem:[#allocation38_spill] sm:$0xff]  ;;  %v6553_v46 = vld [vmem:[#allocation39_spill] sm:$0xff] }
 0x943   :  { %2926 = vmatprep.subr.bf16.mxu0 %v6543_v41  ;;  %2967 = vmatprep.subr.bf16.mxu1 %v6544_v2  ;;  %v6554_v41 = vld [vmem:[#allocation40_spill] sm:$0xff]  ;;  %v6555_v2 = vld [vmem:[#allocation41_spill] sm:$0xff] }
 0x946   :  { %2927 = vmatpush1.bf16.msra.mxu0 %v6545_v10  ;;  %2968 = vmatpush1.bf16.msra.mxu1 %v6546_v42  ;;  %v6556_v10 = vld [vmem:[#allocation42_spill] sm:$0xff]  ;;  %v6557_v42 = vld [vmem:[#allocation43_spill] sm:$0xff] }
 0x947   :  { %2928 = vmatprep.subr.bf16.mxu0 %v6547_v51  ;;  %2969 = vmatprep.subr.bf16.mxu1 %v6548_v55  ;;  %v6558_v51 = vld [vmem:[#allocation44_spill] sm:$0xff]  ;;  %v6559_v55 = vld [vmem:[#allocation45_spill] sm:$0xff] }
 0x94a   :  { %2929 = vmatpush1.bf16.msra.mxu0 %v6549_v34  ;;  %2970 = vmatpush1.bf16.msra.mxu1 %v6550_v26  ;;  %v6560_v34 = vld [vmem:[#allocation46_spill] sm:$0xff]  ;;  %v6561_v26 = vld [vmem:[#allocation47_spill] sm:$0xff] }
 0x94b   :  { %2930 = vmatprep.subr.bf16.mxu0 %v6551_v5  ;;  %2971 = vmatprep.subr.bf16.mxu1 %v6552_v12  ;;  %v6562_v5 = vld [vmem:[#allocation48_spill] sm:$0xff]  ;;  %v6563_v12 = vld [vmem:[#allocation49_spill] sm:$0xff] }
 0x94e   :  { %2931 = vmatpush1.bf16.msra.mxu0 %v6553_v46  ;;  %2972 = vmatpush1.bf16.msra.mxu1 %v6554_v41  ;;  %v6564_v46 = vld [vmem:[#allocation50_spill] sm:$0xff]  ;;  %v6565_v41 = vld [vmem:[#allocation51_spill] sm:$0xff] }
 0x94f   :  { %2932 = vmatprep.subr.bf16.mxu0 %v6555_v2  ;;  %2973 = vmatprep.subr.bf16.mxu1 %v6556_v10  ;;  %v6566_v2 = vld [vmem:[#allocation52_spill] sm:$0xff]  ;;  %v6567_v10 = vld [vmem:[#allocation53_spill] sm:$0xff] }
 0x952   :  { %2933 = vmatpush1.bf16.msra.mxu0 %v6557_v42  ;;  %2974 = vmatpush1.bf16.msra.mxu1 %v6558_v51  ;;  %v6568_v42 = vld [vmem:[#allocation54_spill] sm:$0xff]  ;;  %v6569_v51 = vld [vmem:[#allocation55_spill] sm:$0xff] }
 0x953   :  { %2934 = vmatprep.subr.bf16.mxu0 %v6559_v55  ;;  %2975 = vmatprep.subr.bf16.mxu1 %v6560_v34  ;;  %v6570_v55 = vld [vmem:[#allocation56_spill] sm:$0xff]  ;;  %v6571_v34 = vld [vmem:[#allocation57_spill] sm:$0xff] }
 0x956   :  { %2935 = vmatpush1.bf16.msra.mxu0 %v6561_v26  ;;  %2976 = vmatpush1.bf16.msra.mxu1 %v6562_v5  ;;  %v6572_v26 = vld [vmem:[#allocation58_spill] sm:$0xff]  ;;  %v6573_v5 = vld [vmem:[#allocation59_spill] sm:$0xff] }
 0x957   :  { %2936 = vmatprep.subr.bf16.mxu0 %v6563_v12  ;;  %2977 = vmatprep.subr.bf16.mxu1 %v6564_v46  ;;  %v6574_v12 = vld [vmem:[#allocation60_spill] sm:$0xff]  ;;  %v6575_v46 = vld [vmem:[#allocation61_spill] sm:$0xff] }
 0x95a   :  { %2937 = vmatpush1.bf16.msra.mxu0 %v6565_v41  ;;  %2978 = vmatpush1.bf16.msra.mxu1 %v6566_v2  ;;  %v6576_v41 = vld [vmem:[#allocation62_spill] sm:$0xff]  ;;  %v6577_v2 = vld [vmem:[#allocation63_spill] sm:$0xff] }
 0x95b   :  { %2938 = vmatprep.subr.bf16.mxu0 %v6567_v10  ;;  %2979 = vmatprep.subr.bf16.mxu1 %v6568_v42  ;;  %v6578_v10 = vld [vmem:[#allocation64_spill] sm:$0xff]  ;;  %v6579_v42 = vld [vmem:[#allocation65_spill] sm:$0xff] }
 0x95e   :  { %2939 = vmatpush1.bf16.msra.mxu0 %v6569_v51  ;;  %2980 = vmatpush1.bf16.msra.mxu1 %v6570_v55  ;;  %v6580_v51 = vld [vmem:[#allocation66_spill] sm:$0xff]  ;;  %v6581_v55 = vld [vmem:[#allocation67_spill] sm:$0xff] }
 0x95f   :  { %2940 = vmatprep.subr.bf16.mxu0 %v6571_v34  ;;  %2981 = vmatprep.subr.bf16.mxu1 %v6572_v26  ;;  %v6582_v34 = vld [vmem:[#allocation68_spill] sm:$0xff]  ;;  %v6583_v26 = vld [vmem:[#allocation69_spill] sm:$0xff] }
 0x962   :  { %2941 = vmatpush1.bf16.msra.mxu0 %v6573_v5  ;;  %2982 = vmatpush1.bf16.msra.mxu1 %v6574_v12  ;;  %v6584_v5 = vld [vmem:[#allocation70_spill] sm:$0xff]  ;;  %v6585_v12 = vld [vmem:[#allocation71_spill] sm:$0xff] }
 0x963   :  { %2942 = vmatprep.subr.bf16.mxu0 %v6575_v46  ;;  %2983 = vmatprep.subr.bf16.mxu1 %v6576_v41  ;;  %v6586_v46 = vld [vmem:[#allocation72_spill] sm:$0xff]  ;;  %v6587_v41 = vld [vmem:[#allocation73_spill] sm:$0xff] }
 0x966   :  { %2943 = vmatpush1.bf16.msra.mxu0 %v6577_v2  ;;  %2984 = vmatpush1.bf16.msra.mxu1 %v6578_v10  ;;  %v6588_v2 = vld [vmem:[#allocation75_spill] sm:$0xff]  ;;  %v6589_v10 = vld [vmem:[#allocation74_spill] sm:$0xff] }
 0x967   :  { %2944 = vmatprep.subr.bf16.mxu0 %v6579_v42  ;;  %2985 = vmatprep.subr.bf16.mxu1 %v6580_v51  ;;  %v6590_v42 = vld [vmem:[#allocation76_spill] sm:$0xff]  ;;  %v6591_v51 = vld [vmem:[#allocation77_spill] sm:$0xff] }
 0x96a   :  { %2945 = vmatpush1.bf16.msra.mxu0 %v6581_v55  ;;  %2986 = vmatpush1.bf16.msra.mxu1 %v6582_v34  ;;  %v6592_v55 = vld [vmem:[#allocation78_spill] sm:$0xff]  ;;  %v6593_v34 = vld [vmem:[#allocation79_spill] sm:$0xff] }
 0x96b   :  { %2946 = vmatprep.subr.bf16.mxu0 %v6583_v26  ;;  %2987 = vmatprep.subr.bf16.mxu1 %v6584_v5  ;;  %v6594_v26 = vld [vmem:[#allocation80_spill] sm:$0xff]  ;;  %v6595_v5 = vld [vmem:[#allocation81_spill] sm:$0xff] }
 0x96e   :  { %2947 = vmatpush1.bf16.msra.mxu0 %v6585_v12  ;;  %2988 = vmatpush1.bf16.msra.mxu1 %v6586_v46  ;;  %v6596_v12 = vld [vmem:[#allocation82_spill] sm:$0xff]  ;;  %v6597_v46 = vld [vmem:[#allocation83_spill] sm:$0xff] }
 0x96f   :  { %2948 = vmatprep.subr.bf16.mxu0 %v6587_v41  ;;  %2989 = vmatprep.subr.bf16.mxu1 %v6588_v2  ;;  %v6598_v41 = vld [vmem:[#allocation84_spill] sm:$0xff]  ;;  %v6599_v2 = vld [vmem:[#allocation85_spill] sm:$0xff] }
 0x972   :  { %2949 = vmatpush1.bf16.msra.mxu0 %v6589_v10  ;;  %2990 = vmatpush1.bf16.msra.mxu1 %v6590_v42  ;;  %v6600_v10 = vld [vmem:[#allocation86_spill] sm:$0xff]  ;;  %v6601_v42 = vld [vmem:[#allocation89_spill] sm:$0xff] }
 0x973   :  { %2950 = vmatprep.subr.bf16.mxu0 %v6591_v51  ;;  %2991 = vmatprep.subr.bf16.mxu1 %v6592_v55  ;;  %v6602_v51 = vld [vmem:[#allocation176_spill] sm:$0xff]  ;;  %v6603_v55 = vld [vmem:[#allocation95_spill] sm:$0xff] }
 0x974   :  { %v393_v47 = vadd.f32 %v6602_v51, %v6601_v42 }
 0x976   :  { %2951 = vmatpush1.bf16.msra.mxu0 %v6593_v34  ;;  %2992 = vmatpush1.bf16.msra.mxu1 %v6594_v26  ;;  %v466_v34 = vadd.f32 %v6604_v11, %v6603_v55  ;;  %v6606_v26 = vld [vmem:[#allocation178_spill] sm:$0xff] }
 0x977   :  { %2952 = vmatprep.subr.bf16.mxu0 %v6595_v5  ;;  %2993 = vmatprep.subr.bf16.mxu1 %v6596_v12  ;;  %v395_v56 = vadd.f32 %v6606_v26, %v6605_v25  ;;  %v6607_v5 = vld [vmem:[#allocation181_spill] sm:$0xff] }
 0x978   :  { %v468_v12 = vadd.f32 %v6607_v5, %v6005_v19 }
 0x97a   :  { %2953 = vmatpush1.bf16.msra.mxu0 %v6597_v46  ;;  %2994 = vmatpush1.bf16.msra.mxu1 %v6598_v41 }
 0x97b   :  { %3004 = vmatprep.subr.bf16.mxu0 %v6599_v2  ;;  %3045 = vmatprep.subr.bf16.mxu1 %v6600_v10 }
 0x9d0   :  { %v2729_v15 = vpop.f32.mrb[64].mxu0  ;;  %v2770_v46 = vpop.f32.mrb[64].mxu1 }
 0x9d1   :  { %v2892_v3 = vadd.f32 %v2729_v15, %v393_v47  ;;  %v2894_v41 = vadd.f32 %v2770_v46, %v466_v34  ;;  %v2731_v33 = vpop.f32.mrb[65].mxu0  ;;  %v2772_v2 = vpop.f32.mrb[65].mxu1 }
 0x9d2   :  { %v2893_v48 = vadd.f32 %v2731_v33, %v395_v56  ;;  %v2895_v10 = vadd.f32 %v2772_v2, %v468_v12  ;;  %v2733_v27 = vpop.f32.mrb[66].mxu0  ;;  %v2774_v38 = vpop.f32.mrb[66].mxu1 }
 0x9d3   :  { %v3371_v42 = vmul.f32 -1.442695, %v2892_v3  ;;  %v2734_v51 = vpop.f32.mrb[67].mxu0  ;;  %v2775_v21 = vpop.f32.mrb[67].mxu1 }
 0x9d4   :  { %v3372_v11 = vmul.f32 -1.442695, %v2893_v48  ;;  %v3373_v25 = vmul.f32 -1.442695, %v2895_v10 }
 0x9d5   :  { %3652 = vpow2.f32 %v3371_v42 }
 0x9d6   :  { %3654 = vpow2.f32 %v3372_v11 }
 0x9d7   :  { %3656 = vpow2.f32 %v3373_v25 }
 0x9d8   :  { %3658 = vtanh.f32 %v2894_v41 }
 0x9df   :  { %v3653_v55 = vpop.eup %3652 }
 0x9e0   :  { %v3655_v26 = vpop.eup %3654  ;;  %v2899_v19 = vadd.f32 1.0, %v3653_v55 }
 0x9e1   :  { %v2905_v15 = vadd.f32 1.0, %v3655_v26  ;;  %v3657_v47 = vpop.eup %3656 }
 0x9e2   :  { %3660 = vrcp.f32 %v2899_v19  ;;  %v3659_v33 = vpop.eup %3658  ;;  %v2912_v3 = vadd.f32 1.0, %v3657_v47 }
 0x9e3   :  { %3662 = vrcp.f32 %v2905_v15 }
 0x9e4   :  { %3664 = vrcp.f32 %v2912_v3 }
 0x9ec   :  { %v3661_v56 = vpop.eup %3660 }
 0x9ed   :  { %v3663_v27 = vpop.eup %3662  ;;  %v2916_v38 = vmul.f32 %v3661_v56, %v3659_v33 }
 0x9ee   :  { %v2915_v21 = vmul.f32 %v3663_v27, %v5257_v60  ;;  %v3665_v34 = vpop.eup %3664 }
 0x9f0   :  { %v2917_v48 = vadd.f32 %v2916_v38, %v2915_v21 }
 0x9f2   :  { %3666 = vtanh.f32 %v2917_v48  ;;  %3128 = vst [vmem:[#allocation15] sm:$0xff] %v2917_v48 }
 0x9fc   :  { %v3667_v5 = vpop.eup %3666 }
 0x9fd   :  { %v2919_v12 = vmul.f32 %v3667_v5, %v3665_v34 }
 0x9ff   :  { %3125 = vst [vmem:[#allocation14] sm:$0xff] %v2919_v12 }
 0xa10   :  { %v2811_v46 = vpop.f32.mrb[68].mxu0  ;;  %v2852_v41 = vpop.f32.mrb[68].mxu1 }
 0xa11   :  { %v2859_v2 = vadd.f32 %v2811_v46, %v6108_v58  ;;  %v2813_v10 = vpop.f32.mrb[69].mxu0  ;;  %v2854_v42 = vpop.f32.mrb[69].mxu1  ;;  %v2861_v33 = vadd.f32 %v2852_v41, %v4491_v35 }
 0xa12   :  { %v2860_v51 = vadd.f32 %v2813_v10, %v4480_v52  ;;  %v2815_v11 = vpop.f32.mrb[70].mxu0  ;;  %v2856_v25 = vpop.f32.mrb[70].mxu1  ;;  %v2862_v15 = vadd.f32 %v2854_v42, %v4486_v39 }
 0xa13   :  { %v3368_v55 = vmul.f32 -1.442695, %v2859_v2  ;;  %v2816_v60 = vpop.f32.mrb[71].mxu0  ;;  %v2857_v26 = vpop.f32.mrb[71].mxu1 }
 0xa14   :  { %v3369_v19 = vmul.f32 -1.442695, %v2860_v51  ;;  %v3370_v47 = vmul.f32 -1.442695, %v2862_v15 }
 0xa15   :  { %3668 = vpow2.f32 %v3368_v55  ;;  %v5419_v55 = vpack.c.bf16 %v2919_v12, %v2919_v12 }
 0xa16   :  { %3670 = vpow2.f32 %v3369_v19 }
 0xa17   :  { %3672 = vpow2.f32 %v3370_v47 }
 0xa18   :  { %3674 = vtanh.f32 %v2861_v33 }
 0xa1f   :  { %v3669_v56 = vpop.eup %3668 }
 0xa20   :  { %v3671_v27 = vpop.eup %3670  ;;  %v2866_v38 = vadd.f32 1.0, %v3669_v56 }
 0xa21   :  { %v2872_v3 = vadd.f32 1.0, %v3671_v27  ;;  %v3673_v21 = vpop.eup %3672 }
 0xa22   :  { %3676 = vrcp.f32 %v2866_v38  ;;  %v3675_v48 = vpop.eup %3674  ;;  %v2879_v2 = vadd.f32 1.0, %v3673_v21 }
 0xa23   :  { %3678 = vrcp.f32 %v2872_v3 }
 0xa24   :  { %3680 = vrcp.f32 %v2879_v2 }
 0xa2c   :  { %v3677_v34 = vpop.eup %3676 }
 0xa2d   :  { %v3679_v5 = vpop.eup %3678  ;;  %v2883_v46 = vmul.f32 %v3677_v34, %v3675_v48 }
 0xa2e   :  { %v2882_v10 = vmul.f32 %v3679_v5, %v5265_v22  ;;  %v3681_v41 = vpop.eup %3680 }
 0xa30   :  { %v5416_v42 = vadd.f32 %v2883_v46, %v2882_v10 }
 0xa32   :  { %3682 = vtanh.f32 %v5416_v42 }
 0xa3c   :  { %v3683_v51 = vpop.eup %3682 }
 0xa3d   :  { %v2886_v11 = vmul.f32 %v3683_v51, %v3681_v41 }
 0xa3f   :  { %v2921_v25 = vpack.c.bf16 %v2886_v11, %v2886_v11 }
 0xa41   :  { %2954 = vmatprep.mubr.bf16.mxu0 %v2921_v25  ;;  %2995 = vmatprep.mubr.bf16.mxu1 %v2921_v25 }
 0xa42   :  { %2955 = vmatmul.mubr.bf16.vlgmr.msra.gmra.mrb[72].mxu0 %v5419_v55  ;;  %2996 = vmatmul.mubr.bf16.vlgmr.msra.gmra.mrb[72].mxu1 %v5419_v55 }
 0xa43   :  { %3005 = vmatpush1.bf16.msra.mxu0 %v4112_v37  ;;  %3046 = vmatpush1.bf16.msra.mxu1 %v6014_v54  ;;  %v6608_v37 = vld [vmem:[#allocation131_spill] sm:$0xff]  ;;  %v6609_v54 = vld [vmem:[#allocation132_spill] sm:$0xff] }
 0xa44   :  { %3036 = vmatprep.mubr.bf16.mxu0 %v2921_v25  ;;  %3077 = vmatprep.mubr.bf16.mxu1 %v2921_v25 }
 0xa45   :  { %3006 = vmatprep.subr.bf16.mxu0 %v6015_v31  ;;  %3047 = vmatprep.subr.bf16.mxu1 %v6016_v20  ;;  %v6610_v31 = vld [vmem:[#allocation133_spill] sm:$0xff]  ;;  %v6611_v20 = vld [vmem:[#allocation134_spill] sm:$0xff] }
 0xa47   :  { %3007 = vmatpush1.bf16.msra.mxu0 %v6017_v45  ;;  %3048 = vmatpush1.bf16.msra.mxu1 %v6018_v44  ;;  %v6612_v45 = vld [vmem:[#allocation135_spill] sm:$0xff]  ;;  %v6613_v44 = vld [vmem:[#allocation136_spill] sm:$0xff] }
 0xa48   :  { %3008 = vmatprep.subr.bf16.mxu0 %v6109_v13  ;;  %3049 = vmatprep.subr.bf16.mxu1 %v6110_v24  ;;  %v6614_v13 = vld [vmem:[#allocation137_spill] sm:$0xff]  ;;  %v6615_v24 = vld [vmem:[#allocation138_spill] sm:$0xff] }
 0xa4b   :  { %3009 = vmatpush1.bf16.msra.mxu0 %v6111_v1  ;;  %3050 = vmatpush1.bf16.msra.mxu1 %v6112_v63  ;;  %v6616_v1 = vld [vmem:[#allocation139_spill] sm:$0xff]  ;;  %v6617_v63 = vld [vmem:[#allocation140_spill] sm:$0xff] }
 0xa4c   :  { %3010 = vmatprep.subr.bf16.mxu0 %v6113_v62  ;;  %3051 = vmatprep.subr.bf16.mxu1 %v6114_v6  ;;  %v6618_v62 = vld [vmem:[#allocation141_spill] sm:$0xff]  ;;  %v6619_v6 = vld [vmem:[#allocation142_spill] sm:$0xff] }
 0xa4f   :  { %3011 = vmatpush1.bf16.msra.mxu0 %v6115_v14  ;;  %3052 = vmatpush1.bf16.msra.mxu1 %v6116_v30  ;;  %v6620_v14 = vld [vmem:[#allocation143_spill] sm:$0xff]  ;;  %v6621_v30 = vld [vmem:[#allocation144_spill] sm:$0xff] }
 0xa50   :  { %3012 = vmatprep.subr.bf16.mxu0 %v6117_v32  ;;  %3053 = vmatprep.subr.bf16.mxu1 %v6208_v59  ;;  %v6622_v32 = vld [vmem:[#allocation145_spill] sm:$0xff]  ;;  %v6628_v59 = vld [vmem:[#allocation151_spill] sm:$0xff] }
 0xa53   :  { %3013 = vmatpush1.bf16.msra.mxu0 %v6209_v49  ;;  %3054 = vmatpush1.bf16.msra.mxu1 %v6210_v57  ;;  %v6629_v49 = vld [vmem:[#allocation152_spill] sm:$0xff]  ;;  %v6630_v57 = vld [vmem:[#allocation153_spill] sm:$0xff] }
 0xa54   :  { %3014 = vmatprep.subr.bf16.mxu0 %v6211_v29  ;;  %3055 = vmatprep.subr.bf16.mxu1 %v6212_v53  ;;  %v6631_v29 = vld [vmem:[#allocation154_spill] sm:$0xff]  ;;  %v6632_v53 = vld [vmem:[#allocation155_spill] sm:$0xff] }
 0xa57   :  { %3015 = vmatpush1.bf16.msra.mxu0 %v6213_v36  ;;  %3056 = vmatpush1.bf16.msra.mxu1 %v6214_v0  ;;  %v6633_v36 = vld [vmem:[#allocation157_spill] sm:$0xff]  ;;  %v6634_v0 = vld [vmem:[#allocation158_spill] sm:$0xff] }
 0xa58   :  { %3016 = vmatprep.subr.bf16.mxu0 %v6215_v4  ;;  %3057 = vmatprep.subr.bf16.mxu1 %v6216_v7 }
 0xa5b   :  { %3017 = vmatpush1.bf16.msra.mxu0 %v6217_v23  ;;  %3058 = vmatpush1.bf16.msra.mxu1 %v6218_v50 }
 0xa5c   :  { %3018 = vmatprep.subr.bf16.mxu0 %v6129_v8  ;;  %3059 = vmatprep.subr.bf16.mxu1 %v6130_v17  ;;  %v6623_v8 = vld [vmem:[#allocation146_spill] sm:$0xff]  ;;  %v6624_v17 = vld [vmem:[#allocation147_spill] sm:$0xff] }
 0xa5f   :  { %3019 = vmatpush1.bf16.msra.mxu0 %v6131_v16  ;;  %3060 = vmatpush1.bf16.msra.mxu1 %v6219_v61  ;;  %v6625_v16 = vld [vmem:[#allocation148_spill] sm:$0xff] }
 0xa60   :  { %3020 = vmatprep.subr.bf16.mxu0 %v6220_v43  ;;  %3061 = vmatprep.subr.bf16.mxu1 %v6134_v18  ;;  %v6626_v18 = vld [vmem:[#allocation149_spill] sm:$0xff] }
 0xa63   :  { %3021 = vmatpush1.bf16.msra.mxu0 %v6135_v9  ;;  %3062 = vmatpush1.bf16.msra.mxu1 %v6221_v28  ;;  %v6627_v9 = vld [vmem:[#allocation150_spill] sm:$0xff] }
 0xa64   :  { %3022 = vmatprep.subr.bf16.mxu0 %v6222_v40  ;;  %3063 = vmatprep.subr.bf16.mxu1 %v6608_v37 }
 0xa67   :  { %3023 = vmatpush1.bf16.msra.mxu0 %v6609_v54  ;;  %3064 = vmatpush1.bf16.msra.mxu1 %v6610_v31 }
 0xa68   :  { %3024 = vmatprep.subr.bf16.mxu0 %v6611_v20  ;;  %3065 = vmatprep.subr.bf16.mxu1 %v6612_v45 }
 0xa6b   :  { %3025 = vmatpush1.bf16.msra.mxu0 %v6613_v44  ;;  %3066 = vmatpush1.bf16.msra.mxu1 %v6614_v13 }
 0xa6c   :  { %3026 = vmatprep.subr.bf16.mxu0 %v6615_v24  ;;  %3067 = vmatprep.subr.bf16.mxu1 %v6616_v1 }
 0xa6f   :  { %3027 = vmatpush1.bf16.msra.mxu0 %v6617_v63  ;;  %3068 = vmatpush1.bf16.msra.mxu1 %v6618_v62 }
 0xa70   :  { %3028 = vmatprep.subr.bf16.mxu0 %v6619_v6  ;;  %3069 = vmatprep.subr.bf16.mxu1 %v6620_v14 }
 0xa73   :  { %3029 = vmatpush1.bf16.msra.mxu0 %v6621_v30  ;;  %3070 = vmatpush1.bf16.msra.mxu1 %v6622_v32 }
 0xa74   :  { %3030 = vmatprep.subr.bf16.mxu0 %v6623_v8  ;;  %3071 = vmatprep.subr.bf16.mxu1 %v6624_v17 }
 0xa77   :  { %3031 = vmatpush1.bf16.msra.mxu0 %v6625_v16  ;;  %3072 = vmatpush1.bf16.msra.mxu1 %v6626_v18 }
 0xa78   :  { %3032 = vmatprep.subr.bf16.mxu0 %v6627_v9  ;;  %3073 = vmatprep.subr.bf16.mxu1 %v6628_v59 }
 0xa7b   :  { %3033 = vmatpush1.bf16.msra.mxu0 %v6629_v49  ;;  %3074 = vmatpush1.bf16.msra.mxu1 %v6630_v57 }
 0xa7c   :  { %3034 = vmatprep.subr.bf16.mxu0 %v6631_v29  ;;  %3075 = vmatprep.subr.bf16.mxu1 %v6632_v53 }
 0xa7f   :  { %3035 = vmatpush1.bf16.msra.mxu0 %v6633_v36  ;;  %3076 = vmatpush1.bf16.msra.mxu1 %v6634_v0 }
 0xa82   :  { %3037 = vmatmul.mubr.bf16.vlgmr.msra.gmra.mrb[76].mxu0 %v5419_v55  ;;  %3078 = vmatmul.mubr.bf16.vlgmr.msra.gmra.mrb[76].mxu1 %v5419_v55 }
 0xb15   :  { %v2956_v4 = vpop.f32.mrb[72].mxu0  ;;  %v2997_v7 = vpop.f32.mrb[72].mxu1 }
 0xb16   :  { %v2958_v23 = vpop.f32.mrb[73].mxu0  ;;  %v2999_v50 = vpop.f32.mrb[73].mxu1 }
 0xb17   :  { %v2960_v61 = vpop.f32.mrb[74].mxu0  ;;  %v3001_v43 = vpop.f32.mrb[74].mxu1 }
 0xb18   :  { %v2961_v28 = vpop.f32.mrb[75].mxu0  ;;  %v3002_v40 = vpop.f32.mrb[75].mxu1 }
 0xb55   :  { %v3038_v22 = vpop.f32.mrb[76].mxu0  ;;  %v3079_v12 = vpop.f32.mrb[76].mxu1 }
 0xb56   :  { %v3086_v60 = vadd.f32 %v3038_v22, %v6108_v58  ;;  %v3040_v26 = vpop.f32.mrb[77].mxu0  ;;  %v3081_v19 = vpop.f32.mrb[77].mxu1  ;;  %v3088_v34 = vadd.f32 %v3079_v12, %v4491_v35 }
 0xb57   :  { %v3087_v15 = vadd.f32 %v3040_v26, %v4480_v52  ;;  %v3042_v47 = vpop.f32.mrb[78].mxu0  ;;  %v3083_v33 = vpop.f32.mrb[78].mxu1  ;;  %v3089_v21 = vadd.f32 %v3081_v19, %v4486_v39 }
 0xb58   :  { %v3374_v56 = vmul.f32 -1.442695, %v3086_v60  ;;  %v3043_v27 = vpop.f32.mrb[79].mxu0  ;;  %v3084_v38 = vpop.f32.mrb[79].mxu1 }
 0xb59   :  { %v3375_v3 = vmul.f32 -1.442695, %v3087_v15  ;;  %v3376_v48 = vmul.f32 -1.442695, %v3089_v21 }
 0xb5a   :  { %3684 = vpow2.f32 %v3374_v56 }
 0xb5b   :  { %3686 = vpow2.f32 %v3375_v3 }
 0xb5c   :  { %3688 = vpow2.f32 %v3376_v48 }
 0xb5d   :  { %3690 = vtanh.f32 %v3088_v34 }
 0xb64   :  { %v3685_v5 = vpop.eup %3684 }
 0xb65   :  { %v3687_v46 = vpop.eup %3686  ;;  %v3093_v58 = vadd.f32 1.0, %v3685_v5 }
 0xb66   :  { %v3099_v2 = vadd.f32 1.0, %v3687_v46  ;;  %v3689_v52 = vpop.eup %3688 }
 0xb67   :  { %3692 = vrcp.f32 %v3093_v58  ;;  %v3691_v10 = vpop.eup %3690  ;;  %v3106_v25 = vadd.f32 1.0, %v3689_v52 }
 0xb68   :  { %3694 = vrcp.f32 %v3099_v2 }
 0xb69   :  { %3696 = vrcp.f32 %v3106_v25 }
 0xb71   :  { %v3693_v41 = vpop.eup %3692 }
 0xb72   :  { %v3695_v51 = vpop.eup %3694  ;;  %v3110_v11 = vmul.f32 %v3693_v41, %v3691_v10 }
 0xb73   :  { %v3109_v39 = vmul.f32 %v3695_v51, %v5416_v42 }
 0xb75   :  { %v3111_v55 = vadd.f32 %v3110_v11, %v3109_v39 }
 0xb77   :  { %3698 = vtanh.f32 %v3111_v55  ;;  %3130 = vst [vmem:[#allocation15 + $0x8] sm:$0xff] %v3111_v55 }
 0xb78   :  { %3777 = shalt.err (!%p3774_p0)
}
 0xb79   :  { %s3778_s19 = scalar_lea.hbm %s5522_s6, 256 }
 0xb7a   :  { %p3779_p1 = scmp.ne.s32.totalorder %s5522_s6, %s3778_s19  ;;  %p3782_p2 = scmp.lt.u32.totalorder %s3778_s19, %s5522_s6 }
 0xb7c   :  { %p3784_p3 = pnand %p3782_p2, %p3779_p1 }
 0xb7e   :  { %3787 = shalt.err (!%p3784_p3)
}
 0xb7f   :  { %s3830_s23 = smov 128   ;;  %s3831_s24 = smov 8   ;;  %v3697_v35 = vpop.eup %3696 }
 0xb80   :  { %3154 = dma.vmem_to_hbm [thread:$0]  %s3149_s15, 256, %s5522_s6, [#allocation16], %s3830_s23, %s3830_s23, %s3831_s24  }
 0xb81   :  { %s3832_s27 = smov [#allocation14]   ;;  %v3699_v42 = vpop.eup %3698 }
 0xb82   :  { %s3136_s28 = sshll.u32 %s3832_s27, 4  ;;  %v3113_v37 = vmul.f32 %v3699_v42, %v3697_v35  ;;  %s3137_s28 = int_to_ptr.vmem [resolvable:$true] %s3136_s28 }
 0xb83   :  { %s3788_s29 = scalar_lea.vmem %s3137_s28, 256  ;;  %p3793_p5 = scmp.lt.s32.totalorder %s3137_s28, %s3137_s28 }
 0xb84   :  { %3127 = vst [vmem:[#allocation14 + $0x8] sm:$0xff] %v3113_v37  ;;  %p3789_p4 = scmp.ne.s32.totalorder %s3137_s28, %s3788_s29  ;;  %p3794_p6 = scmp.lt.s32.totalorder %s3788_s29, %s3788_s29 }
 0xb86   :  { %p3795_p7 = por %p3794_p6, %p3793_p5 }
 0xb88   :  { %p3796_p8 = pnand %p3795_p7, %p3789_p4 }
 0xb8a   :  { %3799 = shalt.err (!%p3796_p8)
}
 0xb8b   :  { %s3800_s8 = scalar_lea.hbm %s5521_s5, 256 }
 0xb8c   :  { %p3801_p9 = scmp.ne.s32.totalorder %s5521_s5, %s3800_s8  ;;  %p3804_p10 = scmp.lt.u32.totalorder %s3800_s8, %s5521_s5 }
 0xb8e   :  { %p3806_p11 = pnand %p3804_p10, %p3801_p9 }
 0xb90   :  { %3809 = shalt.err (!%p3806_p11)
}
 0xb91   :  { %3142 = dma.vmem_to_hbm [thread:$0]  %s3137_s28, 256, %s5521_s5, [#allocation10], %s3830_s23, %s3830_s23, %s3831_s24  }
 0xb92   :  { %3814 = dma.done.wait [#allocation10], 256  }
 0xb93   :  { %3815 = vsyncadd [#allocation10], 4294967040 }
 0xb94   :  { %3816 = dma.done.wait [#allocation16], 256  }
 0xb95   :  { %3817 = vsyncadd [#allocation16], 4294967040 }
 0xb96   :  { %3161 = vsyncpa [#allocation9], 1 }
 0xb97   :  { %3162 = vsyncpa [#allocation12], 1 }
 0xb98   :  { %3163 = vsyncpa [#allocation10], 1 }
 0xb99   :  { %3164 = vsyncpa [#allocation16], 1 }

</bundles_post_ra>
